<compile_context>
chip_gen: v7x
topology: tpu7x:2x2x1
jax: 0.10.0
libtpu: 0.0.40
codegen_flags: <defaults>
</compile_context>

<pallas_src>
import functools

import jax
import jax.numpy as jnp
from jax import lax
from jax.experimental import pallas as pl
from jax.experimental.pallas import tpu as pltpu


_VMEM = pl.BlockSpec(memory_space=pltpu.MemorySpace.VMEM)


def _round_up(x, m):
    return (x + m - 1) // m * m


def _pick_vmem_limit():
    """Generation-dependent scoped-VMEM limit (see perf review)."""
    try:
        kind = jax.devices()[0].device_kind.lower()
    except Exception:
        return 32 * 1024 * 1024
    if "v7" in kind:
        return 48 * 1024 * 1024          # physical VMEM is 64 MiB per TC on v7x
    if "v5" in kind or "v6" in kind:
        return 100 * 1024 * 1024         # physical VMEM is 128 MiB
    return 32 * 1024 * 1024


_VMEM_LIMIT = _pick_vmem_limit()


# ----------------------------------------------------------------------------
# Pallas kernels
# ----------------------------------------------------------------------------
def _input_proj_kernel(x_ref, w_ref, b_ref, gf_ref, gb_ref):
    """Fused input->gates projection for BOTH directions.

    x_ref : (BM, Din)  bf16 row-block of the time-major input (T*B rows flattened)
    w_ref : (Din, 8H)  bf16 [W_ih_f^T | W_ih_b^T]
    b_ref : (1, 8H)    f32  [b_ih_f+b_hh_f | b_ih_b+b_hh_b]
    gf/gb : (BM, 4H)   bf16 precomputed gate contributions per direction
    """
    G = gf_ref.shape[-1]
    g = jnp.dot(x_ref[...], w_ref[...], preferred_element_type=jnp.float32) + b_ref[...]
    gf_ref[...] = g[:, :G].astype(gf_ref.dtype)
    gb_ref[...] = g[:, G:].astype(gb_ref.dtype)


def _bidir_lstm_kernel(*refs, fuse_ln):
    """Fused forward+backward LSTM recurrence (input projection already folded in).

    Inputs : gxf (T,B,4H) bf16, gxb (T,B,4H) bf16, whf (H,4H) bf16, whb (H,4H) bf16,
             [gamma (1,1,2H) f32, beta (1,1,2H) f32 when fuse_ln]
    Outputs: out (T,B,2H) f32  ([:, :, :H]=fwd h_t, [:, :, H:]=bwd h_t; layer-normed
             in-place in the epilogue when fuse_ln),
             hN (2,B,H) f32, cN (2,B,H) f32.

    PyTorch gate order: i, f, g, o.
    """
    if fuse_ln:
        (gxf_ref, gxb_ref, whf_ref, whb_ref, g_ref, b_ref,
         out_ref, hN_ref, cN_ref) = refs
    else:
        gxf_ref, gxb_ref, whf_ref, whb_ref, out_ref, hN_ref, cN_ref = refs
        g_ref = b_ref = None

    T, B, _ = gxf_ref.shape
    H = whf_ref.shape[0]

    # Hoist weight loads out of the loop.
    whf = whf_ref[...]                        # (H, 4H) bf16
    whb = whb_ref[...]

    def cell(gates, c):
        # Gate math and carries stay f32 (no bf16 VPU/EUP on v5e).
        i = jax.nn.sigmoid(gates[:, 0 * H:1 * H])
        f = jax.nn.sigmoid(gates[:, 1 * H:2 * H])
        g = jnp.tanh(gates[:, 2 * H:3 * H])
        o = jax.nn.sigmoid(gates[:, 3 * H:4 * H])
        c_new = f * c + i * g
        h_new = o * jnp.tanh(c_new)
        return h_new, c_new

    def step(t, carry):
        h_f, c_f, h_b, c_b = carry
        tb = T - 1 - t
        # Only the small h @ W_hh matmul stays inside the serial chain; the two
        # directions are independent chains the scheduler can interleave.
        # TODO(synk): optionally fuse the two dots into one (2B,H)x(H,8H) matmul
        # for latency-bound small-B cases (v5e).
        gates_f = gxf_ref[t].astype(jnp.float32) + jnp.dot(
            h_f.astype(whf.dtype), whf, preferred_element_type=jnp.float32)
        gates_b = gxb_ref[tb].astype(jnp.float32) + jnp.dot(
            h_b.astype(whb.dtype), whb, preferred_element_type=jnp.float32)
        h_f, c_f = cell(gates_f, c_f)
        h_b, c_b = cell(gates_b, c_b)
        # Fused "concat": each direction writes its half of the 2H lane axis.
        out_ref[t, :, 0:H] = h_f
        out_ref[tb, :, H:2 * H] = h_b
        return (h_f, c_f, h_b, c_b)

    zeros = jnp.zeros((B, H), jnp.float32)
    unroll = max(d for d in (8, 4, 2, 1) if T % d == 0)
    h_f, c_f, h_b, c_b = lax.fori_loop(0, T, step, (zeros, zeros, zeros, zeros),
                                       unroll=unroll)
    hN_ref[0] = h_f
    hN_ref[1] = h_b
    cN_ref[0] = c_f
    cN_ref[1] = c_b

    if fuse_ln:
        # LayerNorm epilogue on the already-VMEM-resident output (eps = 1e-5).
        o = out_ref[...]                                      # (T, B, 2H) f32
        mu = jnp.mean(o, axis=-1, keepdims=True)
        var = jnp.mean(jnp.square(o - mu), axis=-1, keepdims=True)
        out_ref[...] = (o - mu) * lax.rsqrt(var + 1e-5) * g_ref[...] + b_ref[...]


# ----------------------------------------------------------------------------
# Wrappers around pallas_call
# ----------------------------------------------------------------------------
def input_projection(x_tbd, w_ih_cat, b_cat):
    """Precompute x @ [W_ih_f^T | W_ih_b^T] + biases for both directions.

    x_tbd: (T, B, Din).  Returns (gxf, gxb), each (T, B, 4H) bf16.
    """
    T, B, Din = x_tbd.shape
    G2 = w_ih_cat.shape[1]                    # 8H
    G = G2 // 2                               # 4H
    M = T * B
    BM = min(_round_up(M, 8), 512)
    Mp = _round_up(M, BM)
    x2d = x_tbd.reshape(M, Din).astype(jnp.bfloat16)
    if Mp != M:
        x2d = jnp.pad(x2d, ((0, Mp - M), (0, 0)))

    gf, gb = pl.pallas_call(
        _input_proj_kernel,
        grid=(Mp // BM,),
        in_specs=[
            pl.BlockSpec((BM, Din), lambda i: (i, 0)),
            pl.BlockSpec((Din, G2), lambda i: (0, 0)),
            pl.BlockSpec((1, G2), lambda i: (0, 0)),
        ],
        out_specs=(
            pl.BlockSpec((BM, G), lambda i: (i, 0)),
            pl.BlockSpec((BM, G), lambda i: (i, 0)),
        ),
        out_shape=(
            jax.ShapeDtypeStruct((Mp, G), jnp.bfloat16),
            jax.ShapeDtypeStruct((Mp, G), jnp.bfloat16),
        ),
        compiler_params=pltpu.CompilerParams(
            dimension_semantics=("parallel",), vmem_limit_bytes=_VMEM_LIMIT),
    )(x2d, w_ih_cat, b_cat)
    return gf[:M].reshape(T, B, G), gb[:M].reshape(T, B, G)


def bidir_lstm_layer(gxf, gxb, w_hhT_f, w_hhT_b, ln_gamma=None, ln_beta=None):
    """One fused bidirectional LSTM layer recurrence (optionally with fused LayerNorm).

    gxf/gxb: (T, B, 4H) bf16 precomputed input gates.
    Returns (out (T,B,2H) f32, hN (2,B,H) f32, cN (2,B,H) f32).
    """
    T, B, _ = gxf.shape
    H = w_hhT_f.shape[0]
    fuse_ln = ln_gamma is not None
    inputs = [gxf, gxb, w_hhT_f, w_hhT_b]
    if fuse_ln:
        inputs += [ln_gamma, ln_beta]
    return pl.pallas_call(
        functools.partial(_bidir_lstm_kernel, fuse_ln=fuse_ln),
        out_shape=(
            jax.ShapeDtypeStruct((T, B, 2 * H), jnp.float32),
            jax.ShapeDtypeStruct((2, B, H), jnp.float32),
            jax.ShapeDtypeStruct((2, B, H), jnp.float32),
        ),
        in_specs=[_VMEM] * len(inputs),
        out_specs=(_VMEM, _VMEM, _VMEM),
        compiler_params=pltpu.CompilerParams(vmem_limit_bytes=_VMEM_LIMIT),
    )(*inputs)


# ----------------------------------------------------------------------------
# Parameters
# ----------------------------------------------------------------------------
def init_params(key, vocab_size, embedding_size, hidden_size, num_layers):
    params = {}
    k_emb, key = jax.random.split(key)
    emb = 0.1 * jax.random.normal(k_emb, (vocab_size, embedding_size), jnp.float32)
    emb = emb.at[0].set(0.0)  # padding_idx=0
    params["embedding"] = emb

    H = hidden_size
    lstm = []
    for layer in range(num_layers):
        d_in = embedding_size if layer == 0 else 2 * H
        dirs = []
        for _ in range(2):  # forward, backward
            ks = jax.random.split(key, 5)
            key = ks[0]
            scale = 1.0 / jnp.sqrt(H)
            w_ih = scale * jax.random.uniform(ks[1], (4 * H, d_in), jnp.float32, -1.0, 1.0)
            w_hh = scale * jax.random.uniform(ks[2], (4 * H, H), jnp.float32, -1.0, 1.0)
            b_ih = scale * jax.random.uniform(ks[3], (4 * H,), jnp.float32, -1.0, 1.0)
            b_hh = scale * jax.random.uniform(ks[4], (4 * H,), jnp.float32, -1.0, 1.0)
            dirs.append((w_ih, w_hh, b_ih, b_hh))
        lstm.append(dirs)
    params["lstm"] = lstm
    params["ln_gamma"] = jnp.ones((2 * H,), jnp.float32)
    params["ln_beta"] = jnp.zeros((2 * H,), jnp.float32)
    return params


def pack_params(params):
    """One-time prep: transpose/concat/cast weights for the kernels (outside jit)."""
    G2H = params["ln_gamma"].shape[0]
    packed = {
        "embedding": params["embedding"],
        "ln_gamma": params["ln_gamma"].reshape(1, 1, G2H).astype(jnp.float32),
        "ln_beta": params["ln_beta"].reshape(1, 1, G2H).astype(jnp.float32),
        "lstm": [],
    }
    for (w_ih_f, w_hh_f, b_ih_f, b_hh_f), (w_ih_b, w_hh_b, b_ih_b, b_hh_b) in params["lstm"]:
        G = w_ih_f.shape[0]  # 4H
        packed["lstm"].append({
            "w_ih_cat": jnp.concatenate([w_ih_f.T, w_ih_b.T], axis=1).astype(jnp.bfloat16),
            "b_cat": jnp.concatenate([b_ih_f + b_hh_f, b_ih_b + b_hh_b]
                                     ).reshape(1, 2 * G).astype(jnp.float32),
            "w_hhT_f": w_hh_f.T.astype(jnp.bfloat16),
            "w_hhT_b": w_hh_b.T.astype(jnp.bfloat16),
        })
    return packed


# ----------------------------------------------------------------------------
# SandhiEncoder forward
# ----------------------------------------------------------------------------
def sandhi_encoder_forward(packed, x_ids, hidden_size, num_layers):
    """x_ids: (B, T) int32 token ids.  Returns (encoded_output, hidden, cell)."""
    B, T = x_ids.shape
    H = hidden_size

    # Pad batch up to a sublane multiple so recurrence stores are unmasked.
    Bp = _round_up(max(B, 1), 8)
    if Bp != B:
        x_ids = jnp.pad(x_ids, ((0, Bp - B), (0, 0)))   # pad token 0 -> zero embedding

    # Embedding lookup directly in time-major layout (folds the (B,T,E)->(T,B,E)
    # transpose into the gather on the tiny id tensor).
    layer_in = jnp.take(packed["embedding"], x_ids.T, axis=0)        # (T, Bp, E)
    # TODO(synk): nn.Dropout is identity in eval mode; no stochastic dropout applied.

    h_list, c_list = [], []
    for layer in range(num_layers):
        lp = packed["lstm"][layer]
        gxf, gxb = input_projection(layer_in, lp["w_ih_cat"], lp["b_cat"])
        last = layer == num_layers - 1
        out, hN, cN = bidir_lstm_layer(
            gxf, gxb, lp["w_hhT_f"], lp["w_hhT_b"],
            packed["ln_gamma"] if last else None,
            packed["ln_beta"] if last else None)
        h_list.append(hN[:, :B, :])
        c_list.append(cN[:, :B, :])
        layer_in = out                                               # (T, Bp, 2H)
        # (inter-layer dropout is identity in eval mode)

    # LayerNorm already fused into the last recurrence kernel's epilogue.
    # TODO(synk): emit batch-major (B,T,2H) directly from the kernel's out BlockSpec
    # instead of this single XLA transpose pass.
    encoded_output = jnp.transpose(layer_in[:, :B, :], (1, 0, 2))    # (B, T, 2H)

    hidden = jnp.concatenate(h_list, axis=0)   # (num_layers*2, B, H) [l0f,l0b,l1f,l1b]
    cell = jnp.concatenate(c_list, axis=0)
    return encoded_output, hidden, cell


# ----------------------------------------------------------------------------
# Pure-JAX reference (f32, for a correctness sanity check)
# ----------------------------------------------------------------------------
def _ref_lstm_direction(x_tbd, w_ih, w_hh, b_ih, b_hh, reverse):
    T, B, _ = x_tbd.shape
    H = w_hh.shape[1]
    xs = x_tbd[::-1] if reverse else x_tbd

    def step(carry, x_t):
        h, c = carry
        gates = x_t @ w_ih.T + h @ w_hh.T + b_ih + b_hh
        i = jax.nn.sigmoid(gates[:, 0 * H:1 * H])
        f = jax.nn.sigmoid(gates[:, 1 * H:2 * H])
        g = jnp.tanh(gates[:, 2 * H:3 * H])
        o = jax.nn.sigmoid(gates[:, 3 * H:4 * H])
        c_new = f * c + i * g
        h_new = o * jnp.tanh(c_new)
        return (h_new, c_new), h_new

    (hN, cN), out = lax.scan(step, (jnp.zeros((B, H)), jnp.zeros((B, H))), xs)
    if reverse:
        out = out[::-1]
    return out, hN, cN


def _ref_forward(params, x_ids, hidden_size, num_layers):
    embedded = jnp.take(params["embedding"], x_ids, axis=0)
    layer_in = jnp.transpose(embedded, (1, 0, 2))
    h_stack, c_stack = [], []
    for layer in range(num_layers):
        outs = []
        for d, reverse in enumerate((False, True)):
            w_ih, w_hh, b_ih, b_hh = params["lstm"][layer][d]
            out, hN, cN = _ref_lstm_direction(layer_in, w_ih, w_hh, b_ih, b_hh, reverse)
            outs.append(out)
            h_stack.append(hN)
            c_stack.append(cN)
        layer_in = jnp.concatenate(outs, axis=-1)
    mu = jnp.mean(layer_in, axis=-1, keepdims=True)
    var = jnp.mean(jnp.square(layer_in - mu), axis=-1, keepdims=True)
    normed = (layer_in - mu) * lax.rsqrt(var + 1e-5)
    normed = normed * params["ln_gamma"] + params["ln_beta"]
    enc = jnp.transpose(normed, (1, 0, 2))
    return enc, jnp.stack(h_stack, 0), jnp.stack(c_stack, 0)


# ----------------------------------------------------------------------------
if __name__ == "__main__":
    vocab_size, embedding_size, hidden_size, num_layers = 50, 32, 32, 2
    B, T = 2, 8

    key = jax.random.PRNGKey(0)
    k_p, k_x = jax.random.split(key)
    params = init_params(k_p, vocab_size, embedding_size, hidden_size, num_layers)
    packed = pack_params(params)
    x_ids = jax.random.randint(k_x, (B, T), 0, vocab_size, dtype=jnp.int32)

    fwd = jax.jit(functools.partial(sandhi_encoder_forward,
                                    hidden_size=hidden_size, num_layers=num_layers))
    enc, hidden, cell = fwd(packed, x_ids)
    jax.block_until_ready((enc, hidden, cell))

    assert enc.shape == (B, T, 2 * hidden_size)
    assert hidden.shape == (num_layers * 2, B, hidden_size)
    assert cell.shape == (num_layers * 2, B, hidden_size)

    # Sanity check against the f32 pure-JAX reference (tolerance loosened because
    # the Pallas path uses bf16 MXU operands and bf16-stored gate pre-activations
    # with f32 accumulation / f32 gate math).
    enc_r, hid_r, cel_r = _ref_forward(params, x_ids, hidden_size, num_layers)
    assert jnp.allclose(enc, enc_r, atol=5e-2), "encoded_output mismatch"
    assert jnp.allclose(hidden, hid_r, atol=5e-2), "hidden mismatch"
    assert jnp.allclose(cell, cel_r, atol=5e-2), "cell mismatch"

    print("KERNEL_OK")
</pallas_src>

<mosaic_0001>
module attributes {stable_mosaic.version = 11 : i64} {
  func.func @_input_proj_kernel(%arg0: i32, %arg1: memref<64x32xbf16, #tpu.memory_space<vmem>>, %arg2: memref<32x256xbf16, #tpu.memory_space<vmem>>, %arg3: memref<1x256xf32, #tpu.memory_space<vmem>>, %arg4: memref<64x128xbf16, #tpu.memory_space<vmem>>, %arg5: memref<64x128xbf16, #tpu.memory_space<vmem>>) attributes {dimension_semantics = [#tpu.dimension_semantics<parallel>], iteration_bounds = array<i64: 1>, scalar_prefetch = 0 : i64, scratch_operands = 0 : i64, tpu.core_type = #tpu.core_type<tc>, window_params = [{transform_indices = @transform_0, window_bounds = array<i64: 64, 32>}, {pipeline_mode = #tpu.pipeline_mode<synchronous>, transform_indices = @transform_1, window_bounds = array<i64: 32, 256>}, {pipeline_mode = #tpu.pipeline_mode<synchronous>, transform_indices = @transform_2, window_bounds = array<i64: 1, 256>}, {transform_indices = @transform_3, window_bounds = array<i64: 64, 128>}, {transform_indices = @transform_4, window_bounds = array<i64: 64, 128>}]} {
    %c0 = arith.constant 0 : index
    %c0_0 = arith.constant 0 : index
    %0 = vector.load %arg1[%c0, %c0_0] : memref<64x32xbf16, #tpu.memory_space<vmem>>, vector<64x32xbf16>
    %c0_1 = arith.constant 0 : index
    %c0_2 = arith.constant 0 : index
    %1 = vector.load %arg2[%c0_1, %c0_2] : memref<32x256xbf16, #tpu.memory_space<vmem>>, vector<32x256xbf16>
    %cst = arith.constant dense<0.000000e+00> : vector<64x256xf32>
    %2 = tpu.matmul %0, %1, %cst {dimension_numbers = #tpu.dot_dimension_numbers<[1], [0], [0], [1], [0, 0, 1, 1], [], []>} : vector<64x32xbf16>, vector<32x256xbf16>, vector<64x256xf32> -> vector<64x256xf32>
    %c0_3 = arith.constant 0 : index
    %c0_4 = arith.constant 0 : index
    %3 = vector.load %arg3[%c0_3, %c0_4] : memref<1x256xf32, #tpu.memory_space<vmem>>, vector<1x256xf32>
    %4 = vector.broadcast %3 : vector<1x256xf32> to vector<64x256xf32>
    %5 = arith.addf %2, %4 : vector<64x256xf32>
    %6 = vector.extract_strided_slice %5 {offsets = [0, 0], sizes = [64, 128], strides = [1, 1]} : vector<64x256xf32> to vector<64x128xf32>
    %7 = arith.truncf %6 : vector<64x128xf32> to vector<64x128xbf16>
    %c0_5 = arith.constant 0 : index
    %c0_6 = arith.constant 0 : index
    %8 = vector.load %arg4[%c0_5, %c0_6] : memref<64x128xbf16, #tpu.memory_space<vmem>>, vector<64x128xbf16>
    tpu.vector_store %arg4[%c0_5, %c0_6], %7 {strides = array<i32>} : memref<64x128xbf16, #tpu.memory_space<vmem>>, vector<64x128xbf16>,
    %9 = vector.extract_strided_slice %5 {offsets = [0, 128], sizes = [64, 128], strides = [1, 1]} : vector<64x256xf32> to vector<64x128xf32>
    %10 = arith.truncf %9 : vector<64x128xf32> to vector<64x128xbf16>
    %c0_7 = arith.constant 0 : index
    %c0_8 = arith.constant 0 : index
    %11 = vector.load %arg5[%c0_7, %c0_8] : memref<64x128xbf16, #tpu.memory_space<vmem>>, vector<64x128xbf16>
    tpu.vector_store %arg5[%c0_7, %c0_8], %10 {strides = array<i32>} : memref<64x128xbf16, #tpu.memory_space<vmem>>, vector<64x128xbf16>,
    return
  }
  func.func @transform_0(%arg0: i32) -> (i32, i32) {
    %c0_i32 = arith.constant 0 : i32
    %c0_i32_0 = arith.constant 0 : i32
    return %arg0, %c0_i32 : i32, i32
  }
  func.func @transform_1(%arg0: i32) -> (i32, i32) {
    %c0_i32 = arith.constant 0 : i32
    %c0_i32_0 = arith.constant 0 : i32
    %c0_i32_1 = arith.constant 0 : i32
    return %c0_i32, %c0_i32_0 : i32, i32
  }
  func.func @transform_2(%arg0: i32) -> (i32, i32) {
    %c0_i32 = arith.constant 0 : i32
    %c0_i32_0 = arith.constant 0 : i32
    %c0_i32_1 = arith.constant 0 : i32
    return %c0_i32, %c0_i32_0 : i32, i32
  }
  func.func @transform_3(%arg0: i32) -> (i32, i32) {
    %c0_i32 = arith.constant 0 : i32
    %c0_i32_0 = arith.constant 0 : i32
    return %arg0, %c0_i32 : i32, i32
  }
  func.func @transform_4(%arg0: i32) -> (i32, i32) {
    %c0_i32 = arith.constant 0 : i32
    %c0_i32_0 = arith.constant 0 : i32
    return %arg0, %c0_i32 : i32, i32
  }
}

module attributes {stable_mosaic.version = 11 : i64} {
  func.func @_input_proj_kernel(%arg0: i32, %arg1: memref<64x64xbf16, #tpu.memory_space<vmem>>, %arg2: memref<64x256xbf16, #tpu.memory_space<vmem>>, %arg3: memref<1x256xf32, #tpu.memory_space<vmem>>, %arg4: memref<64x128xbf16, #tpu.memory_space<vmem>>, %arg5: memref<64x128xbf16, #tpu.memory_space<vmem>>) attributes {dimension_semantics = [#tpu.dimension_semantics<parallel>], iteration_bounds = array<i64: 1>, scalar_prefetch = 0 : i64, scratch_operands = 0 : i64, tpu.core_type = #tpu.core_type<tc>, window_params = [{transform_indices = @transform_0, window_bounds = array<i64: 64, 64>}, {pipeline_mode = #tpu.pipeline_mode<synchronous>, transform_indices = @transform_1, window_bounds = array<i64: 64, 256>}, {pipeline_mode = #tpu.pipeline_mode<synchronous>, transform_indices = @transform_2, window_bounds = array<i64: 1, 256>}, {transform_indices = @transform_3, window_bounds = array<i64: 64, 128>}, {transform_indices = @transform_4, window_bounds = array<i64: 64, 128>}]} {
    %c0 = arith.constant 0 : index
    %c0_0 = arith.constant 0 : index
    %0 = vector.load %arg1[%c0, %c0_0] : memref<64x64xbf16, #tpu.memory_space<vmem>>, vector<64x64xbf16>
    %c0_1 = arith.constant 0 : index
    %c0_2 = arith.constant 0 : index
    %1 = vector.load %arg2[%c0_1, %c0_2] : memref<64x256xbf16, #tpu.memory_space<vmem>>, vector<64x256xbf16>
    %cst = arith.constant dense<0.000000e+00> : vector<64x256xf32>
    %2 = tpu.matmul %0, %1, %cst {dimension_numbers = #tpu.dot_dimension_numbers<[1], [0], [0], [1], [0, 0, 1, 1], [], []>} : vector<64x64xbf16>, vector<64x256xbf16>, vector<64x256xf32> -> vector<64x256xf32>
    %c0_3 = arith.constant 0 : index
    %c0_4 = arith.constant 0 : index
    %3 = vector.load %arg3[%c0_3, %c0_4] : memref<1x256xf32, #tpu.memory_space<vmem>>, vector<1x256xf32>
    %4 = vector.broadcast %3 : vector<1x256xf32> to vector<64x256xf32>
    %5 = arith.addf %2, %4 : vector<64x256xf32>
    %6 = vector.extract_strided_slice %5 {offsets = [0, 0], sizes = [64, 128], strides = [1, 1]} : vector<64x256xf32> to vector<64x128xf32>
    %7 = arith.truncf %6 : vector<64x128xf32> to vector<64x128xbf16>
    %c0_5 = arith.constant 0 : index
    %c0_6 = arith.constant 0 : index
    %8 = vector.load %arg4[%c0_5, %c0_6] : memref<64x128xbf16, #tpu.memory_space<vmem>>, vector<64x128xbf16>
    tpu.vector_store %arg4[%c0_5, %c0_6], %7 {strides = array<i32>} : memref<64x128xbf16, #tpu.memory_space<vmem>>, vector<64x128xbf16>,
    %9 = vector.extract_strided_slice %5 {offsets = [0, 128], sizes = [64, 128], strides = [1, 1]} : vector<64x256xf32> to vector<64x128xf32>
    %10 = arith.truncf %9 : vector<64x128xf32> to vector<64x128xbf16>
    %c0_7 = arith.constant 0 : index
    %c0_8 = arith.constant 0 : index
    %11 = vector.load %arg5[%c0_7, %c0_8] : memref<64x128xbf16, #tpu.memory_space<vmem>>, vector<64x128xbf16>
    tpu.vector_store %arg5[%c0_7, %c0_8], %10 {strides = array<i32>} : memref<64x128xbf16, #tpu.memory_space<vmem>>, vector<64x128xbf16>,
    return
  }
  func.func @transform_0(%arg0: i32) -> (i32, i32) {
    %c0_i32 = arith.constant 0 : i32
    %c0_i32_0 = arith.constant 0 : i32
    return %arg0, %c0_i32 : i32, i32
  }
  func.func @transform_1(%arg0: i32) -> (i32, i32) {
    %c0_i32 = arith.constant 0 : i32
    %c0_i32_0 = arith.constant 0 : i32
    %c0_i32_1 = arith.constant 0 : i32
    return %c0_i32, %c0_i32_0 : i32, i32
  }
  func.func @transform_2(%arg0: i32) -> (i32, i32) {
    %c0_i32 = arith.constant 0 : i32
    %c0_i32_0 = arith.constant 0 : i32
    %c0_i32_1 = arith.constant 0 : i32
    return %c0_i32, %c0_i32_0 : i32, i32
  }
  func.func @transform_3(%arg0: i32) -> (i32, i32) {
    %c0_i32 = arith.constant 0 : i32
    %c0_i32_0 = arith.constant 0 : i32
    return %arg0, %c0_i32 : i32, i32
  }
  func.func @transform_4(%arg0: i32) -> (i32, i32) {
    %c0_i32 = arith.constant 0 : i32
    %c0_i32_0 = arith.constant 0 : i32
    return %arg0, %c0_i32 : i32, i32
  }
}

module attributes {stable_mosaic.version = 11 : i64} {
  func.func @_bidir_lstm_kernel(%arg0: memref<8x8x128xbf16, #tpu.memory_space<vmem>>, %arg1: memref<8x8x128xbf16, #tpu.memory_space<vmem>>, %arg2: memref<32x128xbf16, #tpu.memory_space<vmem>>, %arg3: memref<32x128xbf16, #tpu.memory_space<vmem>>, %arg4: memref<8x8x64xf32, #tpu.memory_space<vmem>>, %arg5: memref<2x8x32xf32, #tpu.memory_space<vmem>>, %arg6: memref<2x8x32xf32, #tpu.memory_space<vmem>>) attributes {dimension_semantics = [], scalar_prefetch = 0 : i64, scratch_operands = 0 : i64, tpu.core_type = #tpu.core_type<tc>} {
    %c0 = arith.constant 0 : index
    %c0_0 = arith.constant 0 : index
    %0 = vector.load %arg2[%c0, %c0_0] : memref<32x128xbf16, #tpu.memory_space<vmem>>, vector<32x128xbf16>
    %c0_1 = arith.constant 0 : index
    %c0_2 = arith.constant 0 : index
    %1 = vector.load %arg3[%c0_1, %c0_2] : memref<32x128xbf16, #tpu.memory_space<vmem>>, vector<32x128xbf16>
    %cst = arith.constant 0.000000e+00 : f32
    %2 = vector.broadcast %cst : f32 to vector<8x32xf32>
    %c0_i32 = arith.constant 0 : i32
    %c7_i32 = arith.constant 7 : i32
    %3 = arith.subi %c7_i32, %c0_i32 : i32
    %4 = arith.index_cast %c0_i32 : i32 to index
    %c0_3 = arith.constant 0 : index
    %c0_4 = arith.constant 0 : index
    %5 = vector.load %arg0[%4, %c0_3, %c0_4] : memref<8x8x128xbf16, #tpu.memory_space<vmem>>, vector<1x8x128xbf16>
    %6 = vector.shape_cast %5 : vector<1x8x128xbf16> to vector<8x128xbf16>
    %7 = arith.extf %6 : vector<8x128xbf16> to vector<8x128xf32>
    %8 = arith.truncf %2 : vector<8x32xf32> to vector<8x32xbf16>
    %cst_5 = arith.constant dense<0.000000e+00> : vector<8x128xf32>
    %9 = tpu.matmul %8, %0, %cst_5 {dimension_numbers = #tpu.dot_dimension_numbers<[1], [0], [0], [1], [0, 0, 1, 1], [], []>} : vector<8x32xbf16>, vector<32x128xbf16>, vector<8x128xf32> -> vector<8x128xf32>
    %10 = arith.addf %7, %9 : vector<8x128xf32>
    %11 = arith.index_cast %3 : i32 to index
    %c0_6 = arith.constant 0 : index
    %c0_7 = arith.constant 0 : index
    %12 = vector.load %arg1[%11, %c0_6, %c0_7] : memref<8x8x128xbf16, #tpu.memory_space<vmem>>, vector<1x8x128xbf16>
    %13 = vector.shape_cast %12 : vector<1x8x128xbf16> to vector<8x128xbf16>
    %14 = arith.extf %13 : vector<8x128xbf16> to vector<8x128xf32>
    %15 = arith.truncf %2 : vector<8x32xf32> to vector<8x32xbf16>
    %cst_8 = arith.constant dense<0.000000e+00> : vector<8x128xf32>
    %16 = tpu.matmul %15, %1, %cst_8 {dimension_numbers = #tpu.dot_dimension_numbers<[1], [0], [0], [1], [0, 0, 1, 1], [], []>} : vector<8x32xbf16>, vector<32x128xbf16>, vector<8x128xf32> -> vector<8x128xf32>
    %17 = arith.addf %14, %16 : vector<8x128xf32>
    %18 = vector.extract_strided_slice %10 {offsets = [0, 0], sizes = [8, 32], strides = [1, 1]} : vector<8x128xf32> to vector<8x32xf32>
    %19 = arith.negf %18 : vector<8x32xf32>
    %20 = math.exp %19 : vector<8x32xf32>
    %cst_9 = arith.constant 1.000000e+00 : f32
    %21 = vector.broadcast %cst_9 : f32 to vector<8x32xf32>
    %22 = arith.addf %21, %20 : vector<8x32xf32>
    %23 = arith.divf %21, %22 : vector<8x32xf32>
    %24 = vector.extract_strided_slice %10 {offsets = [0, 32], sizes = [8, 32], strides = [1, 1]} : vector<8x128xf32> to vector<8x32xf32>
    %25 = arith.negf %24 : vector<8x32xf32>
    %26 = math.exp %25 : vector<8x32xf32>
    %cst_10 = arith.constant 1.000000e+00 : f32
    %27 = vector.broadcast %cst_10 : f32 to vector<8x32xf32>
    %28 = arith.addf %27, %26 : vector<8x32xf32>
    %29 = arith.divf %27, %28 : vector<8x32xf32>
    %30 = vector.extract_strided_slice %10 {offsets = [0, 64], sizes = [8, 32], strides = [1, 1]} : vector<8x128xf32> to vector<8x32xf32>
    %31 = math.tanh %30 : vector<8x32xf32>
    %32 = vector.extract_strided_slice %10 {offsets = [0, 96], sizes = [8, 32], strides = [1, 1]} : vector<8x128xf32> to vector<8x32xf32>
    %33 = arith.negf %32 : vector<8x32xf32>
    %34 = math.exp %33 : vector<8x32xf32>
    %cst_11 = arith.constant 1.000000e+00 : f32
    %35 = vector.broadcast %cst_11 : f32 to vector<8x32xf32>
    %36 = arith.addf %35, %34 : vector<8x32xf32>
    %37 = arith.divf %35, %36 : vector<8x32xf32>
    %38 = arith.mulf %29, %2 : vector<8x32xf32>
    %39 = arith.mulf %23, %31 : vector<8x32xf32>
    %40 = arith.addf %38, %39 : vector<8x32xf32>
    %41 = math.tanh %40 : vector<8x32xf32>
    %42 = arith.mulf %37, %41 : vector<8x32xf32>
    %43 = vector.extract_strided_slice %17 {offsets = [0, 0], sizes = [8, 32], strides = [1, 1]} : vector<8x128xf32> to vector<8x32xf32>
    %44 = arith.negf %43 : vector<8x32xf32>
    %45 = math.exp %44 : vector<8x32xf32>
    %cst_12 = arith.constant 1.000000e+00 : f32
    %46 = vector.broadcast %cst_12 : f32 to vector<8x32xf32>
    %47 = arith.addf %46, %45 : vector<8x32xf32>
    %48 = arith.divf %46, %47 : vector<8x32xf32>
    %49 = vector.extract_strided_slice %17 {offsets = [0, 32], sizes = [8, 32], strides = [1, 1]} : vector<8x128xf32> to vector<8x32xf32>
    %50 = arith.negf %49 : vector<8x32xf32>
    %51 = math.exp %50 : vector<8x32xf32>
    %cst_13 = arith.constant 1.000000e+00 : f32
    %52 = vector.broadcast %cst_13 : f32 to vector<8x32xf32>
    %53 = arith.addf %52, %51 : vector<8x32xf32>
    %54 = arith.divf %52, %53 : vector<8x32xf32>
    %55 = vector.extract_strided_slice %17 {offsets = [0, 64], sizes = [8, 32], strides = [1, 1]} : vector<8x128xf32> to vector<8x32xf32>
    %56 = math.tanh %55 : vector<8x32xf32>
    %57 = vector.extract_strided_slice %17 {offsets = [0, 96], sizes = [8, 32], strides = [1, 1]} : vector<8x128xf32> to vector<8x32xf32>
    %58 = arith.negf %57 : vector<8x32xf32>
    %59 = math.exp %58 : vector<8x32xf32>
    %cst_14 = arith.constant 1.000000e+00 : f32
    %60 = vector.broadcast %cst_14 : f32 to vector<8x32xf32>
    %61 = arith.addf %60, %59 : vector<8x32xf32>
    %62 = arith.divf %60, %61 : vector<8x32xf32>
    %63 = arith.mulf %54, %2 : vector<8x32xf32>
    %64 = arith.mulf %48, %56 : vector<8x32xf32>
    %65 = arith.addf %63, %64 : vector<8x32xf32>
    %66 = math.tanh %65 : vector<8x32xf32>
    %67 = arith.mulf %62, %66 : vector<8x32xf32>
    %68 = arith.index_cast %c0_i32 : i32 to index
    %c0_15 = arith.constant 0 : index
    %c0_16 = arith.constant 0 : index
    %69 = vector.load %arg4[%68, %c0_15, %c0_16] : memref<8x8x64xf32, #tpu.memory_space<vmem>>, vector<1x8x32xf32>
    %70 = vector.shape_cast %69 : vector<1x8x32xf32> to vector<8x32xf32>
    %71 = vector.shape_cast %42 : vector<8x32xf32> to vector<1x8x32xf32>
    tpu.vector_store %arg4[%68, %c0_15, %c0_16], %71 {strides = array<i32>} : memref<8x8x64xf32, #tpu.memory_space<vmem>>, vector<1x8x32xf32>,
    %72 = arith.index_cast %3 : i32 to index
    %c0_17 = arith.constant 0 : index
    %c32 = arith.constant 32 : index
    %73 = vector.load %arg4[%72, %c0_17, %c32] : memref<8x8x64xf32, #tpu.memory_space<vmem>>, vector<1x8x32xf32>
    %74 = vector.shape_cast %73 : vector<1x8x32xf32> to vector<8x32xf32>
    %75 = vector.shape_cast %67 : vector<8x32xf32> to vector<1x8x32xf32>
    tpu.vector_store %arg4[%72, %c0_17, %c32], %75 {strides = array<i32>} : memref<8x8x64xf32, #tpu.memory_space<vmem>>, vector<1x8x32xf32>,
    %c1_i32 = arith.constant 1 : i32
    %c7_i32_18 = arith.constant 7 : i32
    %76 = arith.subi %c7_i32_18, %c1_i32 : i32
    %77 = arith.index_cast %c1_i32 : i32 to index
    %c0_19 = arith.constant 0 : index
    %c0_20 = arith.constant 0 : index
    %78 = vector.load %arg0[%77, %c0_19, %c0_20] : memref<8x8x128xbf16, #tpu.memory_space<vmem>>, vector<1x8x128xbf16>
    %79 = vector.shape_cast %78 : vector<1x8x128xbf16> to vector<8x128xbf16>
    %80 = arith.extf %79 : vector<8x128xbf16> to vector<8x128xf32>
    %81 = arith.truncf %42 : vector<8x32xf32> to vector<8x32xbf16>
    %cst_21 = arith.constant dense<0.000000e+00> : vector<8x128xf32>
    %82 = tpu.matmul %81, %0, %cst_21 {dimension_numbers = #tpu.dot_dimension_numbers<[1], [0], [0], [1], [0, 0, 1, 1], [], []>} : vector<8x32xbf16>, vector<32x128xbf16>, vector<8x128xf32> -> vector<8x128xf32>
    %83 = arith.addf %80, %82 : vector<8x128xf32>
    %84 = arith.index_cast %76 : i32 to index
    %c0_22 = arith.constant 0 : index
    %c0_23 = arith.constant 0 : index
    %85 = vector.load %arg1[%84, %c0_22, %c0_23] : memref<8x8x128xbf16, #tpu.memory_space<vmem>>, vector<1x8x128xbf16>
    %86 = vector.shape_cast %85 : vector<1x8x128xbf16> to vector<8x128xbf16>
    %87 = arith.extf %86 : vector<8x128xbf16> to vector<8x128xf32>
    %88 = arith.truncf %67 : vector<8x32xf32> to vector<8x32xbf16>
    %cst_24 = arith.constant dense<0.000000e+00> : vector<8x128xf32>
    %89 = tpu.matmul %88, %1, %cst_24 {dimension_numbers = #tpu.dot_dimension_numbers<[1], [0], [0], [1], [0, 0, 1, 1], [], []>} : vector<8x32xbf16>, vector<32x128xbf16>, vector<8x128xf32> -> vector<8x128xf32>
    %90 = arith.addf %87, %89 : vector<8x128xf32>
    %91 = vector.extract_strided_slice %83 {offsets = [0, 0], sizes = [8, 32], strides = [1, 1]} : vector<8x128xf32> to vector<8x32xf32>
    %92 = arith.negf %91 : vector<8x32xf32>
    %93 = math.exp %92 : vector<8x32xf32>
    %cst_25 = arith.constant 1.000000e+00 : f32
    %94 = vector.broadcast %cst_25 : f32 to vector<8x32xf32>
    %95 = arith.addf %94, %93 : vector<8x32xf32>
    %96 = arith.divf %94, %95 : vector<8x32xf32>
    %97 = vector.extract_strided_slice %83 {offsets = [0, 32], sizes = [8, 32], strides = [1, 1]} : vector<8x128xf32> to vector<8x32xf32>
    %98 = arith.negf %97 : vector<8x32xf32>
    %99 = math.exp %98 : vector<8x32xf32>
    %cst_26 = arith.constant 1.000000e+00 : f32
    %100 = vector.broadcast %cst_26 : f32 to vector<8x32xf32>
    %101 = arith.addf %100, %99 : vector<8x32xf32>
    %102 = arith.divf %100, %101 : vector<8x32xf32>
    %103 = vector.extract_strided_slice %83 {offsets = [0, 64], sizes = [8, 32], strides = [1, 1]} : vector<8x128xf32> to vector<8x32xf32>
    %104 = math.tanh %103 : vector<8x32xf32>
    %105 = vector.extract_strided_slice %83 {offsets = [0, 96], sizes = [8, 32], strides = [1, 1]} : vector<8x128xf32> to vector<8x32xf32>
    %106 = arith.negf %105 : vector<8x32xf32>
    %107 = math.exp %106 : vector<8x32xf32>
    %cst_27 = arith.constant 1.000000e+00 : f32
    %108 = vector.broadcast %cst_27 : f32 to vector<8x32xf32>
    %109 = arith.addf %108, %107 : vector<8x32xf32>
    %110 = arith.divf %108, %109 : vector<8x32xf32>
    %111 = arith.mulf %102, %40 : vector<8x32xf32>
    %112 = arith.mulf %96, %104 : vector<8x32xf32>
    %113 = arith.addf %111, %112 : vector<8x32xf32>
    %114 = math.tanh %113 : vector<8x32xf32>
    %115 = arith.mulf %110, %114 : vector<8x32xf32>
    %116 = vector.extract_strided_slice %90 {offsets = [0, 0], sizes = [8, 32], strides = [1, 1]} : vector<8x128xf32> to vector<8x32xf32>
    %117 = arith.negf %116 : vector<8x32xf32>
    %118 = math.exp %117 : vector<8x32xf32>
    %cst_28 = arith.constant 1.000000e+00 : f32
    %119 = vector.broadcast %cst_28 : f32 to vector<8x32xf32>
    %120 = arith.addf %119, %118 : vector<8x32xf32>
    %121 = arith.divf %119, %120 : vector<8x32xf32>
    %122 = vector.extract_strided_slice %90 {offsets = [0, 32], sizes = [8, 32], strides = [1, 1]} : vector<8x128xf32> to vector<8x32xf32>
    %123 = arith.negf %122 : vector<8x32xf32>
    %124 = math.exp %123 : vector<8x32xf32>
    %cst_29 = arith.constant 1.000000e+00 : f32
    %125 = vector.broadcast %cst_29 : f32 to vector<8x32xf32>
    %126 = arith.addf %125, %124 : vector<8x32xf32>
    %127 = arith.divf %125, %126 : vector<8x32xf32>
    %128 = vector.extract_strided_slice %90 {offsets = [0, 64], sizes = [8, 32], strides = [1, 1]} : vector<8x128xf32> to vector<8x32xf32>
    %129 = math.tanh %128 : vector<8x32xf32>
    %130 = vector.extract_strided_slice %90 {offsets = [0, 96], sizes = [8, 32], strides = [1, 1]} : vector<8x128xf32> to vector<8x32xf32>
    %131 = arith.negf %130 : vector<8x32xf32>
    %132 = math.exp %131 : vector<8x32xf32>
    %cst_30 = arith.constant 1.000000e+00 : f32
    %133 = vector.broadcast %cst_30 : f32 to vector<8x32xf32>
    %134 = arith.addf %133, %132 : vector<8x32xf32>
    %135 = arith.divf %133, %134 : vector<8x32xf32>
    %136 = arith.mulf %127, %65 : vector<8x32xf32>
    %137 = arith.mulf %121, %129 : vector<8x32xf32>
    %138 = arith.addf %136, %137 : vector<8x32xf32>
    %139 = math.tanh %138 : vector<8x32xf32>
    %140 = arith.mulf %135, %139 : vector<8x32xf32>
    %141 = arith.index_cast %c1_i32 : i32 to index
    %c0_31 = arith.constant 0 : index
    %c0_32 = arith.constant 0 : index
    %142 = vector.load %arg4[%141, %c0_31, %c0_32] : memref<8x8x64xf32, #tpu.memory_space<vmem>>, vector<1x8x32xf32>
    %143 = vector.shape_cast %142 : vector<1x8x32xf32> to vector<8x32xf32>
    %144 = vector.shape_cast %115 : vector<8x32xf32> to vector<1x8x32xf32>
    tpu.vector_store %arg4[%141, %c0_31, %c0_32], %144 {strides = array<i32>} : memref<8x8x64xf32, #tpu.memory_space<vmem>>, vector<1x8x32xf32>,
    %145 = arith.index_cast %76 : i32 to index
    %c0_33 = arith.constant 0 : index
    %c32_34 = arith.constant 32 : index
    %146 = vector.load %arg4[%145, %c0_33, %c32_34] : memref<8x8x64xf32, #tpu.memory_space<vmem>>, vector<1x8x32xf32>
    %147 = vector.shape_cast %146 : vector<1x8x32xf32> to vector<8x32xf32>
    %148 = vector.shape_cast %140 : vector<8x32xf32> to vector<1x8x32xf32>
    tpu.vector_store %arg4[%145, %c0_33, %c32_34], %148 {strides = array<i32>} : memref<8x8x64xf32, #tpu.memory_space<vmem>>, vector<1x8x32xf32>,
    %c2_i32 = arith.constant 2 : i32
    %c7_i32_35 = arith.constant 7 : i32
    %149 = arith.subi %c7_i32_35, %c2_i32 : i32
    %150 = arith.index_cast %c2_i32 : i32 to index
    %c0_36 = arith.constant 0 : index
    %c0_37 = arith.constant 0 : index
    %151 = vector.load %arg0[%150, %c0_36, %c0_37] : memref<8x8x128xbf16, #tpu.memory_space<vmem>>, vector<1x8x128xbf16>
    %152 = vector.shape_cast %151 : vector<1x8x128xbf16> to vector<8x128xbf16>
    %153 = arith.extf %152 : vector<8x128xbf16> to vector<8x128xf32>
    %154 = arith.truncf %115 : vector<8x32xf32> to vector<8x32xbf16>
    %cst_38 = arith.constant dense<0.000000e+00> : vector<8x128xf32>
    %155 = tpu.matmul %154, %0, %cst_38 {dimension_numbers = #tpu.dot_dimension_numbers<[1], [0], [0], [1], [0, 0, 1, 1], [], []>} : vector<8x32xbf16>, vector<32x128xbf16>, vector<8x128xf32> -> vector<8x128xf32>
    %156 = arith.addf %153, %155 : vector<8x128xf32>
    %157 = arith.index_cast %149 : i32 to index
    %c0_39 = arith.constant 0 : index
    %c0_40 = arith.constant 0 : index
    %158 = vector.load %arg1[%157, %c0_39, %c0_40] : memref<8x8x128xbf16, #tpu.memory_space<vmem>>, vector<1x8x128xbf16>
    %159 = vector.shape_cast %158 : vector<1x8x128xbf16> to vector<8x128xbf16>
    %160 = arith.extf %159 : vector<8x128xbf16> to vector<8x128xf32>
    %161 = arith.truncf %140 : vector<8x32xf32> to vector<8x32xbf16>
    %cst_41 = arith.constant dense<0.000000e+00> : vector<8x128xf32>
    %162 = tpu.matmul %161, %1, %cst_41 {dimension_numbers = #tpu.dot_dimension_numbers<[1], [0], [0], [1], [0, 0, 1, 1], [], []>} : vector<8x32xbf16>, vector<32x128xbf16>, vector<8x128xf32> -> vector<8x128xf32>
    %163 = arith.addf %160, %162 : vector<8x128xf32>
    %164 = vector.extract_strided_slice %156 {offsets = [0, 0], sizes = [8, 32], strides = [1, 1]} : vector<8x128xf32> to vector<8x32xf32>
    %165 = arith.negf %164 : vector<8x32xf32>
    %166 = math.exp %165 : vector<8x32xf32>
    %cst_42 = arith.constant 1.000000e+00 : f32
    %167 = vector.broadcast %cst_42 : f32 to vector<8x32xf32>
    %168 = arith.addf %167, %166 : vector<8x32xf32>
    %169 = arith.divf %167, %168 : vector<8x32xf32>
    %170 = vector.extract_strided_slice %156 {offsets = [0, 32], sizes = [8, 32], strides = [1, 1]} : vector<8x128xf32> to vector<8x32xf32>
    %171 = arith.negf %170 : vector<8x32xf32>
    %172 = math.exp %171 : vector<8x32xf32>
    %cst_43 = arith.constant 1.000000e+00 : f32
    %173 = vector.broadcast %cst_43 : f32 to vector<8x32xf32>
    %174 = arith.addf %173, %172 : vector<8x32xf32>
    %175 = arith.divf %173, %174 : vector<8x32xf32>
    %176 = vector.extract_strided_slice %156 {offsets = [0, 64], sizes = [8, 32], strides = [1, 1]} : vector<8x128xf32> to vector<8x32xf32>
    %177 = math.tanh %176 : vector<8x32xf32>
    %178 = vector.extract_strided_slice %156 {offsets = [0, 96], sizes = [8, 32], strides = [1, 1]} : vector<8x128xf32> to vector<8x32xf32>
    %179 = arith.negf %178 : vector<8x32xf32>
    %180 = math.exp %179 : vector<8x32xf32>
    %cst_44 = arith.constant 1.000000e+00 : f32
    %181 = vector.broadcast %cst_44 : f32 to vector<8x32xf32>
    %182 = arith.addf %181, %180 : vector<8x32xf32>
    %183 = arith.divf %181, %182 : vector<8x32xf32>
    %184 = arith.mulf %175, %113 : vector<8x32xf32>
    %185 = arith.mulf %169, %177 : vector<8x32xf32>
    %186 = arith.addf %184, %185 : vector<8x32xf32>
    %187 = math.tanh %186 : vector<8x32xf32>
    %188 = arith.mulf %183, %187 : vector<8x32xf32>
    %189 = vector.extract_strided_slice %163 {offsets = [0, 0], sizes = [8, 32], strides = [1, 1]} : vector<8x128xf32> to vector<8x32xf32>
    %190 = arith.negf %189 : vector<8x32xf32>
    %191 = math.exp %190 : vector<8x32xf32>
    %cst_45 = arith.constant 1.000000e+00 : f32
    %192 = vector.broadcast %cst_45 : f32 to vector<8x32xf32>
    %193 = arith.addf %192, %191 : vector<8x32xf32>
    %194 = arith.divf %192, %193 : vector<8x32xf32>
    %195 = vector.extract_strided_slice %163 {offsets = [0, 32], sizes = [8, 32], strides = [1, 1]} : vector<8x128xf32> to vector<8x32xf32>
    %196 = arith.negf %195 : vector<8x32xf32>
    %197 = math.exp %196 : vector<8x32xf32>
    %cst_46 = arith.constant 1.000000e+00 : f32
    %198 = vector.broadcast %cst_46 : f32 to vector<8x32xf32>
    %199 = arith.addf %198, %197 : vector<8x32xf32>
    %200 = arith.divf %198, %199 : vector<8x32xf32>
    %201 = vector.extract_strided_slice %163 {offsets = [0, 64], sizes = [8, 32], strides = [1, 1]} : vector<8x128xf32> to vector<8x32xf32>
    %202 = math.tanh %201 : vector<8x32xf32>
    %203 = vector.extract_strided_slice %163 {offsets = [0, 96], sizes = [8, 32], strides = [1, 1]} : vector<8x128xf32> to vector<8x32xf32>
    %204 = arith.negf %203 : vector<8x32xf32>
    %205 = math.exp %204 : vector<8x32xf32>
    %cst_47 = arith.constant 1.000000e+00 : f32
    %206 = vector.broadcast %cst_47 : f32 to vector<8x32xf32>
    %207 = arith.addf %206, %205 : vector<8x32xf32>
    %208 = arith.divf %206, %207 : vector<8x32xf32>
    %209 = arith.mulf %200, %138 : vector<8x32xf32>
    %210 = arith.mulf %194, %202 : vector<8x32xf32>
    %211 = arith.addf %209, %210 : vector<8x32xf32>
    %212 = math.tanh %211 : vector<8x32xf32>
    %213 = arith.mulf %208, %212 : vector<8x32xf32>
    %214 = arith.index_cast %c2_i32 : i32 to index
    %c0_48 = arith.constant 0 : index
    %c0_49 = arith.constant 0 : index
    %215 = vector.load %arg4[%214, %c0_48, %c0_49] : memref<8x8x64xf32, #tpu.memory_space<vmem>>, vector<1x8x32xf32>
    %216 = vector.shape_cast %215 : vector<1x8x32xf32> to vector<8x32xf32>
    %217 = vector.shape_cast %188 : vector<8x32xf32> to vector<1x8x32xf32>
    tpu.vector_store %arg4[%214, %c0_48, %c0_49], %217 {strides = array<i32>} : memref<8x8x64xf32, #tpu.memory_space<vmem>>, vector<1x8x32xf32>,
    %218 = arith.index_cast %149 : i32 to index
    %c0_50 = arith.constant 0 : index
    %c32_51 = arith.constant 32 : index
    %219 = vector.load %arg4[%218, %c0_50, %c32_51] : memref<8x8x64xf32, #tpu.memory_space<vmem>>, vector<1x8x32xf32>
    %220 = vector.shape_cast %219 : vector<1x8x32xf32> to vector<8x32xf32>
    %221 = vector.shape_cast %213 : vector<8x32xf32> to vector<1x8x32xf32>
    tpu.vector_store %arg4[%218, %c0_50, %c32_51], %221 {strides = array<i32>} : memref<8x8x64xf32, #tpu.memory_space<vmem>>, vector<1x8x32xf32>,
    %c3_i32 = arith.constant 3 : i32
    %c7_i32_52 = arith.constant 7 : i32
    %222 = arith.subi %c7_i32_52, %c3_i32 : i32
    %223 = arith.index_cast %c3_i32 : i32 to index
    %c0_53 = arith.constant 0 : index
    %c0_54 = arith.constant 0 : index
    %224 = vector.load %arg0[%223, %c0_53, %c0_54] : memref<8x8x128xbf16, #tpu.memory_space<vmem>>, vector<1x8x128xbf16>
    %225 = vector.shape_cast %224 : vector<1x8x128xbf16> to vector<8x128xbf16>
    %226 = arith.extf %225 : vector<8x128xbf16> to vector<8x128xf32>
    %227 = arith.truncf %188 : vector<8x32xf32> to vector<8x32xbf16>
    %cst_55 = arith.constant dense<0.000000e+00> : vector<8x128xf32>
    %228 = tpu.matmul %227, %0, %cst_55 {dimension_numbers = #tpu.dot_dimension_numbers<[1], [0], [0], [1], [0, 0, 1, 1], [], []>} : vector<8x32xbf16>, vector<32x128xbf16>, vector<8x128xf32> -> vector<8x128xf32>
    %229 = arith.addf %226, %228 : vector<8x128xf32>
    %230 = arith.index_cast %222 : i32 to index
    %c0_56 = arith.constant 0 : index
    %c0_57 = arith.constant 0 : index
    %231 = vector.load %arg1[%230, %c0_56, %c0_57] : memref<8x8x128xbf16, #tpu.memory_space<vmem>>, vector<1x8x128xbf16>
    %232 = vector.shape_cast %231 : vector<1x8x128xbf16> to vector<8x128xbf16>
    %233 = arith.extf %232 : vector<8x128xbf16> to vector<8x128xf32>
    %234 = arith.truncf %213 : vector<8x32xf32> to vector<8x32xbf16>
    %cst_58 = arith.constant dense<0.000000e+00> : vector<8x128xf32>
    %235 = tpu.matmul %234, %1, %cst_58 {dimension_numbers = #tpu.dot_dimension_numbers<[1], [0], [0], [1], [0, 0, 1, 1], [], []>} : vector<8x32xbf16>, vector<32x128xbf16>, vector<8x128xf32> -> vector<8x128xf32>
    %236 = arith.addf %233, %235 : vector<8x128xf32>
    %237 = vector.extract_strided_slice %229 {offsets = [0, 0], sizes = [8, 32], strides = [1, 1]} : vector<8x128xf32> to vector<8x32xf32>
    %238 = arith.negf %237 : vector<8x32xf32>
    %239 = math.exp %238 : vector<8x32xf32>
    %cst_59 = arith.constant 1.000000e+00 : f32
    %240 = vector.broadcast %cst_59 : f32 to vector<8x32xf32>
    %241 = arith.addf %240, %239 : vector<8x32xf32>
    %242 = arith.divf %240, %241 : vector<8x32xf32>
    %243 = vector.extract_strided_slice %229 {offsets = [0, 32], sizes = [8, 32], strides = [1, 1]} : vector<8x128xf32> to vector<8x32xf32>
    %244 = arith.negf %243 : vector<8x32xf32>
    %245 = math.exp %244 : vector<8x32xf32>
    %cst_60 = arith.constant 1.000000e+00 : f32
    %246 = vector.broadcast %cst_60 : f32 to vector<8x32xf32>
    %247 = arith.addf %246, %245 : vector<8x32xf32>
    %248 = arith.divf %246, %247 : vector<8x32xf32>
    %249 = vector.extract_strided_slice %229 {offsets = [0, 64], sizes = [8, 32], strides = [1, 1]} : vector<8x128xf32> to vector<8x32xf32>
    %250 = math.tanh %249 : vector<8x32xf32>
    %251 = vector.extract_strided_slice %229 {offsets = [0, 96], sizes = [8, 32], strides = [1, 1]} : vector<8x128xf32> to vector<8x32xf32>
    %252 = arith.negf %251 : vector<8x32xf32>
    %253 = math.exp %252 : vector<8x32xf32>
    %cst_61 = arith.constant 1.000000e+00 : f32
    %254 = vector.broadcast %cst_61 : f32 to vector<8x32xf32>
    %255 = arith.addf %254, %253 : vector<8x32xf32>
    %256 = arith.divf %254, %255 : vector<8x32xf32>
    %257 = arith.mulf %248, %186 : vector<8x32xf32>
    %258 = arith.mulf %242, %250 : vector<8x32xf32>
    %259 = arith.addf %257, %258 : vector<8x32xf32>
    %260 = math.tanh %259 : vector<8x32xf32>
    %261 = arith.mulf %256, %260 : vector<8x32xf32>
    %262 = vector.extract_strided_slice %236 {offsets = [0, 0], sizes = [8, 32], strides = [1, 1]} : vector<8x128xf32> to vector<8x32xf32>
    %263 = arith.negf %262 : vector<8x32xf32>
    %264 = math.exp %263 : vector<8x32xf32>
    %cst_62 = arith.constant 1.000000e+00 : f32
    %265 = vector.broadcast %cst_62 : f32 to vector<8x32xf32>
    %266 = arith.addf %265, %264 : vector<8x32xf32>
    %267 = arith.divf %265, %266 : vector<8x32xf32>
    %268 = vector.extract_strided_slice %236 {offsets = [0, 32], sizes = [8, 32], strides = [1, 1]} : vector<8x128xf32> to vector<8x32xf32>
    %269 = arith.negf %268 : vector<8x32xf32>
    %270 = math.exp %269 : vector<8x32xf32>
    %cst_63 = arith.constant 1.000000e+00 : f32
    %271 = vector.broadcast %cst_63 : f32 to vector<8x32xf32>
    %272 = arith.addf %271, %270 : vector<8x32xf32>
    %273 = arith.divf %271, %272 : vector<8x32xf32>
    %274 = vector.extract_strided_slice %236 {offsets = [0, 64], sizes = [8, 32], strides = [1, 1]} : vector<8x128xf32> to vector<8x32xf32>
    %275 = math.tanh %274 : vector<8x32xf32>
    %276 = vector.extract_strided_slice %236 {offsets = [0, 96], sizes = [8, 32], strides = [1, 1]} : vector<8x128xf32> to vector<8x32xf32>
    %277 = arith.negf %276 : vector<8x32xf32>
    %278 = math.exp %277 : vector<8x32xf32>
    %cst_64 = arith.constant 1.000000e+00 : f32
    %279 = vector.broadcast %cst_64 : f32 to vector<8x32xf32>
    %280 = arith.addf %279, %278 : vector<8x32xf32>
    %281 = arith.divf %279, %280 : vector<8x32xf32>
    %282 = arith.mulf %273, %211 : vector<8x32xf32>
    %283 = arith.mulf %267, %275 : vector<8x32xf32>
    %284 = arith.addf %282, %283 : vector<8x32xf32>
    %285 = math.tanh %284 : vector<8x32xf32>
    %286 = arith.mulf %281, %285 : vector<8x32xf32>
    %287 = arith.index_cast %c3_i32 : i32 to index
    %c0_65 = arith.constant 0 : index
    %c0_66 = arith.constant 0 : index
    %288 = vector.load %arg4[%287, %c0_65, %c0_66] : memref<8x8x64xf32, #tpu.memory_space<vmem>>, vector<1x8x32xf32>
    %289 = vector.shape_cast %288 : vector<1x8x32xf32> to vector<8x32xf32>
    %290 = vector.shape_cast %261 : vector<8x32xf32> to vector<1x8x32xf32>
    tpu.vector_store %arg4[%287, %c0_65, %c0_66], %290 {strides = array<i32>} : memref<8x8x64xf32, #tpu.memory_space<vmem>>, vector<1x8x32xf32>,
    %291 = arith.index_cast %222 : i32 to index
    %c0_67 = arith.constant 0 : index
    %c32_68 = arith.constant 32 : index
    %292 = vector.load %arg4[%291, %c0_67, %c32_68] : memref<8x8x64xf32, #tpu.memory_space<vmem>>, vector<1x8x32xf32>
    %293 = vector.shape_cast %292 : vector<1x8x32xf32> to vector<8x32xf32>
    %294 = vector.shape_cast %286 : vector<8x32xf32> to vector<1x8x32xf32>
    tpu.vector_store %arg4[%291, %c0_67, %c32_68], %294 {strides = array<i32>} : memref<8x8x64xf32, #tpu.memory_space<vmem>>, vector<1x8x32xf32>,
    %c4_i32 = arith.constant 4 : i32
    %c7_i32_69 = arith.constant 7 : i32
    %295 = arith.subi %c7_i32_69, %c4_i32 : i32
    %296 = arith.index_cast %c4_i32 : i32 to index
    %c0_70 = arith.constant 0 : index
    %c0_71 = arith.constant 0 : index
    %297 = vector.load %arg0[%296, %c0_70, %c0_71] : memref<8x8x128xbf16, #tpu.memory_space<vmem>>, vector<1x8x128xbf16>
    %298 = vector.shape_cast %297 : vector<1x8x128xbf16> to vector<8x128xbf16>
    %299 = arith.extf %298 : vector<8x128xbf16> to vector<8x128xf32>
    %300 = arith.truncf %261 : vector<8x32xf32> to vector<8x32xbf16>
    %cst_72 = arith.constant dense<0.000000e+00> : vector<8x128xf32>
    %301 = tpu.matmul %300, %0, %cst_72 {dimension_numbers = #tpu.dot_dimension_numbers<[1], [0], [0], [1], [0, 0, 1, 1], [], []>} : vector<8x32xbf16>, vector<32x128xbf16>, vector<8x128xf32> -> vector<8x128xf32>
    %302 = arith.addf %299, %301 : vector<8x128xf32>
    %303 = arith.index_cast %295 : i32 to index
    %c0_73 = arith.constant 0 : index
    %c0_74 = arith.constant 0 : index
    %304 = vector.load %arg1[%303, %c0_73, %c0_74] : memref<8x8x128xbf16, #tpu.memory_space<vmem>>, vector<1x8x128xbf16>
    %305 = vector.shape_cast %304 : vector<1x8x128xbf16> to vector<8x128xbf16>
    %306 = arith.extf %305 : vector<8x128xbf16> to vector<8x128xf32>
    %307 = arith.truncf %286 : vector<8x32xf32> to vector<8x32xbf16>
    %cst_75 = arith.constant dense<0.000000e+00> : vector<8x128xf32>
    %308 = tpu.matmul %307, %1, %cst_75 {dimension_numbers = #tpu.dot_dimension_numbers<[1], [0], [0], [1], [0, 0, 1, 1], [], []>} : vector<8x32xbf16>, vector<32x128xbf16>, vector<8x128xf32> -> vector<8x128xf32>
    %309 = arith.addf %306, %308 : vector<8x128xf32>
    %310 = vector.extract_strided_slice %302 {offsets = [0, 0], sizes = [8, 32], strides = [1, 1]} : vector<8x128xf32> to vector<8x32xf32>
    %311 = arith.negf %310 : vector<8x32xf32>
    %312 = math.exp %311 : vector<8x32xf32>
    %cst_76 = arith.constant 1.000000e+00 : f32
    %313 = vector.broadcast %cst_76 : f32 to vector<8x32xf32>
    %314 = arith.addf %313, %312 : vector<8x32xf32>
    %315 = arith.divf %313, %314 : vector<8x32xf32>
    %316 = vector.extract_strided_slice %302 {offsets = [0, 32], sizes = [8, 32], strides = [1, 1]} : vector<8x128xf32> to vector<8x32xf32>
    %317 = arith.negf %316 : vector<8x32xf32>
    %318 = math.exp %317 : vector<8x32xf32>
    %cst_77 = arith.constant 1.000000e+00 : f32
    %319 = vector.broadcast %cst_77 : f32 to vector<8x32xf32>
    %320 = arith.addf %319, %318 : vector<8x32xf32>
    %321 = arith.divf %319, %320 : vector<8x32xf32>
    %322 = vector.extract_strided_slice %302 {offsets = [0, 64], sizes = [8, 32], strides = [1, 1]} : vector<8x128xf32> to vector<8x32xf32>
    %323 = math.tanh %322 : vector<8x32xf32>
    %324 = vector.extract_strided_slice %302 {offsets = [0, 96], sizes = [8, 32], strides = [1, 1]} : vector<8x128xf32> to vector<8x32xf32>
    %325 = arith.negf %324 : vector<8x32xf32>
    %326 = math.exp %325 : vector<8x32xf32>
    %cst_78 = arith.constant 1.000000e+00 : f32
    %327 = vector.broadcast %cst_78 : f32 to vector<8x32xf32>
    %328 = arith.addf %327, %326 : vector<8x32xf32>
    %329 = arith.divf %327, %328 : vector<8x32xf32>
    %330 = arith.mulf %321, %259 : vector<8x32xf32>
    %331 = arith.mulf %315, %323 : vector<8x32xf32>
    %332 = arith.addf %330, %331 : vector<8x32xf32>
    %333 = math.tanh %332 : vector<8x32xf32>
    %334 = arith.mulf %329, %333 : vector<8x32xf32>
    %335 = vector.extract_strided_slice %309 {offsets = [0, 0], sizes = [8, 32], strides = [1, 1]} : vector<8x128xf32> to vector<8x32xf32>
    %336 = arith.negf %335 : vector<8x32xf32>
    %337 = math.exp %336 : vector<8x32xf32>
    %cst_79 = arith.constant 1.000000e+00 : f32
    %338 = vector.broadcast %cst_79 : f32 to vector<8x32xf32>
    %339 = arith.addf %338, %337 : vector<8x32xf32>
    %340 = arith.divf %338, %339 : vector<8x32xf32>
    %341 = vector.extract_strided_slice %309 {offsets = [0, 32], sizes = [8, 32], strides = [1, 1]} : vector<8x128xf32> to vector<8x32xf32>
    %342 = arith.negf %341 : vector<8x32xf32>
    %343 = math.exp %342 : vector<8x32xf32>
    %cst_80 = arith.constant 1.000000e+00 : f32
    %344 = vector.broadcast %cst_80 : f32 to vector<8x32xf32>
    %345 = arith.addf %344, %343 : vector<8x32xf32>
    %346 = arith.divf %344, %345 : vector<8x32xf32>
    %347 = vector.extract_strided_slice %309 {offsets = [0, 64], sizes = [8, 32], strides = [1, 1]} : vector<8x128xf32> to vector<8x32xf32>
    %348 = math.tanh %347 : vector<8x32xf32>
    %349 = vector.extract_strided_slice %309 {offsets = [0, 96], sizes = [8, 32], strides = [1, 1]} : vector<8x128xf32> to vector<8x32xf32>
    %350 = arith.negf %349 : vector<8x32xf32>
    %351 = math.exp %350 : vector<8x32xf32>
    %cst_81 = arith.constant 1.000000e+00 : f32
    %352 = vector.broadcast %cst_81 : f32 to vector<8x32xf32>
    %353 = arith.addf %352, %351 : vector<8x32xf32>
    %354 = arith.divf %352, %353 : vector<8x32xf32>
    %355 = arith.mulf %346, %284 : vector<8x32xf32>
    %356 = arith.mulf %340, %348 : vector<8x32xf32>
    %357 = arith.addf %355, %356 : vector<8x32xf32>
    %358 = math.tanh %357 : vector<8x32xf32>
    %359 = arith.mulf %354, %358 : vector<8x32xf32>
    %360 = arith.index_cast %c4_i32 : i32 to index
    %c0_82 = arith.constant 0 : index
    %c0_83 = arith.constant 0 : index
    %361 = vector.load %arg4[%360, %c0_82, %c0_83] : memref<8x8x64xf32, #tpu.memory_space<vmem>>, vector<1x8x32xf32>
    %362 = vector.shape_cast %361 : vector<1x8x32xf32> to vector<8x32xf32>
    %363 = vector.shape_cast %334 : vector<8x32xf32> to vector<1x8x32xf32>
    tpu.vector_store %arg4[%360, %c0_82, %c0_83], %363 {strides = array<i32>} : memref<8x8x64xf32, #tpu.memory_space<vmem>>, vector<1x8x32xf32>,
    %364 = arith.index_cast %295 : i32 to index
    %c0_84 = arith.constant 0 : index
    %c32_85 = arith.constant 32 : index
    %365 = vector.load %arg4[%364, %c0_84, %c32_85] : memref<8x8x64xf32, #tpu.memory_space<vmem>>, vector<1x8x32xf32>
    %366 = vector.shape_cast %365 : vector<1x8x32xf32> to vector<8x32xf32>
    %367 = vector.shape_cast %359 : vector<8x32xf32> to vector<1x8x32xf32>
    tpu.vector_store %arg4[%364, %c0_84, %c32_85], %367 {strides = array<i32>} : memref<8x8x64xf32, #tpu.memory_space<vmem>>, vector<1x8x32xf32>,
    %c5_i32 = arith.constant 5 : i32
    %c7_i32_86 = arith.constant 7 : i32
    %368 = arith.subi %c7_i32_86, %c5_i32 : i32
    %369 = arith.index_cast %c5_i32 : i32 to index
    %c0_87 = arith.constant 0 : index
    %c0_88 = arith.constant 0 : index
    %370 = vector.load %arg0[%369, %c0_87, %c0_88] : memref<8x8x128xbf16, #tpu.memory_space<vmem>>, vector<1x8x128xbf16>
    %371 = vector.shape_cast %370 : vector<1x8x128xbf16> to vector<8x128xbf16>
    %372 = arith.extf %371 : vector<8x128xbf16> to vector<8x128xf32>
    %373 = arith.truncf %334 : vector<8x32xf32> to vector<8x32xbf16>
    %cst_89 = arith.constant dense<0.000000e+00> : vector<8x128xf32>
    %374 = tpu.matmul %373, %0, %cst_89 {dimension_numbers = #tpu.dot_dimension_numbers<[1], [0], [0], [1], [0, 0, 1, 1], [], []>} : vector<8x32xbf16>, vector<32x128xbf16>, vector<8x128xf32> -> vector<8x128xf32>
    %375 = arith.addf %372, %374 : vector<8x128xf32>
    %376 = arith.index_cast %368 : i32 to index
    %c0_90 = arith.constant 0 : index
    %c0_91 = arith.constant 0 : index
    %377 = vector.load %arg1[%376, %c0_90, %c0_91] : memref<8x8x128xbf16, #tpu.memory_space<vmem>>, vector<1x8x128xbf16>
    %378 = vector.shape_cast %377 : vector<1x8x128xbf16> to vector<8x128xbf16>
    %379 = arith.extf %378 : vector<8x128xbf16> to vector<8x128xf32>
    %380 = arith.truncf %359 : vector<8x32xf32> to vector<8x32xbf16>
    %cst_92 = arith.constant dense<0.000000e+00> : vector<8x128xf32>
    %381 = tpu.matmul %380, %1, %cst_92 {dimension_numbers = #tpu.dot_dimension_numbers<[1], [0], [0], [1], [0, 0, 1, 1], [], []>} : vector<8x32xbf16>, vector<32x128xbf16>, vector<8x128xf32> -> vector<8x128xf32>
    %382 = arith.addf %379, %381 : vector<8x128xf32>
    %383 = vector.extract_strided_slice %375 {offsets = [0, 0], sizes = [8, 32], strides = [1, 1]} : vector<8x128xf32> to vector<8x32xf32>
    %384 = arith.negf %383 : vector<8x32xf32>
    %385 = math.exp %384 : vector<8x32xf32>
    %cst_93 = arith.constant 1.000000e+00 : f32
    %386 = vector.broadcast %cst_93 : f32 to vector<8x32xf32>
    %387 = arith.addf %386, %385 : vector<8x32xf32>
    %388 = arith.divf %386, %387 : vector<8x32xf32>
    %389 = vector.extract_strided_slice %375 {offsets = [0, 32], sizes = [8, 32], strides = [1, 1]} : vector<8x128xf32> to vector<8x32xf32>
    %390 = arith.negf %389 : vector<8x32xf32>
    %391 = math.exp %390 : vector<8x32xf32>
    %cst_94 = arith.constant 1.000000e+00 : f32
    %392 = vector.broadcast %cst_94 : f32 to vector<8x32xf32>
    %393 = arith.addf %392, %391 : vector<8x32xf32>
    %394 = arith.divf %392, %393 : vector<8x32xf32>
    %395 = vector.extract_strided_slice %375 {offsets = [0, 64], sizes = [8, 32], strides = [1, 1]} : vector<8x128xf32> to vector<8x32xf32>
    %396 = math.tanh %395 : vector<8x32xf32>
    %397 = vector.extract_strided_slice %375 {offsets = [0, 96], sizes = [8, 32], strides = [1, 1]} : vector<8x128xf32> to vector<8x32xf32>
    %398 = arith.negf %397 : vector<8x32xf32>
    %399 = math.exp %398 : vector<8x32xf32>
    %cst_95 = arith.constant 1.000000e+00 : f32
    %400 = vector.broadcast %cst_95 : f32 to vector<8x32xf32>
    %401 = arith.addf %400, %399 : vector<8x32xf32>
    %402 = arith.divf %400, %401 : vector<8x32xf32>
    %403 = arith.mulf %394, %332 : vector<8x32xf32>
    %404 = arith.mulf %388, %396 : vector<8x32xf32>
    %405 = arith.addf %403, %404 : vector<8x32xf32>
    %406 = math.tanh %405 : vector<8x32xf32>
    %407 = arith.mulf %402, %406 : vector<8x32xf32>
    %408 = vector.extract_strided_slice %382 {offsets = [0, 0], sizes = [8, 32], strides = [1, 1]} : vector<8x128xf32> to vector<8x32xf32>
    %409 = arith.negf %408 : vector<8x32xf32>
    %410 = math.exp %409 : vector<8x32xf32>
    %cst_96 = arith.constant 1.000000e+00 : f32
    %411 = vector.broadcast %cst_96 : f32 to vector<8x32xf32>
    %412 = arith.addf %411, %410 : vector<8x32xf32>
    %413 = arith.divf %411, %412 : vector<8x32xf32>
    %414 = vector.extract_strided_slice %382 {offsets = [0, 32], sizes = [8, 32], strides = [1, 1]} : vector<8x128xf32> to vector<8x32xf32>
    %415 = arith.negf %414 : vector<8x32xf32>
    %416 = math.exp %415 : vector<8x32xf32>
    %cst_97 = arith.constant 1.000000e+00 : f32
    %417 = vector.broadcast %cst_97 : f32 to vector<8x32xf32>
    %418 = arith.addf %417, %416 : vector<8x32xf32>
    %419 = arith.divf %417, %418 : vector<8x32xf32>
    %420 = vector.extract_strided_slice %382 {offsets = [0, 64], sizes = [8, 32], strides = [1, 1]} : vector<8x128xf32> to vector<8x32xf32>
    %421 = math.tanh %420 : vector<8x32xf32>
    %422 = vector.extract_strided_slice %382 {offsets = [0, 96], sizes = [8, 32], strides = [1, 1]} : vector<8x128xf32> to vector<8x32xf32>
    %423 = arith.negf %422 : vector<8x32xf32>
    %424 = math.exp %423 : vector<8x32xf32>
    %cst_98 = arith.constant 1.000000e+00 : f32
    %425 = vector.broadcast %cst_98 : f32 to vector<8x32xf32>
    %426 = arith.addf %425, %424 : vector<8x32xf32>
    %427 = arith.divf %425, %426 : vector<8x32xf32>
    %428 = arith.mulf %419, %357 : vector<8x32xf32>
    %429 = arith.mulf %413, %421 : vector<8x32xf32>
    %430 = arith.addf %428, %429 : vector<8x32xf32>
    %431 = math.tanh %430 : vector<8x32xf32>
    %432 = arith.mulf %427, %431 : vector<8x32xf32>
    %433 = arith.index_cast %c5_i32 : i32 to index
    %c0_99 = arith.constant 0 : index
    %c0_100 = arith.constant 0 : index
    %434 = vector.load %arg4[%433, %c0_99, %c0_100] : memref<8x8x64xf32, #tpu.memory_space<vmem>>, vector<1x8x32xf32>
    %435 = vector.shape_cast %434 : vector<1x8x32xf32> to vector<8x32xf32>
    %436 = vector.shape_cast %407 : vector<8x32xf32> to vector<1x8x32xf32>
    tpu.vector_store %arg4[%433, %c0_99, %c0_100], %436 {strides = array<i32>} : memref<8x8x64xf32, #tpu.memory_space<vmem>>, vector<1x8x32xf32>,
    %437 = arith.index_cast %368 : i32 to index
    %c0_101 = arith.constant 0 : index
    %c32_102 = arith.constant 32 : index
    %438 = vector.load %arg4[%437, %c0_101, %c32_102] : memref<8x8x64xf32, #tpu.memory_space<vmem>>, vector<1x8x32xf32>
    %439 = vector.shape_cast %438 : vector<1x8x32xf32> to vector<8x32xf32>
    %440 = vector.shape_cast %432 : vector<8x32xf32> to vector<1x8x32xf32>
    tpu.vector_store %arg4[%437, %c0_101, %c32_102], %440 {strides = array<i32>} : memref<8x8x64xf32, #tpu.memory_space<vmem>>, vector<1x8x32xf32>,
    %c6_i32 = arith.constant 6 : i32
    %c7_i32_103 = arith.constant 7 : i32
    %441 = arith.subi %c7_i32_103, %c6_i32 : i32
    %442 = arith.index_cast %c6_i32 : i32 to index
    %c0_104 = arith.constant 0 : index
    %c0_105 = arith.constant 0 : index
    %443 = vector.load %arg0[%442, %c0_104, %c0_105] : memref<8x8x128xbf16, #tpu.memory_space<vmem>>, vector<1x8x128xbf16>
    %444 = vector.shape_cast %443 : vector<1x8x128xbf16> to vector<8x128xbf16>
    %445 = arith.extf %444 : vector<8x128xbf16> to vector<8x128xf32>
    %446 = arith.truncf %407 : vector<8x32xf32> to vector<8x32xbf16>
    %cst_106 = arith.constant dense<0.000000e+00> : vector<8x128xf32>
    %447 = tpu.matmul %446, %0, %cst_106 {dimension_numbers = #tpu.dot_dimension_numbers<[1], [0], [0], [1], [0, 0, 1, 1], [], []>} : vector<8x32xbf16>, vector<32x128xbf16>, vector<8x128xf32> -> vector<8x128xf32>
    %448 = arith.addf %445, %447 : vector<8x128xf32>
    %449 = arith.index_cast %441 : i32 to index
    %c0_107 = arith.constant 0 : index
    %c0_108 = arith.constant 0 : index
    %450 = vector.load %arg1[%449, %c0_107, %c0_108] : memref<8x8x128xbf16, #tpu.memory_space<vmem>>, vector<1x8x128xbf16>
    %451 = vector.shape_cast %450 : vector<1x8x128xbf16> to vector<8x128xbf16>
    %452 = arith.extf %451 : vector<8x128xbf16> to vector<8x128xf32>
    %453 = arith.truncf %432 : vector<8x32xf32> to vector<8x32xbf16>
    %cst_109 = arith.constant dense<0.000000e+00> : vector<8x128xf32>
    %454 = tpu.matmul %453, %1, %cst_109 {dimension_numbers = #tpu.dot_dimension_numbers<[1], [0], [0], [1], [0, 0, 1, 1], [], []>} : vector<8x32xbf16>, vector<32x128xbf16>, vector<8x128xf32> -> vector<8x128xf32>
    %455 = arith.addf %452, %454 : vector<8x128xf32>
    %456 = vector.extract_strided_slice %448 {offsets = [0, 0], sizes = [8, 32], strides = [1, 1]} : vector<8x128xf32> to vector<8x32xf32>
    %457 = arith.negf %456 : vector<8x32xf32>
    %458 = math.exp %457 : vector<8x32xf32>
    %cst_110 = arith.constant 1.000000e+00 : f32
    %459 = vector.broadcast %cst_110 : f32 to vector<8x32xf32>
    %460 = arith.addf %459, %458 : vector<8x32xf32>
    %461 = arith.divf %459, %460 : vector<8x32xf32>
    %462 = vector.extract_strided_slice %448 {offsets = [0, 32], sizes = [8, 32], strides = [1, 1]} : vector<8x128xf32> to vector<8x32xf32>
    %463 = arith.negf %462 : vector<8x32xf32>
    %464 = math.exp %463 : vector<8x32xf32>
    %cst_111 = arith.constant 1.000000e+00 : f32
    %465 = vector.broadcast %cst_111 : f32 to vector<8x32xf32>
    %466 = arith.addf %465, %464 : vector<8x32xf32>
    %467 = arith.divf %465, %466 : vector<8x32xf32>
    %468 = vector.extract_strided_slice %448 {offsets = [0, 64], sizes = [8, 32], strides = [1, 1]} : vector<8x128xf32> to vector<8x32xf32>
    %469 = math.tanh %468 : vector<8x32xf32>
    %470 = vector.extract_strided_slice %448 {offsets = [0, 96], sizes = [8, 32], strides = [1, 1]} : vector<8x128xf32> to vector<8x32xf32>
    %471 = arith.negf %470 : vector<8x32xf32>
    %472 = math.exp %471 : vector<8x32xf32>
    %cst_112 = arith.constant 1.000000e+00 : f32
    %473 = vector.broadcast %cst_112 : f32 to vector<8x32xf32>
    %474 = arith.addf %473, %472 : vector<8x32xf32>
    %475 = arith.divf %473, %474 : vector<8x32xf32>
    %476 = arith.mulf %467, %405 : vector<8x32xf32>
    %477 = arith.mulf %461, %469 : vector<8x32xf32>
    %478 = arith.addf %476, %477 : vector<8x32xf32>
    %479 = math.tanh %478 : vector<8x32xf32>
    %480 = arith.mulf %475, %479 : vector<8x32xf32>
    %481 = vector.extract_strided_slice %455 {offsets = [0, 0], sizes = [8, 32], strides = [1, 1]} : vector<8x128xf32> to vector<8x32xf32>
    %482 = arith.negf %481 : vector<8x32xf32>
    %483 = math.exp %482 : vector<8x32xf32>
    %cst_113 = arith.constant 1.000000e+00 : f32
    %484 = vector.broadcast %cst_113 : f32 to vector<8x32xf32>
    %485 = arith.addf %484, %483 : vector<8x32xf32>
    %486 = arith.divf %484, %485 : vector<8x32xf32>
    %487 = vector.extract_strided_slice %455 {offsets = [0, 32], sizes = [8, 32], strides = [1, 1]} : vector<8x128xf32> to vector<8x32xf32>
    %488 = arith.negf %487 : vector<8x32xf32>
    %489 = math.exp %488 : vector<8x32xf32>
    %cst_114 = arith.constant 1.000000e+00 : f32
    %490 = vector.broadcast %cst_114 : f32 to vector<8x32xf32>
    %491 = arith.addf %490, %489 : vector<8x32xf32>
    %492 = arith.divf %490, %491 : vector<8x32xf32>
    %493 = vector.extract_strided_slice %455 {offsets = [0, 64], sizes = [8, 32], strides = [1, 1]} : vector<8x128xf32> to vector<8x32xf32>
    %494 = math.tanh %493 : vector<8x32xf32>
    %495 = vector.extract_strided_slice %455 {offsets = [0, 96], sizes = [8, 32], strides = [1, 1]} : vector<8x128xf32> to vector<8x32xf32>
    %496 = arith.negf %495 : vector<8x32xf32>
    %497 = math.exp %496 : vector<8x32xf32>
    %cst_115 = arith.constant 1.000000e+00 : f32
    %498 = vector.broadcast %cst_115 : f32 to vector<8x32xf32>
    %499 = arith.addf %498, %497 : vector<8x32xf32>
    %500 = arith.divf %498, %499 : vector<8x32xf32>
    %501 = arith.mulf %492, %430 : vector<8x32xf32>
    %502 = arith.mulf %486, %494 : vector<8x32xf32>
    %503 = arith.addf %501, %502 : vector<8x32xf32>
    %504 = math.tanh %503 : vector<8x32xf32>
    %505 = arith.mulf %500, %504 : vector<8x32xf32>
    %506 = arith.index_cast %c6_i32 : i32 to index
    %c0_116 = arith.constant 0 : index
    %c0_117 = arith.constant 0 : index
    %507 = vector.load %arg4[%506, %c0_116, %c0_117] : memref<8x8x64xf32, #tpu.memory_space<vmem>>, vector<1x8x32xf32>
    %508 = vector.shape_cast %507 : vector<1x8x32xf32> to vector<8x32xf32>
    %509 = vector.shape_cast %480 : vector<8x32xf32> to vector<1x8x32xf32>
    tpu.vector_store %arg4[%506, %c0_116, %c0_117], %509 {strides = array<i32>} : memref<8x8x64xf32, #tpu.memory_space<vmem>>, vector<1x8x32xf32>,
    %510 = arith.index_cast %441 : i32 to index
    %c0_118 = arith.constant 0 : index
    %c32_119 = arith.constant 32 : index
    %511 = vector.load %arg4[%510, %c0_118, %c32_119] : memref<8x8x64xf32, #tpu.memory_space<vmem>>, vector<1x8x32xf32>
    %512 = vector.shape_cast %511 : vector<1x8x32xf32> to vector<8x32xf32>
    %513 = vector.shape_cast %505 : vector<8x32xf32> to vector<1x8x32xf32>
    tpu.vector_store %arg4[%510, %c0_118, %c32_119], %513 {strides = array<i32>} : memref<8x8x64xf32, #tpu.memory_space<vmem>>, vector<1x8x32xf32>,
    %c7_i32_120 = arith.constant 7 : i32
    %c7_i32_121 = arith.constant 7 : i32
    %514 = arith.subi %c7_i32_121, %c7_i32_120 : i32
    %515 = arith.index_cast %c7_i32_120 : i32 to index
    %c0_122 = arith.constant 0 : index
    %c0_123 = arith.constant 0 : index
    %516 = vector.load %arg0[%515, %c0_122, %c0_123] : memref<8x8x128xbf16, #tpu.memory_space<vmem>>, vector<1x8x128xbf16>
    %517 = vector.shape_cast %516 : vector<1x8x128xbf16> to vector<8x128xbf16>
    %518 = arith.extf %517 : vector<8x128xbf16> to vector<8x128xf32>
    %519 = arith.truncf %480 : vector<8x32xf32> to vector<8x32xbf16>
    %cst_124 = arith.constant dense<0.000000e+00> : vector<8x128xf32>
    %520 = tpu.matmul %519, %0, %cst_124 {dimension_numbers = #tpu.dot_dimension_numbers<[1], [0], [0], [1], [0, 0, 1, 1], [], []>} : vector<8x32xbf16>, vector<32x128xbf16>, vector<8x128xf32> -> vector<8x128xf32>
    %521 = arith.addf %518, %520 : vector<8x128xf32>
    %522 = arith.index_cast %514 : i32 to index
    %c0_125 = arith.constant 0 : index
    %c0_126 = arith.constant 0 : index
    %523 = vector.load %arg1[%522, %c0_125, %c0_126] : memref<8x8x128xbf16, #tpu.memory_space<vmem>>, vector<1x8x128xbf16>
    %524 = vector.shape_cast %523 : vector<1x8x128xbf16> to vector<8x128xbf16>
    %525 = arith.extf %524 : vector<8x128xbf16> to vector<8x128xf32>
    %526 = arith.truncf %505 : vector<8x32xf32> to vector<8x32xbf16>
    %cst_127 = arith.constant dense<0.000000e+00> : vector<8x128xf32>
    %527 = tpu.matmul %526, %1, %cst_127 {dimension_numbers = #tpu.dot_dimension_numbers<[1], [0], [0], [1], [0, 0, 1, 1], [], []>} : vector<8x32xbf16>, vector<32x128xbf16>, vector<8x128xf32> -> vector<8x128xf32>
    %528 = arith.addf %525, %527 : vector<8x128xf32>
    %529 = vector.extract_strided_slice %521 {offsets = [0, 0], sizes = [8, 32], strides = [1, 1]} : vector<8x128xf32> to vector<8x32xf32>
    %530 = arith.negf %529 : vector<8x32xf32>
    %531 = math.exp %530 : vector<8x32xf32>
    %cst_128 = arith.constant 1.000000e+00 : f32
    %532 = vector.broadcast %cst_128 : f32 to vector<8x32xf32>
    %533 = arith.addf %532, %531 : vector<8x32xf32>
    %534 = arith.divf %532, %533 : vector<8x32xf32>
    %535 = vector.extract_strided_slice %521 {offsets = [0, 32], sizes = [8, 32], strides = [1, 1]} : vector<8x128xf32> to vector<8x32xf32>
    %536 = arith.negf %535 : vector<8x32xf32>
    %537 = math.exp %536 : vector<8x32xf32>
    %cst_129 = arith.constant 1.000000e+00 : f32
    %538 = vector.broadcast %cst_129 : f32 to vector<8x32xf32>
    %539 = arith.addf %538, %537 : vector<8x32xf32>
    %540 = arith.divf %538, %539 : vector<8x32xf32>
    %541 = vector.extract_strided_slice %521 {offsets = [0, 64], sizes = [8, 32], strides = [1, 1]} : vector<8x128xf32> to vector<8x32xf32>
    %542 = math.tanh %541 : vector<8x32xf32>
    %543 = vector.extract_strided_slice %521 {offsets = [0, 96], sizes = [8, 32], strides = [1, 1]} : vector<8x128xf32> to vector<8x32xf32>
    %544 = arith.negf %543 : vector<8x32xf32>
    %545 = math.exp %544 : vector<8x32xf32>
    %cst_130 = arith.constant 1.000000e+00 : f32
    %546 = vector.broadcast %cst_130 : f32 to vector<8x32xf32>
    %547 = arith.addf %546, %545 : vector<8x32xf32>
    %548 = arith.divf %546, %547 : vector<8x32xf32>
    %549 = arith.mulf %540, %478 : vector<8x32xf32>
    %550 = arith.mulf %534, %542 : vector<8x32xf32>
    %551 = arith.addf %549, %550 : vector<8x32xf32>
    %552 = math.tanh %551 : vector<8x32xf32>
    %553 = arith.mulf %548, %552 : vector<8x32xf32>
    %554 = vector.extract_strided_slice %528 {offsets = [0, 0], sizes = [8, 32], strides = [1, 1]} : vector<8x128xf32> to vector<8x32xf32>
    %555 = arith.negf %554 : vector<8x32xf32>
    %556 = math.exp %555 : vector<8x32xf32>
    %cst_131 = arith.constant 1.000000e+00 : f32
    %557 = vector.broadcast %cst_131 : f32 to vector<8x32xf32>
    %558 = arith.addf %557, %556 : vector<8x32xf32>
    %559 = arith.divf %557, %558 : vector<8x32xf32>
    %560 = vector.extract_strided_slice %528 {offsets = [0, 32], sizes = [8, 32], strides = [1, 1]} : vector<8x128xf32> to vector<8x32xf32>
    %561 = arith.negf %560 : vector<8x32xf32>
    %562 = math.exp %561 : vector<8x32xf32>
    %cst_132 = arith.constant 1.000000e+00 : f32
    %563 = vector.broadcast %cst_132 : f32 to vector<8x32xf32>
    %564 = arith.addf %563, %562 : vector<8x32xf32>
    %565 = arith.divf %563, %564 : vector<8x32xf32>
    %566 = vector.extract_strided_slice %528 {offsets = [0, 64], sizes = [8, 32], strides = [1, 1]} : vector<8x128xf32> to vector<8x32xf32>
    %567 = math.tanh %566 : vector<8x32xf32>
    %568 = vector.extract_strided_slice %528 {offsets = [0, 96], sizes = [8, 32], strides = [1, 1]} : vector<8x128xf32> to vector<8x32xf32>
    %569 = arith.negf %568 : vector<8x32xf32>
    %570 = math.exp %569 : vector<8x32xf32>
    %cst_133 = arith.constant 1.000000e+00 : f32
    %571 = vector.broadcast %cst_133 : f32 to vector<8x32xf32>
    %572 = arith.addf %571, %570 : vector<8x32xf32>
    %573 = arith.divf %571, %572 : vector<8x32xf32>
    %574 = arith.mulf %565, %503 : vector<8x32xf32>
    %575 = arith.mulf %559, %567 : vector<8x32xf32>
    %576 = arith.addf %574, %575 : vector<8x32xf32>
    %577 = math.tanh %576 : vector<8x32xf32>
    %578 = arith.mulf %573, %577 : vector<8x32xf32>
    %579 = arith.index_cast %c7_i32_120 : i32 to index
    %c0_134 = arith.constant 0 : index
    %c0_135 = arith.constant 0 : index
    %580 = vector.load %arg4[%579, %c0_134, %c0_135] : memref<8x8x64xf32, #tpu.memory_space<vmem>>, vector<1x8x32xf32>
    %581 = vector.shape_cast %580 : vector<1x8x32xf32> to vector<8x32xf32>
    %582 = vector.shape_cast %553 : vector<8x32xf32> to vector<1x8x32xf32>
    tpu.vector_store %arg4[%579, %c0_134, %c0_135], %582 {strides = array<i32>} : memref<8x8x64xf32, #tpu.memory_space<vmem>>, vector<1x8x32xf32>,
    %583 = arith.index_cast %514 : i32 to index
    %c0_136 = arith.constant 0 : index
    %c32_137 = arith.constant 32 : index
    %584 = vector.load %arg4[%583, %c0_136, %c32_137] : memref<8x8x64xf32, #tpu.memory_space<vmem>>, vector<1x8x32xf32>
    %585 = vector.shape_cast %584 : vector<1x8x32xf32> to vector<8x32xf32>
    %586 = vector.shape_cast %578 : vector<8x32xf32> to vector<1x8x32xf32>
    tpu.vector_store %arg4[%583, %c0_136, %c32_137], %586 {strides = array<i32>} : memref<8x8x64xf32, #tpu.memory_space<vmem>>, vector<1x8x32xf32>,
    %c8_i32 = arith.constant 8 : i32
    %c0_138 = arith.constant 0 : index
    %c0_139 = arith.constant 0 : index
    %c0_140 = arith.constant 0 : index
    %587 = vector.load %arg5[%c0_138, %c0_139, %c0_140] : memref<2x8x32xf32, #tpu.memory_space<vmem>>, vector<1x8x32xf32>
    %588 = vector.shape_cast %587 : vector<1x8x32xf32> to vector<8x32xf32>
    %589 = vector.shape_cast %553 : vector<8x32xf32> to vector<1x8x32xf32>
    tpu.vector_store %arg5[%c0_138, %c0_139, %c0_140], %589 {strides = array<i32>} : memref<2x8x32xf32, #tpu.memory_space<vmem>>, vector<1x8x32xf32>,
    %c1 = arith.constant 1 : index
    %c0_141 = arith.constant 0 : index
    %c0_142 = arith.constant 0 : index
    %590 = vector.load %arg5[%c1, %c0_141, %c0_142] : memref<2x8x32xf32, #tpu.memory_space<vmem>>, vector<1x8x32xf32>
    %591 = vector.shape_cast %590 : vector<1x8x32xf32> to vector<8x32xf32>
    %592 = vector.shape_cast %578 : vector<8x32xf32> to vector<1x8x32xf32>
    tpu.vector_store %arg5[%c1, %c0_141, %c0_142], %592 {strides = array<i32>} : memref<2x8x32xf32, #tpu.memory_space<vmem>>, vector<1x8x32xf32>,
    %c0_143 = arith.constant 0 : index
    %c0_144 = arith.constant 0 : index
    %c0_145 = arith.constant 0 : index
    %593 = vector.load %arg6[%c0_143, %c0_144, %c0_145] : memref<2x8x32xf32, #tpu.memory_space<vmem>>, vector<1x8x32xf32>
    %594 = vector.shape_cast %593 : vector<1x8x32xf32> to vector<8x32xf32>
    %595 = vector.shape_cast %551 : vector<8x32xf32> to vector<1x8x32xf32>
    tpu.vector_store %arg6[%c0_143, %c0_144, %c0_145], %595 {strides = array<i32>} : memref<2x8x32xf32, #tpu.memory_space<vmem>>, vector<1x8x32xf32>,
    %c1_146 = arith.constant 1 : index
    %c0_147 = arith.constant 0 : index
    %c0_148 = arith.constant 0 : index
    %596 = vector.load %arg6[%c1_146, %c0_147, %c0_148] : memref<2x8x32xf32, #tpu.memory_space<vmem>>, vector<1x8x32xf32>
    %597 = vector.shape_cast %596 : vector<1x8x32xf32> to vector<8x32xf32>
    %598 = vector.shape_cast %576 : vector<8x32xf32> to vector<1x8x32xf32>
    tpu.vector_store %arg6[%c1_146, %c0_147, %c0_148], %598 {strides = array<i32>} : memref<2x8x32xf32, #tpu.memory_space<vmem>>, vector<1x8x32xf32>,
    return
  }
}

module attributes {stable_mosaic.version = 11 : i64} {
  func.func @_bidir_lstm_kernel(%arg0: memref<8x8x128xbf16, #tpu.memory_space<vmem>>, %arg1: memref<8x8x128xbf16, #tpu.memory_space<vmem>>, %arg2: memref<32x128xbf16, #tpu.memory_space<vmem>>, %arg3: memref<32x128xbf16, #tpu.memory_space<vmem>>, %arg4: memref<1x1x64xf32, #tpu.memory_space<vmem>>, %arg5: memref<1x1x64xf32, #tpu.memory_space<vmem>>, %arg6: memref<8x8x64xf32, #tpu.memory_space<vmem>>, %arg7: memref<2x8x32xf32, #tpu.memory_space<vmem>>, %arg8: memref<2x8x32xf32, #tpu.memory_space<vmem>>) attributes {dimension_semantics = [], scalar_prefetch = 0 : i64, scratch_operands = 0 : i64, tpu.core_type = #tpu.core_type<tc>} {
    %c0 = arith.constant 0 : index
    %c0_0 = arith.constant 0 : index
    %0 = vector.load %arg2[%c0, %c0_0] : memref<32x128xbf16, #tpu.memory_space<vmem>>, vector<32x128xbf16>
    %c0_1 = arith.constant 0 : index
    %c0_2 = arith.constant 0 : index
    %1 = vector.load %arg3[%c0_1, %c0_2] : memref<32x128xbf16, #tpu.memory_space<vmem>>, vector<32x128xbf16>
    %cst = arith.constant 0.000000e+00 : f32
    %2 = vector.broadcast %cst : f32 to vector<8x32xf32>
    %c0_i32 = arith.constant 0 : i32
    %c7_i32 = arith.constant 7 : i32
    %3 = arith.subi %c7_i32, %c0_i32 : i32
    %4 = arith.index_cast %c0_i32 : i32 to index
    %c0_3 = arith.constant 0 : index
    %c0_4 = arith.constant 0 : index
    %5 = vector.load %arg0[%4, %c0_3, %c0_4] : memref<8x8x128xbf16, #tpu.memory_space<vmem>>, vector<1x8x128xbf16>
    %6 = vector.shape_cast %5 : vector<1x8x128xbf16> to vector<8x128xbf16>
    %7 = arith.extf %6 : vector<8x128xbf16> to vector<8x128xf32>
    %8 = arith.truncf %2 : vector<8x32xf32> to vector<8x32xbf16>
    %cst_5 = arith.constant dense<0.000000e+00> : vector<8x128xf32>
    %9 = tpu.matmul %8, %0, %cst_5 {dimension_numbers = #tpu.dot_dimension_numbers<[1], [0], [0], [1], [0, 0, 1, 1], [], []>} : vector<8x32xbf16>, vector<32x128xbf16>, vector<8x128xf32> -> vector<8x128xf32>
    %10 = arith.addf %7, %9 : vector<8x128xf32>
    %11 = arith.index_cast %3 : i32 to index
    %c0_6 = arith.constant 0 : index
    %c0_7 = arith.constant 0 : index
    %12 = vector.load %arg1[%11, %c0_6, %c0_7] : memref<8x8x128xbf16, #tpu.memory_space<vmem>>, vector<1x8x128xbf16>
    %13 = vector.shape_cast %12 : vector<1x8x128xbf16> to vector<8x128xbf16>
    %14 = arith.extf %13 : vector<8x128xbf16> to vector<8x128xf32>
    %15 = arith.truncf %2 : vector<8x32xf32> to vector<8x32xbf16>
    %cst_8 = arith.constant dense<0.000000e+00> : vector<8x128xf32>
    %16 = tpu.matmul %15, %1, %cst_8 {dimension_numbers = #tpu.dot_dimension_numbers<[1], [0], [0], [1], [0, 0, 1, 1], [], []>} : vector<8x32xbf16>, vector<32x128xbf16>, vector<8x128xf32> -> vector<8x128xf32>
    %17 = arith.addf %14, %16 : vector<8x128xf32>
    %18 = vector.extract_strided_slice %10 {offsets = [0, 0], sizes = [8, 32], strides = [1, 1]} : vector<8x128xf32> to vector<8x32xf32>
    %19 = arith.negf %18 : vector<8x32xf32>
    %20 = math.exp %19 : vector<8x32xf32>
    %cst_9 = arith.constant 1.000000e+00 : f32
    %21 = vector.broadcast %cst_9 : f32 to vector<8x32xf32>
    %22 = arith.addf %21, %20 : vector<8x32xf32>
    %23 = arith.divf %21, %22 : vector<8x32xf32>
    %24 = vector.extract_strided_slice %10 {offsets = [0, 32], sizes = [8, 32], strides = [1, 1]} : vector<8x128xf32> to vector<8x32xf32>
    %25 = arith.negf %24 : vector<8x32xf32>
    %26 = math.exp %25 : vector<8x32xf32>
    %cst_10 = arith.constant 1.000000e+00 : f32
    %27 = vector.broadcast %cst_10 : f32 to vector<8x32xf32>
    %28 = arith.addf %27, %26 : vector<8x32xf32>
    %29 = arith.divf %27, %28 : vector<8x32xf32>
    %30 = vector.extract_strided_slice %10 {offsets = [0, 64], sizes = [8, 32], strides = [1, 1]} : vector<8x128xf32> to vector<8x32xf32>
    %31 = math.tanh %30 : vector<8x32xf32>
    %32 = vector.extract_strided_slice %10 {offsets = [0, 96], sizes = [8, 32], strides = [1, 1]} : vector<8x128xf32> to vector<8x32xf32>
    %33 = arith.negf %32 : vector<8x32xf32>
    %34 = math.exp %33 : vector<8x32xf32>
    %cst_11 = arith.constant 1.000000e+00 : f32
    %35 = vector.broadcast %cst_11 : f32 to vector<8x32xf32>
    %36 = arith.addf %35, %34 : vector<8x32xf32>
    %37 = arith.divf %35, %36 : vector<8x32xf32>
    %38 = arith.mulf %29, %2 : vector<8x32xf32>
    %39 = arith.mulf %23, %31 : vector<8x32xf32>
    %40 = arith.addf %38, %39 : vector<8x32xf32>
    %41 = math.tanh %40 : vector<8x32xf32>
    %42 = arith.mulf %37, %41 : vector<8x32xf32>
    %43 = vector.extract_strided_slice %17 {offsets = [0, 0], sizes = [8, 32], strides = [1, 1]} : vector<8x128xf32> to vector<8x32xf32>
    %44 = arith.negf %43 : vector<8x32xf32>
    %45 = math.exp %44 : vector<8x32xf32>
    %cst_12 = arith.constant 1.000000e+00 : f32
    %46 = vector.broadcast %cst_12 : f32 to vector<8x32xf32>
    %47 = arith.addf %46, %45 : vector<8x32xf32>
    %48 = arith.divf %46, %47 : vector<8x32xf32>
    %49 = vector.extract_strided_slice %17 {offsets = [0, 32], sizes = [8, 32], strides = [1, 1]} : vector<8x128xf32> to vector<8x32xf32>
    %50 = arith.negf %49 : vector<8x32xf32>
    %51 = math.exp %50 : vector<8x32xf32>
    %cst_13 = arith.constant 1.000000e+00 : f32
    %52 = vector.broadcast %cst_13 : f32 to vector<8x32xf32>
    %53 = arith.addf %52, %51 : vector<8x32xf32>
    %54 = arith.divf %52, %53 : vector<8x32xf32>
    %55 = vector.extract_strided_slice %17 {offsets = [0, 64], sizes = [8, 32], strides = [1, 1]} : vector<8x128xf32> to vector<8x32xf32>
    %56 = math.tanh %55 : vector<8x32xf32>
    %57 = vector.extract_strided_slice %17 {offsets = [0, 96], sizes = [8, 32], strides = [1, 1]} : vector<8x128xf32> to vector<8x32xf32>
    %58 = arith.negf %57 : vector<8x32xf32>
    %59 = math.exp %58 : vector<8x32xf32>
    %cst_14 = arith.constant 1.000000e+00 : f32
    %60 = vector.broadcast %cst_14 : f32 to vector<8x32xf32>
    %61 = arith.addf %60, %59 : vector<8x32xf32>
    %62 = arith.divf %60, %61 : vector<8x32xf32>
    %63 = arith.mulf %54, %2 : vector<8x32xf32>
    %64 = arith.mulf %48, %56 : vector<8x32xf32>
    %65 = arith.addf %63, %64 : vector<8x32xf32>
    %66 = math.tanh %65 : vector<8x32xf32>
    %67 = arith.mulf %62, %66 : vector<8x32xf32>
    %68 = arith.index_cast %c0_i32 : i32 to index
    %c0_15 = arith.constant 0 : index
    %c0_16 = arith.constant 0 : index
    %69 = vector.load %arg6[%68, %c0_15, %c0_16] : memref<8x8x64xf32, #tpu.memory_space<vmem>>, vector<1x8x32xf32>
    %70 = vector.shape_cast %69 : vector<1x8x32xf32> to vector<8x32xf32>
    %71 = vector.shape_cast %42 : vector<8x32xf32> to vector<1x8x32xf32>
    tpu.vector_store %arg6[%68, %c0_15, %c0_16], %71 {strides = array<i32>} : memref<8x8x64xf32, #tpu.memory_space<vmem>>, vector<1x8x32xf32>,
    %72 = arith.index_cast %3 : i32 to index
    %c0_17 = arith.constant 0 : index
    %c32 = arith.constant 32 : index
    %73 = vector.load %arg6[%72, %c0_17, %c32] : memref<8x8x64xf32, #tpu.memory_space<vmem>>, vector<1x8x32xf32>
    %74 = vector.shape_cast %73 : vector<1x8x32xf32> to vector<8x32xf32>
    %75 = vector.shape_cast %67 : vector<8x32xf32> to vector<1x8x32xf32>
    tpu.vector_store %arg6[%72, %c0_17, %c32], %75 {strides = array<i32>} : memref<8x8x64xf32, #tpu.memory_space<vmem>>, vector<1x8x32xf32>,
    %c1_i32 = arith.constant 1 : i32
    %c7_i32_18 = arith.constant 7 : i32
    %76 = arith.subi %c7_i32_18, %c1_i32 : i32
    %77 = arith.index_cast %c1_i32 : i32 to index
    %c0_19 = arith.constant 0 : index
    %c0_20 = arith.constant 0 : index
    %78 = vector.load %arg0[%77, %c0_19, %c0_20] : memref<8x8x128xbf16, #tpu.memory_space<vmem>>, vector<1x8x128xbf16>
    %79 = vector.shape_cast %78 : vector<1x8x128xbf16> to vector<8x128xbf16>
    %80 = arith.extf %79 : vector<8x128xbf16> to vector<8x128xf32>
    %81 = arith.truncf %42 : vector<8x32xf32> to vector<8x32xbf16>
    %cst_21 = arith.constant dense<0.000000e+00> : vector<8x128xf32>
    %82 = tpu.matmul %81, %0, %cst_21 {dimension_numbers = #tpu.dot_dimension_numbers<[1], [0], [0], [1], [0, 0, 1, 1], [], []>} : vector<8x32xbf16>, vector<32x128xbf16>, vector<8x128xf32> -> vector<8x128xf32>
    %83 = arith.addf %80, %82 : vector<8x128xf32>
    %84 = arith.index_cast %76 : i32 to index
    %c0_22 = arith.constant 0 : index
    %c0_23 = arith.constant 0 : index
    %85 = vector.load %arg1[%84, %c0_22, %c0_23] : memref<8x8x128xbf16, #tpu.memory_space<vmem>>, vector<1x8x128xbf16>
    %86 = vector.shape_cast %85 : vector<1x8x128xbf16> to vector<8x128xbf16>
    %87 = arith.extf %86 : vector<8x128xbf16> to vector<8x128xf32>
    %88 = arith.truncf %67 : vector<8x32xf32> to vector<8x32xbf16>
    %cst_24 = arith.constant dense<0.000000e+00> : vector<8x128xf32>
    %89 = tpu.matmul %88, %1, %cst_24 {dimension_numbers = #tpu.dot_dimension_numbers<[1], [0], [0], [1], [0, 0, 1, 1], [], []>} : vector<8x32xbf16>, vector<32x128xbf16>, vector<8x128xf32> -> vector<8x128xf32>
    %90 = arith.addf %87, %89 : vector<8x128xf32>
    %91 = vector.extract_strided_slice %83 {offsets = [0, 0], sizes = [8, 32], strides = [1, 1]} : vector<8x128xf32> to vector<8x32xf32>
    %92 = arith.negf %91 : vector<8x32xf32>
    %93 = math.exp %92 : vector<8x32xf32>
    %cst_25 = arith.constant 1.000000e+00 : f32
    %94 = vector.broadcast %cst_25 : f32 to vector<8x32xf32>
    %95 = arith.addf %94, %93 : vector<8x32xf32>
    %96 = arith.divf %94, %95 : vector<8x32xf32>
    %97 = vector.extract_strided_slice %83 {offsets = [0, 32], sizes = [8, 32], strides = [1, 1]} : vector<8x128xf32> to vector<8x32xf32>
    %98 = arith.negf %97 : vector<8x32xf32>
    %99 = math.exp %98 : vector<8x32xf32>
    %cst_26 = arith.constant 1.000000e+00 : f32
    %100 = vector.broadcast %cst_26 : f32 to vector<8x32xf32>
    %101 = arith.addf %100, %99 : vector<8x32xf32>
    %102 = arith.divf %100, %101 : vector<8x32xf32>
    %103 = vector.extract_strided_slice %83 {offsets = [0, 64], sizes = [8, 32], strides = [1, 1]} : vector<8x128xf32> to vector<8x32xf32>
    %104 = math.tanh %103 : vector<8x32xf32>
    %105 = vector.extract_strided_slice %83 {offsets = [0, 96], sizes = [8, 32], strides = [1, 1]} : vector<8x128xf32> to vector<8x32xf32>
    %106 = arith.negf %105 : vector<8x32xf32>
    %107 = math.exp %106 : vector<8x32xf32>
    %cst_27 = arith.constant 1.000000e+00 : f32
    %108 = vector.broadcast %cst_27 : f32 to vector<8x32xf32>
    %109 = arith.addf %108, %107 : vector<8x32xf32>
    %110 = arith.divf %108, %109 : vector<8x32xf32>
    %111 = arith.mulf %102, %40 : vector<8x32xf32>
    %112 = arith.mulf %96, %104 : vector<8x32xf32>
    %113 = arith.addf %111, %112 : vector<8x32xf32>
    %114 = math.tanh %113 : vector<8x32xf32>
    %115 = arith.mulf %110, %114 : vector<8x32xf32>
    %116 = vector.extract_strided_slice %90 {offsets = [0, 0], sizes = [8, 32], strides = [1, 1]} : vector<8x128xf32> to vector<8x32xf32>
    %117 = arith.negf %116 : vector<8x32xf32>
    %118 = math.exp %117 : vector<8x32xf32>
    %cst_28 = arith.constant 1.000000e+00 : f32
    %119 = vector.broadcast %cst_28 : f32 to vector<8x32xf32>
    %120 = arith.addf %119, %118 : vector<8x32xf32>
    %121 = arith.divf %119, %120 : vector<8x32xf32>
    %122 = vector.extract_strided_slice %90 {offsets = [0, 32], sizes = [8, 32], strides = [1, 1]} : vector<8x128xf32> to vector<8x32xf32>
    %123 = arith.negf %122 : vector<8x32xf32>
    %124 = math.exp %123 : vector<8x32xf32>
    %cst_29 = arith.constant 1.000000e+00 : f32
    %125 = vector.broadcast %cst_29 : f32 to vector<8x32xf32>
    %126 = arith.addf %125, %124 : vector<8x32xf32>
    %127 = arith.divf %125, %126 : vector<8x32xf32>
    %128 = vector.extract_strided_slice %90 {offsets = [0, 64], sizes = [8, 32], strides = [1, 1]} : vector<8x128xf32> to vector<8x32xf32>
    %129 = math.tanh %128 : vector<8x32xf32>
    %130 = vector.extract_strided_slice %90 {offsets = [0, 96], sizes = [8, 32], strides = [1, 1]} : vector<8x128xf32> to vector<8x32xf32>
    %131 = arith.negf %130 : vector<8x32xf32>
    %132 = math.exp %131 : vector<8x32xf32>
    %cst_30 = arith.constant 1.000000e+00 : f32
    %133 = vector.broadcast %cst_30 : f32 to vector<8x32xf32>
    %134 = arith.addf %133, %132 : vector<8x32xf32>
    %135 = arith.divf %133, %134 : vector<8x32xf32>
    %136 = arith.mulf %127, %65 : vector<8x32xf32>
    %137 = arith.mulf %121, %129 : vector<8x32xf32>
    %138 = arith.addf %136, %137 : vector<8x32xf32>
    %139 = math.tanh %138 : vector<8x32xf32>
    %140 = arith.mulf %135, %139 : vector<8x32xf32>
    %141 = arith.index_cast %c1_i32 : i32 to index
    %c0_31 = arith.constant 0 : index
    %c0_32 = arith.constant 0 : index
    %142 = vector.load %arg6[%141, %c0_31, %c0_32] : memref<8x8x64xf32, #tpu.memory_space<vmem>>, vector<1x8x32xf32>
    %143 = vector.shape_cast %142 : vector<1x8x32xf32> to vector<8x32xf32>
    %144 = vector.shape_cast %115 : vector<8x32xf32> to vector<1x8x32xf32>
    tpu.vector_store %arg6[%141, %c0_31, %c0_32], %144 {strides = array<i32>} : memref<8x8x64xf32, #tpu.memory_space<vmem>>, vector<1x8x32xf32>,
    %145 = arith.index_cast %76 : i32 to index
    %c0_33 = arith.constant 0 : index
    %c32_34 = arith.constant 32 : index
    %146 = vector.load %arg6[%145, %c0_33, %c32_34] : memref<8x8x64xf32, #tpu.memory_space<vmem>>, vector<1x8x32xf32>
    %147 = vector.shape_cast %146 : vector<1x8x32xf32> to vector<8x32xf32>
    %148 = vector.shape_cast %140 : vector<8x32xf32> to vector<1x8x32xf32>
    tpu.vector_store %arg6[%145, %c0_33, %c32_34], %148 {strides = array<i32>} : memref<8x8x64xf32, #tpu.memory_space<vmem>>, vector<1x8x32xf32>,
    %c2_i32 = arith.constant 2 : i32
    %c7_i32_35 = arith.constant 7 : i32
    %149 = arith.subi %c7_i32_35, %c2_i32 : i32
    %150 = arith.index_cast %c2_i32 : i32 to index
    %c0_36 = arith.constant 0 : index
    %c0_37 = arith.constant 0 : index
    %151 = vector.load %arg0[%150, %c0_36, %c0_37] : memref<8x8x128xbf16, #tpu.memory_space<vmem>>, vector<1x8x128xbf16>
    %152 = vector.shape_cast %151 : vector<1x8x128xbf16> to vector<8x128xbf16>
    %153 = arith.extf %152 : vector<8x128xbf16> to vector<8x128xf32>
    %154 = arith.truncf %115 : vector<8x32xf32> to vector<8x32xbf16>
    %cst_38 = arith.constant dense<0.000000e+00> : vector<8x128xf32>
    %155 = tpu.matmul %154, %0, %cst_38 {dimension_numbers = #tpu.dot_dimension_numbers<[1], [0], [0], [1], [0, 0, 1, 1], [], []>} : vector<8x32xbf16>, vector<32x128xbf16>, vector<8x128xf32> -> vector<8x128xf32>
    %156 = arith.addf %153, %155 : vector<8x128xf32>
    %157 = arith.index_cast %149 : i32 to index
    %c0_39 = arith.constant 0 : index
    %c0_40 = arith.constant 0 : index
    %158 = vector.load %arg1[%157, %c0_39, %c0_40] : memref<8x8x128xbf16, #tpu.memory_space<vmem>>, vector<1x8x128xbf16>
    %159 = vector.shape_cast %158 : vector<1x8x128xbf16> to vector<8x128xbf16>
    %160 = arith.extf %159 : vector<8x128xbf16> to vector<8x128xf32>
    %161 = arith.truncf %140 : vector<8x32xf32> to vector<8x32xbf16>
    %cst_41 = arith.constant dense<0.000000e+00> : vector<8x128xf32>
    %162 = tpu.matmul %161, %1, %cst_41 {dimension_numbers = #tpu.dot_dimension_numbers<[1], [0], [0], [1], [0, 0, 1, 1], [], []>} : vector<8x32xbf16>, vector<32x128xbf16>, vector<8x128xf32> -> vector<8x128xf32>
    %163 = arith.addf %160, %162 : vector<8x128xf32>
    %164 = vector.extract_strided_slice %156 {offsets = [0, 0], sizes = [8, 32], strides = [1, 1]} : vector<8x128xf32> to vector<8x32xf32>
    %165 = arith.negf %164 : vector<8x32xf32>
    %166 = math.exp %165 : vector<8x32xf32>
    %cst_42 = arith.constant 1.000000e+00 : f32
    %167 = vector.broadcast %cst_42 : f32 to vector<8x32xf32>
    %168 = arith.addf %167, %166 : vector<8x32xf32>
    %169 = arith.divf %167, %168 : vector<8x32xf32>
    %170 = vector.extract_strided_slice %156 {offsets = [0, 32], sizes = [8, 32], strides = [1, 1]} : vector<8x128xf32> to vector<8x32xf32>
    %171 = arith.negf %170 : vector<8x32xf32>
    %172 = math.exp %171 : vector<8x32xf32>
    %cst_43 = arith.constant 1.000000e+00 : f32
    %173 = vector.broadcast %cst_43 : f32 to vector<8x32xf32>
    %174 = arith.addf %173, %172 : vector<8x32xf32>
    %175 = arith.divf %173, %174 : vector<8x32xf32>
    %176 = vector.extract_strided_slice %156 {offsets = [0, 64], sizes = [8, 32], strides = [1, 1]} : vector<8x128xf32> to vector<8x32xf32>
    %177 = math.tanh %176 : vector<8x32xf32>
    %178 = vector.extract_strided_slice %156 {offsets = [0, 96], sizes = [8, 32], strides = [1, 1]} : vector<8x128xf32> to vector<8x32xf32>
    %179 = arith.negf %178 : vector<8x32xf32>
    %180 = math.exp %179 : vector<8x32xf32>
    %cst_44 = arith.constant 1.000000e+00 : f32
    %181 = vector.broadcast %cst_44 : f32 to vector<8x32xf32>
    %182 = arith.addf %181, %180 : vector<8x32xf32>
    %183 = arith.divf %181, %182 : vector<8x32xf32>
    %184 = arith.mulf %175, %113 : vector<8x32xf32>
    %185 = arith.mulf %169, %177 : vector<8x32xf32>
    %186 = arith.addf %184, %185 : vector<8x32xf32>
    %187 = math.tanh %186 : vector<8x32xf32>
    %188 = arith.mulf %183, %187 : vector<8x32xf32>
    %189 = vector.extract_strided_slice %163 {offsets = [0, 0], sizes = [8, 32], strides = [1, 1]} : vector<8x128xf32> to vector<8x32xf32>
    %190 = arith.negf %189 : vector<8x32xf32>
    %191 = math.exp %190 : vector<8x32xf32>
    %cst_45 = arith.constant 1.000000e+00 : f32
    %192 = vector.broadcast %cst_45 : f32 to vector<8x32xf32>
    %193 = arith.addf %192, %191 : vector<8x32xf32>
    %194 = arith.divf %192, %193 : vector<8x32xf32>
    %195 = vector.extract_strided_slice %163 {offsets = [0, 32], sizes = [8, 32], strides = [1, 1]} : vector<8x128xf32> to vector<8x32xf32>
    %196 = arith.negf %195 : vector<8x32xf32>
    %197 = math.exp %196 : vector<8x32xf32>
    %cst_46 = arith.constant 1.000000e+00 : f32
    %198 = vector.broadcast %cst_46 : f32 to vector<8x32xf32>
    %199 = arith.addf %198, %197 : vector<8x32xf32>
    %200 = arith.divf %198, %199 : vector<8x32xf32>
    %201 = vector.extract_strided_slice %163 {offsets = [0, 64], sizes = [8, 32], strides = [1, 1]} : vector<8x128xf32> to vector<8x32xf32>
    %202 = math.tanh %201 : vector<8x32xf32>
    %203 = vector.extract_strided_slice %163 {offsets = [0, 96], sizes = [8, 32], strides = [1, 1]} : vector<8x128xf32> to vector<8x32xf32>
    %204 = arith.negf %203 : vector<8x32xf32>
    %205 = math.exp %204 : vector<8x32xf32>
    %cst_47 = arith.constant 1.000000e+00 : f32
    %206 = vector.broadcast %cst_47 : f32 to vector<8x32xf32>
    %207 = arith.addf %206, %205 : vector<8x32xf32>
    %208 = arith.divf %206, %207 : vector<8x32xf32>
    %209 = arith.mulf %200, %138 : vector<8x32xf32>
    %210 = arith.mulf %194, %202 : vector<8x32xf32>
    %211 = arith.addf %209, %210 : vector<8x32xf32>
    %212 = math.tanh %211 : vector<8x32xf32>
    %213 = arith.mulf %208, %212 : vector<8x32xf32>
    %214 = arith.index_cast %c2_i32 : i32 to index
    %c0_48 = arith.constant 0 : index
    %c0_49 = arith.constant 0 : index
    %215 = vector.load %arg6[%214, %c0_48, %c0_49] : memref<8x8x64xf32, #tpu.memory_space<vmem>>, vector<1x8x32xf32>
    %216 = vector.shape_cast %215 : vector<1x8x32xf32> to vector<8x32xf32>
    %217 = vector.shape_cast %188 : vector<8x32xf32> to vector<1x8x32xf32>
    tpu.vector_store %arg6[%214, %c0_48, %c0_49], %217 {strides = array<i32>} : memref<8x8x64xf32, #tpu.memory_space<vmem>>, vector<1x8x32xf32>,
    %218 = arith.index_cast %149 : i32 to index
    %c0_50 = arith.constant 0 : index
    %c32_51 = arith.constant 32 : index
    %219 = vector.load %arg6[%218, %c0_50, %c32_51] : memref<8x8x64xf32, #tpu.memory_space<vmem>>, vector<1x8x32xf32>
    %220 = vector.shape_cast %219 : vector<1x8x32xf32> to vector<8x32xf32>
    %221 = vector.shape_cast %213 : vector<8x32xf32> to vector<1x8x32xf32>
    tpu.vector_store %arg6[%218, %c0_50, %c32_51], %221 {strides = array<i32>} : memref<8x8x64xf32, #tpu.memory_space<vmem>>, vector<1x8x32xf32>,
    %c3_i32 = arith.constant 3 : i32
    %c7_i32_52 = arith.constant 7 : i32
    %222 = arith.subi %c7_i32_52, %c3_i32 : i32
    %223 = arith.index_cast %c3_i32 : i32 to index
    %c0_53 = arith.constant 0 : index
    %c0_54 = arith.constant 0 : index
    %224 = vector.load %arg0[%223, %c0_53, %c0_54] : memref<8x8x128xbf16, #tpu.memory_space<vmem>>, vector<1x8x128xbf16>
    %225 = vector.shape_cast %224 : vector<1x8x128xbf16> to vector<8x128xbf16>
    %226 = arith.extf %225 : vector<8x128xbf16> to vector<8x128xf32>
    %227 = arith.truncf %188 : vector<8x32xf32> to vector<8x32xbf16>
    %cst_55 = arith.constant dense<0.000000e+00> : vector<8x128xf32>
    %228 = tpu.matmul %227, %0, %cst_55 {dimension_numbers = #tpu.dot_dimension_numbers<[1], [0], [0], [1], [0, 0, 1, 1], [], []>} : vector<8x32xbf16>, vector<32x128xbf16>, vector<8x128xf32> -> vector<8x128xf32>
    %229 = arith.addf %226, %228 : vector<8x128xf32>
    %230 = arith.index_cast %222 : i32 to index
    %c0_56 = arith.constant 0 : index
    %c0_57 = arith.constant 0 : index
    %231 = vector.load %arg1[%230, %c0_56, %c0_57] : memref<8x8x128xbf16, #tpu.memory_space<vmem>>, vector<1x8x128xbf16>
    %232 = vector.shape_cast %231 : vector<1x8x128xbf16> to vector<8x128xbf16>
    %233 = arith.extf %232 : vector<8x128xbf16> to vector<8x128xf32>
    %234 = arith.truncf %213 : vector<8x32xf32> to vector<8x32xbf16>
    %cst_58 = arith.constant dense<0.000000e+00> : vector<8x128xf32>
    %235 = tpu.matmul %234, %1, %cst_58 {dimension_numbers = #tpu.dot_dimension_numbers<[1], [0], [0], [1], [0, 0, 1, 1], [], []>} : vector<8x32xbf16>, vector<32x128xbf16>, vector<8x128xf32> -> vector<8x128xf32>
    %236 = arith.addf %233, %235 : vector<8x128xf32>
    %237 = vector.extract_strided_slice %229 {offsets = [0, 0], sizes = [8, 32], strides = [1, 1]} : vector<8x128xf32> to vector<8x32xf32>
    %238 = arith.negf %237 : vector<8x32xf32>
    %239 = math.exp %238 : vector<8x32xf32>
    %cst_59 = arith.constant 1.000000e+00 : f32
    %240 = vector.broadcast %cst_59 : f32 to vector<8x32xf32>
    %241 = arith.addf %240, %239 : vector<8x32xf32>
    %242 = arith.divf %240, %241 : vector<8x32xf32>
    %243 = vector.extract_strided_slice %229 {offsets = [0, 32], sizes = [8, 32], strides = [1, 1]} : vector<8x128xf32> to vector<8x32xf32>
    %244 = arith.negf %243 : vector<8x32xf32>
    %245 = math.exp %244 : vector<8x32xf32>
    %cst_60 = arith.constant 1.000000e+00 : f32
    %246 = vector.broadcast %cst_60 : f32 to vector<8x32xf32>
    %247 = arith.addf %246, %245 : vector<8x32xf32>
    %248 = arith.divf %246, %247 : vector<8x32xf32>
    %249 = vector.extract_strided_slice %229 {offsets = [0, 64], sizes = [8, 32], strides = [1, 1]} : vector<8x128xf32> to vector<8x32xf32>
    %250 = math.tanh %249 : vector<8x32xf32>
    %251 = vector.extract_strided_slice %229 {offsets = [0, 96], sizes = [8, 32], strides = [1, 1]} : vector<8x128xf32> to vector<8x32xf32>
    %252 = arith.negf %251 : vector<8x32xf32>
    %253 = math.exp %252 : vector<8x32xf32>
    %cst_61 = arith.constant 1.000000e+00 : f32
    %254 = vector.broadcast %cst_61 : f32 to vector<8x32xf32>
    %255 = arith.addf %254, %253 : vector<8x32xf32>
    %256 = arith.divf %254, %255 : vector<8x32xf32>
    %257 = arith.mulf %248, %186 : vector<8x32xf32>
    %258 = arith.mulf %242, %250 : vector<8x32xf32>
    %259 = arith.addf %257, %258 : vector<8x32xf32>
    %260 = math.tanh %259 : vector<8x32xf32>
    %261 = arith.mulf %256, %260 : vector<8x32xf32>
    %262 = vector.extract_strided_slice %236 {offsets = [0, 0], sizes = [8, 32], strides = [1, 1]} : vector<8x128xf32> to vector<8x32xf32>
    %263 = arith.negf %262 : vector<8x32xf32>
    %264 = math.exp %263 : vector<8x32xf32>
    %cst_62 = arith.constant 1.000000e+00 : f32
    %265 = vector.broadcast %cst_62 : f32 to vector<8x32xf32>
    %266 = arith.addf %265, %264 : vector<8x32xf32>
    %267 = arith.divf %265, %266 : vector<8x32xf32>
    %268 = vector.extract_strided_slice %236 {offsets = [0, 32], sizes = [8, 32], strides = [1, 1]} : vector<8x128xf32> to vector<8x32xf32>
    %269 = arith.negf %268 : vector<8x32xf32>
    %270 = math.exp %269 : vector<8x32xf32>
    %cst_63 = arith.constant 1.000000e+00 : f32
    %271 = vector.broadcast %cst_63 : f32 to vector<8x32xf32>
    %272 = arith.addf %271, %270 : vector<8x32xf32>
    %273 = arith.divf %271, %272 : vector<8x32xf32>
    %274 = vector.extract_strided_slice %236 {offsets = [0, 64], sizes = [8, 32], strides = [1, 1]} : vector<8x128xf32> to vector<8x32xf32>
    %275 = math.tanh %274 : vector<8x32xf32>
    %276 = vector.extract_strided_slice %236 {offsets = [0, 96], sizes = [8, 32], strides = [1, 1]} : vector<8x128xf32> to vector<8x32xf32>
    %277 = arith.negf %276 : vector<8x32xf32>
    %278 = math.exp %277 : vector<8x32xf32>
    %cst_64 = arith.constant 1.000000e+00 : f32
    %279 = vector.broadcast %cst_64 : f32 to vector<8x32xf32>
    %280 = arith.addf %279, %278 : vector<8x32xf32>
    %281 = arith.divf %279, %280 : vector<8x32xf32>
    %282 = arith.mulf %273, %211 : vector<8x32xf32>
    %283 = arith.mulf %267, %275 : vector<8x32xf32>
    %284 = arith.addf %282, %283 : vector<8x32xf32>
    %285 = math.tanh %284 : vector<8x32xf32>
    %286 = arith.mulf %281, %285 : vector<8x32xf32>
    %287 = arith.index_cast %c3_i32 : i32 to index
    %c0_65 = arith.constant 0 : index
    %c0_66 = arith.constant 0 : index
    %288 = vector.load %arg6[%287, %c0_65, %c0_66] : memref<8x8x64xf32, #tpu.memory_space<vmem>>, vector<1x8x32xf32>
    %289 = vector.shape_cast %288 : vector<1x8x32xf32> to vector<8x32xf32>
    %290 = vector.shape_cast %261 : vector<8x32xf32> to vector<1x8x32xf32>
    tpu.vector_store %arg6[%287, %c0_65, %c0_66], %290 {strides = array<i32>} : memref<8x8x64xf32, #tpu.memory_space<vmem>>, vector<1x8x32xf32>,
    %291 = arith.index_cast %222 : i32 to index
    %c0_67 = arith.constant 0 : index
    %c32_68 = arith.constant 32 : index
    %292 = vector.load %arg6[%291, %c0_67, %c32_68] : memref<8x8x64xf32, #tpu.memory_space<vmem>>, vector<1x8x32xf32>
    %293 = vector.shape_cast %292 : vector<1x8x32xf32> to vector<8x32xf32>
    %294 = vector.shape_cast %286 : vector<8x32xf32> to vector<1x8x32xf32>
    tpu.vector_store %arg6[%291, %c0_67, %c32_68], %294 {strides = array<i32>} : memref<8x8x64xf32, #tpu.memory_space<vmem>>, vector<1x8x32xf32>,
    %c4_i32 = arith.constant 4 : i32
    %c7_i32_69 = arith.constant 7 : i32
    %295 = arith.subi %c7_i32_69, %c4_i32 : i32
    %296 = arith.index_cast %c4_i32 : i32 to index
    %c0_70 = arith.constant 0 : index
    %c0_71 = arith.constant 0 : index
    %297 = vector.load %arg0[%296, %c0_70, %c0_71] : memref<8x8x128xbf16, #tpu.memory_space<vmem>>, vector<1x8x128xbf16>
    %298 = vector.shape_cast %297 : vector<1x8x128xbf16> to vector<8x128xbf16>
    %299 = arith.extf %298 : vector<8x128xbf16> to vector<8x128xf32>
    %300 = arith.truncf %261 : vector<8x32xf32> to vector<8x32xbf16>
    %cst_72 = arith.constant dense<0.000000e+00> : vector<8x128xf32>
    %301 = tpu.matmul %300, %0, %cst_72 {dimension_numbers = #tpu.dot_dimension_numbers<[1], [0], [0], [1], [0, 0, 1, 1], [], []>} : vector<8x32xbf16>, vector<32x128xbf16>, vector<8x128xf32> -> vector<8x128xf32>
    %302 = arith.addf %299, %301 : vector<8x128xf32>
    %303 = arith.index_cast %295 : i32 to index
    %c0_73 = arith.constant 0 : index
    %c0_74 = arith.constant 0 : index
    %304 = vector.load %arg1[%303, %c0_73, %c0_74] : memref<8x8x128xbf16, #tpu.memory_space<vmem>>, vector<1x8x128xbf16>
    %305 = vector.shape_cast %304 : vector<1x8x128xbf16> to vector<8x128xbf16>
    %306 = arith.extf %305 : vector<8x128xbf16> to vector<8x128xf32>
    %307 = arith.truncf %286 : vector<8x32xf32> to vector<8x32xbf16>
    %cst_75 = arith.constant dense<0.000000e+00> : vector<8x128xf32>
    %308 = tpu.matmul %307, %1, %cst_75 {dimension_numbers = #tpu.dot_dimension_numbers<[1], [0], [0], [1], [0, 0, 1, 1], [], []>} : vector<8x32xbf16>, vector<32x128xbf16>, vector<8x128xf32> -> vector<8x128xf32>
    %309 = arith.addf %306, %308 : vector<8x128xf32>
    %310 = vector.extract_strided_slice %302 {offsets = [0, 0], sizes = [8, 32], strides = [1, 1]} : vector<8x128xf32> to vector<8x32xf32>
    %311 = arith.negf %310 : vector<8x32xf32>
    %312 = math.exp %311 : vector<8x32xf32>
    %cst_76 = arith.constant 1.000000e+00 : f32
    %313 = vector.broadcast %cst_76 : f32 to vector<8x32xf32>
    %314 = arith.addf %313, %312 : vector<8x32xf32>
    %315 = arith.divf %313, %314 : vector<8x32xf32>
    %316 = vector.extract_strided_slice %302 {offsets = [0, 32], sizes = [8, 32], strides = [1, 1]} : vector<8x128xf32> to vector<8x32xf32>
    %317 = arith.negf %316 : vector<8x32xf32>
    %318 = math.exp %317 : vector<8x32xf32>
    %cst_77 = arith.constant 1.000000e+00 : f32
    %319 = vector.broadcast %cst_77 : f32 to vector<8x32xf32>
    %320 = arith.addf %319, %318 : vector<8x32xf32>
    %321 = arith.divf %319, %320 : vector<8x32xf32>
    %322 = vector.extract_strided_slice %302 {offsets = [0, 64], sizes = [8, 32], strides = [1, 1]} : vector<8x128xf32> to vector<8x32xf32>
    %323 = math.tanh %322 : vector<8x32xf32>
    %324 = vector.extract_strided_slice %302 {offsets = [0, 96], sizes = [8, 32], strides = [1, 1]} : vector<8x128xf32> to vector<8x32xf32>
    %325 = arith.negf %324 : vector<8x32xf32>
    %326 = math.exp %325 : vector<8x32xf32>
    %cst_78 = arith.constant 1.000000e+00 : f32
    %327 = vector.broadcast %cst_78 : f32 to vector<8x32xf32>
    %328 = arith.addf %327, %326 : vector<8x32xf32>
    %329 = arith.divf %327, %328 : vector<8x32xf32>
    %330 = arith.mulf %321, %259 : vector<8x32xf32>
    %331 = arith.mulf %315, %323 : vector<8x32xf32>
    %332 = arith.addf %330, %331 : vector<8x32xf32>
    %333 = math.tanh %332 : vector<8x32xf32>
    %334 = arith.mulf %329, %333 : vector<8x32xf32>
    %335 = vector.extract_strided_slice %309 {offsets = [0, 0], sizes = [8, 32], strides = [1, 1]} : vector<8x128xf32> to vector<8x32xf32>
    %336 = arith.negf %335 : vector<8x32xf32>
    %337 = math.exp %336 : vector<8x32xf32>
    %cst_79 = arith.constant 1.000000e+00 : f32
    %338 = vector.broadcast %cst_79 : f32 to vector<8x32xf32>
    %339 = arith.addf %338, %337 : vector<8x32xf32>
    %340 = arith.divf %338, %339 : vector<8x32xf32>
    %341 = vector.extract_strided_slice %309 {offsets = [0, 32], sizes = [8, 32], strides = [1, 1]} : vector<8x128xf32> to vector<8x32xf32>
    %342 = arith.negf %341 : vector<8x32xf32>
    %343 = math.exp %342 : vector<8x32xf32>
    %cst_80 = arith.constant 1.000000e+00 : f32
    %344 = vector.broadcast %cst_80 : f32 to vector<8x32xf32>
    %345 = arith.addf %344, %343 : vector<8x32xf32>
    %346 = arith.divf %344, %345 : vector<8x32xf32>
    %347 = vector.extract_strided_slice %309 {offsets = [0, 64], sizes = [8, 32], strides = [1, 1]} : vector<8x128xf32> to vector<8x32xf32>
    %348 = math.tanh %347 : vector<8x32xf32>
    %349 = vector.extract_strided_slice %309 {offsets = [0, 96], sizes = [8, 32], strides = [1, 1]} : vector<8x128xf32> to vector<8x32xf32>
    %350 = arith.negf %349 : vector<8x32xf32>
    %351 = math.exp %350 : vector<8x32xf32>
    %cst_81 = arith.constant 1.000000e+00 : f32
    %352 = vector.broadcast %cst_81 : f32 to vector<8x32xf32>
    %353 = arith.addf %352, %351 : vector<8x32xf32>
    %354 = arith.divf %352, %353 : vector<8x32xf32>
    %355 = arith.mulf %346, %284 : vector<8x32xf32>
    %356 = arith.mulf %340, %348 : vector<8x32xf32>
    %357 = arith.addf %355, %356 : vector<8x32xf32>
    %358 = math.tanh %357 : vector<8x32xf32>
    %359 = arith.mulf %354, %358 : vector<8x32xf32>
    %360 = arith.index_cast %c4_i32 : i32 to index
    %c0_82 = arith.constant 0 : index
    %c0_83 = arith.constant 0 : index
    %361 = vector.load %arg6[%360, %c0_82, %c0_83] : memref<8x8x64xf32, #tpu.memory_space<vmem>>, vector<1x8x32xf32>
    %362 = vector.shape_cast %361 : vector<1x8x32xf32> to vector<8x32xf32>
    %363 = vector.shape_cast %334 : vector<8x32xf32> to vector<1x8x32xf32>
    tpu.vector_store %arg6[%360, %c0_82, %c0_83], %363 {strides = array<i32>} : memref<8x8x64xf32, #tpu.memory_space<vmem>>, vector<1x8x32xf32>,
    %364 = arith.index_cast %295 : i32 to index
    %c0_84 = arith.constant 0 : index
    %c32_85 = arith.constant 32 : index
    %365 = vector.load %arg6[%364, %c0_84, %c32_85] : memref<8x8x64xf32, #tpu.memory_space<vmem>>, vector<1x8x32xf32>
    %366 = vector.shape_cast %365 : vector<1x8x32xf32> to vector<8x32xf32>
    %367 = vector.shape_cast %359 : vector<8x32xf32> to vector<1x8x32xf32>
    tpu.vector_store %arg6[%364, %c0_84, %c32_85], %367 {strides = array<i32>} : memref<8x8x64xf32, #tpu.memory_space<vmem>>, vector<1x8x32xf32>,
    %c5_i32 = arith.constant 5 : i32
    %c7_i32_86 = arith.constant 7 : i32
    %368 = arith.subi %c7_i32_86, %c5_i32 : i32
    %369 = arith.index_cast %c5_i32 : i32 to index
    %c0_87 = arith.constant 0 : index
    %c0_88 = arith.constant 0 : index
    %370 = vector.load %arg0[%369, %c0_87, %c0_88] : memref<8x8x128xbf16, #tpu.memory_space<vmem>>, vector<1x8x128xbf16>
    %371 = vector.shape_cast %370 : vector<1x8x128xbf16> to vector<8x128xbf16>
    %372 = arith.extf %371 : vector<8x128xbf16> to vector<8x128xf32>
    %373 = arith.truncf %334 : vector<8x32xf32> to vector<8x32xbf16>
    %cst_89 = arith.constant dense<0.000000e+00> : vector<8x128xf32>
    %374 = tpu.matmul %373, %0, %cst_89 {dimension_numbers = #tpu.dot_dimension_numbers<[1], [0], [0], [1], [0, 0, 1, 1], [], []>} : vector<8x32xbf16>, vector<32x128xbf16>, vector<8x128xf32> -> vector<8x128xf32>
    %375 = arith.addf %372, %374 : vector<8x128xf32>
    %376 = arith.index_cast %368 : i32 to index
    %c0_90 = arith.constant 0 : index
    %c0_91 = arith.constant 0 : index
    %377 = vector.load %arg1[%376, %c0_90, %c0_91] : memref<8x8x128xbf16, #tpu.memory_space<vmem>>, vector<1x8x128xbf16>
    %378 = vector.shape_cast %377 : vector<1x8x128xbf16> to vector<8x128xbf16>
    %379 = arith.extf %378 : vector<8x128xbf16> to vector<8x128xf32>
    %380 = arith.truncf %359 : vector<8x32xf32> to vector<8x32xbf16>
    %cst_92 = arith.constant dense<0.000000e+00> : vector<8x128xf32>
    %381 = tpu.matmul %380, %1, %cst_92 {dimension_numbers = #tpu.dot_dimension_numbers<[1], [0], [0], [1], [0, 0, 1, 1], [], []>} : vector<8x32xbf16>, vector<32x128xbf16>, vector<8x128xf32> -> vector<8x128xf32>
    %382 = arith.addf %379, %381 : vector<8x128xf32>
    %383 = vector.extract_strided_slice %375 {offsets = [0, 0], sizes = [8, 32], strides = [1, 1]} : vector<8x128xf32> to vector<8x32xf32>
    %384 = arith.negf %383 : vector<8x32xf32>
    %385 = math.exp %384 : vector<8x32xf32>
    %cst_93 = arith.constant 1.000000e+00 : f32
    %386 = vector.broadcast %cst_93 : f32 to vector<8x32xf32>
    %387 = arith.addf %386, %385 : vector<8x32xf32>
    %388 = arith.divf %386, %387 : vector<8x32xf32>
    %389 = vector.extract_strided_slice %375 {offsets = [0, 32], sizes = [8, 32], strides = [1, 1]} : vector<8x128xf32> to vector<8x32xf32>
    %390 = arith.negf %389 : vector<8x32xf32>
    %391 = math.exp %390 : vector<8x32xf32>
    %cst_94 = arith.constant 1.000000e+00 : f32
    %392 = vector.broadcast %cst_94 : f32 to vector<8x32xf32>
    %393 = arith.addf %392, %391 : vector<8x32xf32>
    %394 = arith.divf %392, %393 : vector<8x32xf32>
    %395 = vector.extract_strided_slice %375 {offsets = [0, 64], sizes = [8, 32], strides = [1, 1]} : vector<8x128xf32> to vector<8x32xf32>
    %396 = math.tanh %395 : vector<8x32xf32>
    %397 = vector.extract_strided_slice %375 {offsets = [0, 96], sizes = [8, 32], strides = [1, 1]} : vector<8x128xf32> to vector<8x32xf32>
    %398 = arith.negf %397 : vector<8x32xf32>
    %399 = math.exp %398 : vector<8x32xf32>
    %cst_95 = arith.constant 1.000000e+00 : f32
    %400 = vector.broadcast %cst_95 : f32 to vector<8x32xf32>
    %401 = arith.addf %400, %399 : vector<8x32xf32>
    %402 = arith.divf %400, %401 : vector<8x32xf32>
    %403 = arith.mulf %394, %332 : vector<8x32xf32>
    %404 = arith.mulf %388, %396 : vector<8x32xf32>
    %405 = arith.addf %403, %404 : vector<8x32xf32>
    %406 = math.tanh %405 : vector<8x32xf32>
    %407 = arith.mulf %402, %406 : vector<8x32xf32>
    %408 = vector.extract_strided_slice %382 {offsets = [0, 0], sizes = [8, 32], strides = [1, 1]} : vector<8x128xf32> to vector<8x32xf32>
    %409 = arith.negf %408 : vector<8x32xf32>
    %410 = math.exp %409 : vector<8x32xf32>
    %cst_96 = arith.constant 1.000000e+00 : f32
    %411 = vector.broadcast %cst_96 : f32 to vector<8x32xf32>
    %412 = arith.addf %411, %410 : vector<8x32xf32>
    %413 = arith.divf %411, %412 : vector<8x32xf32>
    %414 = vector.extract_strided_slice %382 {offsets = [0, 32], sizes = [8, 32], strides = [1, 1]} : vector<8x128xf32> to vector<8x32xf32>
    %415 = arith.negf %414 : vector<8x32xf32>
    %416 = math.exp %415 : vector<8x32xf32>
    %cst_97 = arith.constant 1.000000e+00 : f32
    %417 = vector.broadcast %cst_97 : f32 to vector<8x32xf32>
    %418 = arith.addf %417, %416 : vector<8x32xf32>
    %419 = arith.divf %417, %418 : vector<8x32xf32>
    %420 = vector.extract_strided_slice %382 {offsets = [0, 64], sizes = [8, 32], strides = [1, 1]} : vector<8x128xf32> to vector<8x32xf32>
    %421 = math.tanh %420 : vector<8x32xf32>
    %422 = vector.extract_strided_slice %382 {offsets = [0, 96], sizes = [8, 32], strides = [1, 1]} : vector<8x128xf32> to vector<8x32xf32>
    %423 = arith.negf %422 : vector<8x32xf32>
    %424 = math.exp %423 : vector<8x32xf32>
    %cst_98 = arith.constant 1.000000e+00 : f32
    %425 = vector.broadcast %cst_98 : f32 to vector<8x32xf32>
    %426 = arith.addf %425, %424 : vector<8x32xf32>
    %427 = arith.divf %425, %426 : vector<8x32xf32>
    %428 = arith.mulf %419, %357 : vector<8x32xf32>
    %429 = arith.mulf %413, %421 : vector<8x32xf32>
    %430 = arith.addf %428, %429 : vector<8x32xf32>
    %431 = math.tanh %430 : vector<8x32xf32>
    %432 = arith.mulf %427, %431 : vector<8x32xf32>
    %433 = arith.index_cast %c5_i32 : i32 to index
    %c0_99 = arith.constant 0 : index
    %c0_100 = arith.constant 0 : index
    %434 = vector.load %arg6[%433, %c0_99, %c0_100] : memref<8x8x64xf32, #tpu.memory_space<vmem>>, vector<1x8x32xf32>
    %435 = vector.shape_cast %434 : vector<1x8x32xf32> to vector<8x32xf32>
    %436 = vector.shape_cast %407 : vector<8x32xf32> to vector<1x8x32xf32>
    tpu.vector_store %arg6[%433, %c0_99, %c0_100], %436 {strides = array<i32>} : memref<8x8x64xf32, #tpu.memory_space<vmem>>, vector<1x8x32xf32>,
    %437 = arith.index_cast %368 : i32 to index
    %c0_101 = arith.constant 0 : index
    %c32_102 = arith.constant 32 : index
    %438 = vector.load %arg6[%437, %c0_101, %c32_102] : memref<8x8x64xf32, #tpu.memory_space<vmem>>, vector<1x8x32xf32>
    %439 = vector.shape_cast %438 : vector<1x8x32xf32> to vector<8x32xf32>
    %440 = vector.shape_cast %432 : vector<8x32xf32> to vector<1x8x32xf32>
    tpu.vector_store %arg6[%437, %c0_101, %c32_102], %440 {strides = array<i32>} : memref<8x8x64xf32, #tpu.memory_space<vmem>>, vector<1x8x32xf32>,
    %c6_i32 = arith.constant 6 : i32
    %c7_i32_103 = arith.constant 7 : i32
    %441 = arith.subi %c7_i32_103, %c6_i32 : i32
    %442 = arith.index_cast %c6_i32 : i32 to index
    %c0_104 = arith.constant 0 : index
    %c0_105 = arith.constant 0 : index
    %443 = vector.load %arg0[%442, %c0_104, %c0_105] : memref<8x8x128xbf16, #tpu.memory_space<vmem>>, vector<1x8x128xbf16>
    %444 = vector.shape_cast %443 : vector<1x8x128xbf16> to vector<8x128xbf16>
    %445 = arith.extf %444 : vector<8x128xbf16> to vector<8x128xf32>
    %446 = arith.truncf %407 : vector<8x32xf32> to vector<8x32xbf16>
    %cst_106 = arith.constant dense<0.000000e+00> : vector<8x128xf32>
    %447 = tpu.matmul %446, %0, %cst_106 {dimension_numbers = #tpu.dot_dimension_numbers<[1], [0], [0], [1], [0, 0, 1, 1], [], []>} : vector<8x32xbf16>, vector<32x128xbf16>, vector<8x128xf32> -> vector<8x128xf32>
    %448 = arith.addf %445, %447 : vector<8x128xf32>
    %449 = arith.index_cast %441 : i32 to index
    %c0_107 = arith.constant 0 : index
    %c0_108 = arith.constant 0 : index
    %450 = vector.load %arg1[%449, %c0_107, %c0_108] : memref<8x8x128xbf16, #tpu.memory_space<vmem>>, vector<1x8x128xbf16>
    %451 = vector.shape_cast %450 : vector<1x8x128xbf16> to vector<8x128xbf16>
    %452 = arith.extf %451 : vector<8x128xbf16> to vector<8x128xf32>
    %453 = arith.truncf %432 : vector<8x32xf32> to vector<8x32xbf16>
    %cst_109 = arith.constant dense<0.000000e+00> : vector<8x128xf32>
    %454 = tpu.matmul %453, %1, %cst_109 {dimension_numbers = #tpu.dot_dimension_numbers<[1], [0], [0], [1], [0, 0, 1, 1], [], []>} : vector<8x32xbf16>, vector<32x128xbf16>, vector<8x128xf32> -> vector<8x128xf32>
    %455 = arith.addf %452, %454 : vector<8x128xf32>
    %456 = vector.extract_strided_slice %448 {offsets = [0, 0], sizes = [8, 32], strides = [1, 1]} : vector<8x128xf32> to vector<8x32xf32>
    %457 = arith.negf %456 : vector<8x32xf32>
    %458 = math.exp %457 : vector<8x32xf32>
    %cst_110 = arith.constant 1.000000e+00 : f32
    %459 = vector.broadcast %cst_110 : f32 to vector<8x32xf32>
    %460 = arith.addf %459, %458 : vector<8x32xf32>
    %461 = arith.divf %459, %460 : vector<8x32xf32>
    %462 = vector.extract_strided_slice %448 {offsets = [0, 32], sizes = [8, 32], strides = [1, 1]} : vector<8x128xf32> to vector<8x32xf32>
    %463 = arith.negf %462 : vector<8x32xf32>
    %464 = math.exp %463 : vector<8x32xf32>
    %cst_111 = arith.constant 1.000000e+00 : f32
    %465 = vector.broadcast %cst_111 : f32 to vector<8x32xf32>
    %466 = arith.addf %465, %464 : vector<8x32xf32>
    %467 = arith.divf %465, %466 : vector<8x32xf32>
    %468 = vector.extract_strided_slice %448 {offsets = [0, 64], sizes = [8, 32], strides = [1, 1]} : vector<8x128xf32> to vector<8x32xf32>
    %469 = math.tanh %468 : vector<8x32xf32>
    %470 = vector.extract_strided_slice %448 {offsets = [0, 96], sizes = [8, 32], strides = [1, 1]} : vector<8x128xf32> to vector<8x32xf32>
    %471 = arith.negf %470 : vector<8x32xf32>
    %472 = math.exp %471 : vector<8x32xf32>
    %cst_112 = arith.constant 1.000000e+00 : f32
    %473 = vector.broadcast %cst_112 : f32 to vector<8x32xf32>
    %474 = arith.addf %473, %472 : vector<8x32xf32>
    %475 = arith.divf %473, %474 : vector<8x32xf32>
    %476 = arith.mulf %467, %405 : vector<8x32xf32>
    %477 = arith.mulf %461, %469 : vector<8x32xf32>
    %478 = arith.addf %476, %477 : vector<8x32xf32>
    %479 = math.tanh %478 : vector<8x32xf32>
    %480 = arith.mulf %475, %479 : vector<8x32xf32>
    %481 = vector.extract_strided_slice %455 {offsets = [0, 0], sizes = [8, 32], strides = [1, 1]} : vector<8x128xf32> to vector<8x32xf32>
    %482 = arith.negf %481 : vector<8x32xf32>
    %483 = math.exp %482 : vector<8x32xf32>
    %cst_113 = arith.constant 1.000000e+00 : f32
    %484 = vector.broadcast %cst_113 : f32 to vector<8x32xf32>
    %485 = arith.addf %484, %483 : vector<8x32xf32>
    %486 = arith.divf %484, %485 : vector<8x32xf32>
    %487 = vector.extract_strided_slice %455 {offsets = [0, 32], sizes = [8, 32], strides = [1, 1]} : vector<8x128xf32> to vector<8x32xf32>
    %488 = arith.negf %487 : vector<8x32xf32>
    %489 = math.exp %488 : vector<8x32xf32>
    %cst_114 = arith.constant 1.000000e+00 : f32
    %490 = vector.broadcast %cst_114 : f32 to vector<8x32xf32>
    %491 = arith.addf %490, %489 : vector<8x32xf32>
    %492 = arith.divf %490, %491 : vector<8x32xf32>
    %493 = vector.extract_strided_slice %455 {offsets = [0, 64], sizes = [8, 32], strides = [1, 1]} : vector<8x128xf32> to vector<8x32xf32>
    %494 = math.tanh %493 : vector<8x32xf32>
    %495 = vector.extract_strided_slice %455 {offsets = [0, 96], sizes = [8, 32], strides = [1, 1]} : vector<8x128xf32> to vector<8x32xf32>
    %496 = arith.negf %495 : vector<8x32xf32>
    %497 = math.exp %496 : vector<8x32xf32>
    %cst_115 = arith.constant 1.000000e+00 : f32
    %498 = vector.broadcast %cst_115 : f32 to vector<8x32xf32>
    %499 = arith.addf %498, %497 : vector<8x32xf32>
    %500 = arith.divf %498, %499 : vector<8x32xf32>
    %501 = arith.mulf %492, %430 : vector<8x32xf32>
    %502 = arith.mulf %486, %494 : vector<8x32xf32>
    %503 = arith.addf %501, %502 : vector<8x32xf32>
    %504 = math.tanh %503 : vector<8x32xf32>
    %505 = arith.mulf %500, %504 : vector<8x32xf32>
    %506 = arith.index_cast %c6_i32 : i32 to index
    %c0_116 = arith.constant 0 : index
    %c0_117 = arith.constant 0 : index
    %507 = vector.load %arg6[%506, %c0_116, %c0_117] : memref<8x8x64xf32, #tpu.memory_space<vmem>>, vector<1x8x32xf32>
    %508 = vector.shape_cast %507 : vector<1x8x32xf32> to vector<8x32xf32>
    %509 = vector.shape_cast %480 : vector<8x32xf32> to vector<1x8x32xf32>
    tpu.vector_store %arg6[%506, %c0_116, %c0_117], %509 {strides = array<i32>} : memref<8x8x64xf32, #tpu.memory_space<vmem>>, vector<1x8x32xf32>,
    %510 = arith.index_cast %441 : i32 to index
    %c0_118 = arith.constant 0 : index
    %c32_119 = arith.constant 32 : index
    %511 = vector.load %arg6[%510, %c0_118, %c32_119] : memref<8x8x64xf32, #tpu.memory_space<vmem>>, vector<1x8x32xf32>
    %512 = vector.shape_cast %511 : vector<1x8x32xf32> to vector<8x32xf32>
    %513 = vector.shape_cast %505 : vector<8x32xf32> to vector<1x8x32xf32>
    tpu.vector_store %arg6[%510, %c0_118, %c32_119], %513 {strides = array<i32>} : memref<8x8x64xf32, #tpu.memory_space<vmem>>, vector<1x8x32xf32>,
    %c7_i32_120 = arith.constant 7 : i32
    %c7_i32_121 = arith.constant 7 : i32
    %514 = arith.subi %c7_i32_121, %c7_i32_120 : i32
    %515 = arith.index_cast %c7_i32_120 : i32 to index
    %c0_122 = arith.constant 0 : index
    %c0_123 = arith.constant 0 : index
    %516 = vector.load %arg0[%515, %c0_122, %c0_123] : memref<8x8x128xbf16, #tpu.memory_space<vmem>>, vector<1x8x128xbf16>
    %517 = vector.shape_cast %516 : vector<1x8x128xbf16> to vector<8x128xbf16>
    %518 = arith.extf %517 : vector<8x128xbf16> to vector<8x128xf32>
    %519 = arith.truncf %480 : vector<8x32xf32> to vector<8x32xbf16>
    %cst_124 = arith.constant dense<0.000000e+00> : vector<8x128xf32>
    %520 = tpu.matmul %519, %0, %cst_124 {dimension_numbers = #tpu.dot_dimension_numbers<[1], [0], [0], [1], [0, 0, 1, 1], [], []>} : vector<8x32xbf16>, vector<32x128xbf16>, vector<8x128xf32> -> vector<8x128xf32>
    %521 = arith.addf %518, %520 : vector<8x128xf32>
    %522 = arith.index_cast %514 : i32 to index
    %c0_125 = arith.constant 0 : index
    %c0_126 = arith.constant 0 : index
    %523 = vector.load %arg1[%522, %c0_125, %c0_126] : memref<8x8x128xbf16, #tpu.memory_space<vmem>>, vector<1x8x128xbf16>
    %524 = vector.shape_cast %523 : vector<1x8x128xbf16> to vector<8x128xbf16>
    %525 = arith.extf %524 : vector<8x128xbf16> to vector<8x128xf32>
    %526 = arith.truncf %505 : vector<8x32xf32> to vector<8x32xbf16>
    %cst_127 = arith.constant dense<0.000000e+00> : vector<8x128xf32>
    %527 = tpu.matmul %526, %1, %cst_127 {dimension_numbers = #tpu.dot_dimension_numbers<[1], [0], [0], [1], [0, 0, 1, 1], [], []>} : vector<8x32xbf16>, vector<32x128xbf16>, vector<8x128xf32> -> vector<8x128xf32>
    %528 = arith.addf %525, %527 : vector<8x128xf32>
    %529 = vector.extract_strided_slice %521 {offsets = [0, 0], sizes = [8, 32], strides = [1, 1]} : vector<8x128xf32> to vector<8x32xf32>
    %530 = arith.negf %529 : vector<8x32xf32>
    %531 = math.exp %530 : vector<8x32xf32>
    %cst_128 = arith.constant 1.000000e+00 : f32
    %532 = vector.broadcast %cst_128 : f32 to vector<8x32xf32>
    %533 = arith.addf %532, %531 : vector<8x32xf32>
    %534 = arith.divf %532, %533 : vector<8x32xf32>
    %535 = vector.extract_strided_slice %521 {offsets = [0, 32], sizes = [8, 32], strides = [1, 1]} : vector<8x128xf32> to vector<8x32xf32>
    %536 = arith.negf %535 : vector<8x32xf32>
    %537 = math.exp %536 : vector<8x32xf32>
    %cst_129 = arith.constant 1.000000e+00 : f32
    %538 = vector.broadcast %cst_129 : f32 to vector<8x32xf32>
    %539 = arith.addf %538, %537 : vector<8x32xf32>
    %540 = arith.divf %538, %539 : vector<8x32xf32>
    %541 = vector.extract_strided_slice %521 {offsets = [0, 64], sizes = [8, 32], strides = [1, 1]} : vector<8x128xf32> to vector<8x32xf32>
    %542 = math.tanh %541 : vector<8x32xf32>
    %543 = vector.extract_strided_slice %521 {offsets = [0, 96], sizes = [8, 32], strides = [1, 1]} : vector<8x128xf32> to vector<8x32xf32>
    %544 = arith.negf %543 : vector<8x32xf32>
    %545 = math.exp %544 : vector<8x32xf32>
    %cst_130 = arith.constant 1.000000e+00 : f32
    %546 = vector.broadcast %cst_130 : f32 to vector<8x32xf32>
    %547 = arith.addf %546, %545 : vector<8x32xf32>
    %548 = arith.divf %546, %547 : vector<8x32xf32>
    %549 = arith.mulf %540, %478 : vector<8x32xf32>
    %550 = arith.mulf %534, %542 : vector<8x32xf32>
    %551 = arith.addf %549, %550 : vector<8x32xf32>
    %552 = math.tanh %551 : vector<8x32xf32>
    %553 = arith.mulf %548, %552 : vector<8x32xf32>
    %554 = vector.extract_strided_slice %528 {offsets = [0, 0], sizes = [8, 32], strides = [1, 1]} : vector<8x128xf32> to vector<8x32xf32>
    %555 = arith.negf %554 : vector<8x32xf32>
    %556 = math.exp %555 : vector<8x32xf32>
    %cst_131 = arith.constant 1.000000e+00 : f32
    %557 = vector.broadcast %cst_131 : f32 to vector<8x32xf32>
    %558 = arith.addf %557, %556 : vector<8x32xf32>
    %559 = arith.divf %557, %558 : vector<8x32xf32>
    %560 = vector.extract_strided_slice %528 {offsets = [0, 32], sizes = [8, 32], strides = [1, 1]} : vector<8x128xf32> to vector<8x32xf32>
    %561 = arith.negf %560 : vector<8x32xf32>
    %562 = math.exp %561 : vector<8x32xf32>
    %cst_132 = arith.constant 1.000000e+00 : f32
    %563 = vector.broadcast %cst_132 : f32 to vector<8x32xf32>
    %564 = arith.addf %563, %562 : vector<8x32xf32>
    %565 = arith.divf %563, %564 : vector<8x32xf32>
    %566 = vector.extract_strided_slice %528 {offsets = [0, 64], sizes = [8, 32], strides = [1, 1]} : vector<8x128xf32> to vector<8x32xf32>
    %567 = math.tanh %566 : vector<8x32xf32>
    %568 = vector.extract_strided_slice %528 {offsets = [0, 96], sizes = [8, 32], strides = [1, 1]} : vector<8x128xf32> to vector<8x32xf32>
    %569 = arith.negf %568 : vector<8x32xf32>
    %570 = math.exp %569 : vector<8x32xf32>
    %cst_133 = arith.constant 1.000000e+00 : f32
    %571 = vector.broadcast %cst_133 : f32 to vector<8x32xf32>
    %572 = arith.addf %571, %570 : vector<8x32xf32>
    %573 = arith.divf %571, %572 : vector<8x32xf32>
    %574 = arith.mulf %565, %503 : vector<8x32xf32>
    %575 = arith.mulf %559, %567 : vector<8x32xf32>
    %576 = arith.addf %574, %575 : vector<8x32xf32>
    %577 = math.tanh %576 : vector<8x32xf32>
    %578 = arith.mulf %573, %577 : vector<8x32xf32>
    %579 = arith.index_cast %c7_i32_120 : i32 to index
    %c0_134 = arith.constant 0 : index
    %c0_135 = arith.constant 0 : index
    %580 = vector.load %arg6[%579, %c0_134, %c0_135] : memref<8x8x64xf32, #tpu.memory_space<vmem>>, vector<1x8x32xf32>
    %581 = vector.shape_cast %580 : vector<1x8x32xf32> to vector<8x32xf32>
    %582 = vector.shape_cast %553 : vector<8x32xf32> to vector<1x8x32xf32>
    tpu.vector_store %arg6[%579, %c0_134, %c0_135], %582 {strides = array<i32>} : memref<8x8x64xf32, #tpu.memory_space<vmem>>, vector<1x8x32xf32>,
    %583 = arith.index_cast %514 : i32 to index
    %c0_136 = arith.constant 0 : index
    %c32_137 = arith.constant 32 : index
    %584 = vector.load %arg6[%583, %c0_136, %c32_137] : memref<8x8x64xf32, #tpu.memory_space<vmem>>, vector<1x8x32xf32>
    %585 = vector.shape_cast %584 : vector<1x8x32xf32> to vector<8x32xf32>
    %586 = vector.shape_cast %578 : vector<8x32xf32> to vector<1x8x32xf32>
    tpu.vector_store %arg6[%583, %c0_136, %c32_137], %586 {strides = array<i32>} : memref<8x8x64xf32, #tpu.memory_space<vmem>>, vector<1x8x32xf32>,
    %c8_i32 = arith.constant 8 : i32
    %c0_138 = arith.constant 0 : index
    %c0_139 = arith.constant 0 : index
    %c0_140 = arith.constant 0 : index
    %587 = vector.load %arg7[%c0_138, %c0_139, %c0_140] : memref<2x8x32xf32, #tpu.memory_space<vmem>>, vector<1x8x32xf32>
    %588 = vector.shape_cast %587 : vector<1x8x32xf32> to vector<8x32xf32>
    %589 = vector.shape_cast %553 : vector<8x32xf32> to vector<1x8x32xf32>
    tpu.vector_store %arg7[%c0_138, %c0_139, %c0_140], %589 {strides = array<i32>} : memref<2x8x32xf32, #tpu.memory_space<vmem>>, vector<1x8x32xf32>,
    %c1 = arith.constant 1 : index
    %c0_141 = arith.constant 0 : index
    %c0_142 = arith.constant 0 : index
    %590 = vector.load %arg7[%c1, %c0_141, %c0_142] : memref<2x8x32xf32, #tpu.memory_space<vmem>>, vector<1x8x32xf32>
    %591 = vector.shape_cast %590 : vector<1x8x32xf32> to vector<8x32xf32>
    %592 = vector.shape_cast %578 : vector<8x32xf32> to vector<1x8x32xf32>
    tpu.vector_store %arg7[%c1, %c0_141, %c0_142], %592 {strides = array<i32>} : memref<2x8x32xf32, #tpu.memory_space<vmem>>, vector<1x8x32xf32>,
    %c0_143 = arith.constant 0 : index
    %c0_144 = arith.constant 0 : index
    %c0_145 = arith.constant 0 : index
    %593 = vector.load %arg8[%c0_143, %c0_144, %c0_145] : memref<2x8x32xf32, #tpu.memory_space<vmem>>, vector<1x8x32xf32>
    %594 = vector.shape_cast %593 : vector<1x8x32xf32> to vector<8x32xf32>
    %595 = vector.shape_cast %551 : vector<8x32xf32> to vector<1x8x32xf32>
    tpu.vector_store %arg8[%c0_143, %c0_144, %c0_145], %595 {strides = array<i32>} : memref<2x8x32xf32, #tpu.memory_space<vmem>>, vector<1x8x32xf32>,
    %c1_146 = arith.constant 1 : index
    %c0_147 = arith.constant 0 : index
    %c0_148 = arith.constant 0 : index
    %596 = vector.load %arg8[%c1_146, %c0_147, %c0_148] : memref<2x8x32xf32, #tpu.memory_space<vmem>>, vector<1x8x32xf32>
    %597 = vector.shape_cast %596 : vector<1x8x32xf32> to vector<8x32xf32>
    %598 = vector.shape_cast %576 : vector<8x32xf32> to vector<1x8x32xf32>
    tpu.vector_store %arg8[%c1_146, %c0_147, %c0_148], %598 {strides = array<i32>} : memref<2x8x32xf32, #tpu.memory_space<vmem>>, vector<1x8x32xf32>,
    %c0_149 = arith.constant 0 : index
    %c0_150 = arith.constant 0 : index
    %c0_151 = arith.constant 0 : index
    %599 = vector.load %arg6[%c0_149, %c0_150, %c0_151] : memref<8x8x64xf32, #tpu.memory_space<vmem>>, vector<8x8x64xf32>
    %cst_152 = arith.constant dense<0.000000e+00> : vector<8x8xf32>
    %600 = vector.multi_reduction <add>, %599, %cst_152 [2] : vector<8x8x64xf32> to vector<8x8xf32>
    %601 = vector.shape_cast %600 : vector<8x8xf32> to vector<8x8x1xf32>
    %cst_153 = arith.constant 6.400000e+01 : f32
    %602 = vector.broadcast %cst_153 : f32 to vector<8x8x1xf32>
    %603 = arith.divf %601, %602 : vector<8x8x1xf32>
    %604 = vector.broadcast %603 : vector<8x8x1xf32> to vector<8x8x64xf32>
    %605 = arith.subf %599, %604 : vector<8x8x64xf32>
    %606 = arith.mulf %605, %605 : vector<8x8x64xf32>
    %cst_154 = arith.constant dense<0.000000e+00> : vector<8x8xf32>
    %607 = vector.multi_reduction <add>, %606, %cst_154 [2] : vector<8x8x64xf32> to vector<8x8xf32>
    %608 = vector.shape_cast %607 : vector<8x8xf32> to vector<8x8x1xf32>
    %cst_155 = arith.constant 6.400000e+01 : f32
    %609 = vector.broadcast %cst_155 : f32 to vector<8x8x1xf32>
    %610 = arith.divf %608, %609 : vector<8x8x1xf32>
    %611 = vector.broadcast %603 : vector<8x8x1xf32> to vector<8x8x64xf32>
    %612 = arith.subf %599, %611 : vector<8x8x64xf32>
    %cst_156 = arith.constant 9.99999974E-6 : f32
    %613 = vector.broadcast %cst_156 : f32 to vector<8x8x1xf32>
    %614 = arith.addf %610, %613 : vector<8x8x1xf32>
    %615 = math.rsqrt %614 : vector<8x8x1xf32>
    %616 = vector.broadcast %615 : vector<8x8x1xf32> to vector<8x8x64xf32>
    %617 = arith.mulf %612, %616 : vector<8x8x64xf32>
    %c0_157 = arith.constant 0 : index
    %c0_158 = arith.constant 0 : index
    %c0_159 = arith.constant 0 : index
    %618 = vector.load %arg4[%c0_157, %c0_158, %c0_159] : memref<1x1x64xf32, #tpu.memory_space<vmem>>, vector<1x1x64xf32>
    %619 = vector.broadcast %618 : vector<1x1x64xf32> to vector<8x8x64xf32>
    %620 = arith.mulf %617, %619 : vector<8x8x64xf32>
    %c0_160 = arith.constant 0 : index
    %c0_161 = arith.constant 0 : index
    %c0_162 = arith.constant 0 : index
    %621 = vector.load %arg5[%c0_160, %c0_161, %c0_162] : memref<1x1x64xf32, #tpu.memory_space<vmem>>, vector<1x1x64xf32>
    %622 = vector.broadcast %621 : vector<1x1x64xf32> to vector<8x8x64xf32>
    %623 = arith.addf %620, %622 : vector<8x8x64xf32>
    %c0_163 = arith.constant 0 : index
    %c0_164 = arith.constant 0 : index
    %c0_165 = arith.constant 0 : index
    %624 = vector.load %arg6[%c0_163, %c0_164, %c0_165] : memref<8x8x64xf32, #tpu.memory_space<vmem>>, vector<8x8x64xf32>
    tpu.vector_store %arg6[%c0_163, %c0_164, %c0_165], %623 {strides = array<i32>} : memref<8x8x64xf32, #tpu.memory_space<vmem>>, vector<8x8x64xf32>,
    return
  }
}

</mosaic_0001>

<bundles_post_ra>
// kernel: sandhi_encoder_forward.6
= control target key start
LH: loop header
LB: loop body
LE: loop exit
PB: predicated region body
PF: predicated region fallthrough
CT: control target
= control target key end

     0   :  { %v398_v1 = vmov 0   ;;  %vm105_vm0 = vcmask 523264   ;;  %v35_v13 = vlaneseq  ;;  %s487_s1 = inlined_call_operand.vmem [shape: bf16[64,256], index: 1, kind: input, shape index: {}]   ;;  %s488_s0 = inlined_call_operand.vmem [shape: bf16[64,64], index: 0, kind: input, shape index: {}]   ;;  %s489_s2 = inlined_call_operand.vmem [shape: f32[1,256], index: 2, kind: input, shape index: {}]   ;;  %s490_s3 = inlined_call_operand.vmem [shape: bf16[64,128], index: 3, kind: output, shape index: {0}]   ;;  %s491_s4 = inlined_call_operand.vmem [shape: bf16[64,128], index: 4, kind: output, shape index: {1}]  }
   0x1   :  { %v382_v0 = vld [vmem:[%s487_s1 + $0x4] ss:$8 sps:$4 sm:$0xff]   ;;  %150 = vmatprep.mubr.bf16.mxu0 %v398_v1  ;;  %170 = vmatprep.mubr.bf16.mxu1 %v398_v1  ;;  %v384_v2 = vld [vmem:[%s487_s1] ss:$8 sps:$4 sm:$0xff]   ;;  %v385_v3 = vld [vmem:[%s487_s1 + $0x14] ss:$8 sps:$4 sm:$0xff]  }
   0x2   :  { %118 = vmatprep.subr.bf16.mxu0 %v382_v0  ;;  %373 = vmatprep.subr.bf16.mxu1 %v382_v0  ;;  %v387_v4 = vld [vmem:[%s487_s1 + $0x10] ss:$8 sps:$4 sm:$0xff]   ;;  %v388_v5 = vld [vmem:[%s487_s1 + $0x24] ss:$8 sps:$4 sm:$0xff]   ;;  %v390_v6 = vld [vmem:[%s487_s1 + $0x20] ss:$8 sps:$4 sm:$0xff]  }
   0x3   :  { %119 = vmatpush1.bf16.msra.mxu0 %v384_v2  ;;  %377 = vmatpush1.bf16.msra.mxu1 %v384_v2  ;;  %v391_v7 = vld [vmem:[%s487_s1 + $0x34] ss:$8 sps:$4 sm:$0xff]   ;;  %v393_v8 = vld [vmem:[%s487_s1 + $0x30] ss:$8 sps:$4 sm:$0xff]   ;;  %v394_v9 = vld [vmem:[%s488_s0] sm:$0xff]   ;;  %v36_v14 = vshrl.u32 %v35_v13, 7 }
   0x4   :  { %120 = vmatprep.subr.bf16.mxu0 %v385_v3  ;;  %374 = vmatprep.subr.bf16.mxu1 %v385_v3  ;;  %v395_v10 = vld [vmem:[%s488_s0 + $0x10] sm:$0xff]   ;;  %v396_v11 = vld [vmem:[%s488_s0 + $0x8] sm:$0xff]   ;;  %v397_v12 = vld [vmem:[%s488_s0 + $0x18] sm:$0xff]  }
   0x5   :  { %v37_v15 = vsub.s32 0, %v36_v14  ;;  %v33_v16 = vld [vmem:[%s489_s2] sm:$0x3]  ;;  %v41_v17 = vsub.s32 1, %v36_v14 }
   0x7   :  { %121 = vmatpush1.bf16.msra.mxu0 %v387_v4  ;;  %378 = vmatpush1.bf16.msra.mxu1 %v387_v4  ;;  %v38_v18 = vrot.slane %v33_v16, %v37_v15  ;;  %v42_v21 = vrot.slane %v33_v16, %v41_v17 }
   0x8   :  { %122 = vmatprep.subr.bf16.mxu0 %v388_v5  ;;  %375 = vmatprep.subr.bf16.mxu1 %v388_v5 }
   0xb   :  { %123 = vmatpush1.bf16.msra.mxu0 %v390_v6  ;;  %379 = vmatpush1.bf16.msra.mxu1 %v390_v6 }
   0xc   :  { %124 = vmatprep.subr.bf16.mxu0 %v391_v7  ;;  %376 = vmatprep.subr.bf16.mxu1 %v391_v7 }
   0xf   :  { %125 = vmatpush1.bf16.msra.mxu0 %v393_v8  ;;  %380 = vmatpush1.bf16.msra.mxu1 %v393_v8 }
  0x12   :  { %291 = vmatmul.mubr.msk.bf16.vlgmr.msra.gmra.mrb[0].mxu0 %vm105_vm0, %v394_v9  ;;  %293 = vmatmul.mubr.msk.bf16.vlgmr.msra.gmra.mrb[0].mxu1 %vm105_vm0, %v395_v10 }
  0x13   :  { %160 = vmatprep.mubr.bf16.mxu0 %v398_v1  ;;  %180 = vmatprep.mubr.bf16.mxu1 %v398_v1 }
  0x1a   :  { %292 = vmatmul.mubr.msk.bf16.gmra.mrb[4].mxu0 %vm105_vm0, %v396_v11  ;;  %294 = vmatmul.mubr.msk.bf16.gmra.mrb[4].mxu1 %vm105_vm0, %v397_v12 }
  0xe5   :  { %v152_v19 = vpop.f32.mrb[0].mxu0  ;;  %v172_v20 = vpop.f32.mrb[0].mxu1 }
  0xe6   :  { %v154_v22 = vpop.f32.mrb[1].mxu0  ;;  %v174_v23 = vpop.f32.mrb[1].mxu1  ;;  %v153_v26 = vadd.f32 %v152_v19, %v38_v18  ;;  %v173_v27 = vadd.f32 %v172_v20, %v38_v18 }
  0xe7   :  { %v156_v24 = vpop.f32.mrb[2].mxu0  ;;  %v176_v25 = vpop.f32.mrb[2].mxu1  ;;  %v155_v32 = vadd.f32 %v154_v22, %v42_v21  ;;  %v175_v33 = vadd.f32 %v174_v23, %v42_v21 }
  0xe8   :  { %v157_v28 = vadd.f32 %v156_v24, %v38_v18  ;;  %v177_v29 = vadd.f32 %v176_v25, %v38_v18  ;;  %v158_v30 = vpop.f32.mrb[3].mxu0  ;;  %v178_v31 = vpop.f32.mrb[3].mxu1 }
  0xe9   :  { %v159_v34 = vadd.f32 %v158_v30, %v42_v21  ;;  %v179_v35 = vadd.f32 %v178_v31, %v42_v21 }
  0xea   :  { %v330_v36 = vpack.c.bf16 %v157_v28, %v153_v26  ;;  %v340_v37 = vpack.c.bf16 %v177_v29, %v173_v27 }
  0xeb   :  { %v350_v38 = vpack.c.bf16 %v159_v34, %v155_v32  ;;  %v360_v39 = vpack.c.bf16 %v179_v35, %v175_v33 }
  0xec   :  { %331 = vst [vmem:[%s490_s3] sm:$0xff] %v330_v36   ;;  %368 = vst [vmem:[%s490_s3 + $0x10] sm:$0xff] %v340_v37  }
  0xed   :  { %351 = vst [vmem:[%s491_s4] sm:$0xff] %v350_v38   ;;  %371 = vst [vmem:[%s491_s4 + $0x10] sm:$0xff] %v360_v39   ;;  %v162_v40 = vpop.f32.mrb[4].mxu0  ;;  %v182_v41 = vpop.f32.mrb[4].mxu1 }
  0xee   :  { %v164_v42 = vpop.f32.mrb[5].mxu0  ;;  %v184_v43 = vpop.f32.mrb[5].mxu1  ;;  %v163_v46 = vadd.f32 %v162_v40, %v38_v18  ;;  %v183_v47 = vadd.f32 %v182_v41, %v38_v18 }
  0xef   :  { %v166_v44 = vpop.f32.mrb[6].mxu0  ;;  %v186_v45 = vpop.f32.mrb[6].mxu1  ;;  %v165_v52 = vadd.f32 %v164_v42, %v42_v21  ;;  %v185_v53 = vadd.f32 %v184_v43, %v42_v21 }
  0xf0   :  { %v167_v48 = vadd.f32 %v166_v44, %v38_v18  ;;  %v187_v49 = vadd.f32 %v186_v45, %v38_v18  ;;  %v168_v50 = vpop.f32.mrb[7].mxu0  ;;  %v188_v51 = vpop.f32.mrb[7].mxu1 }
  0xf1   :  { %v169_v54 = vadd.f32 %v168_v50, %v42_v21  ;;  %v189_v55 = vadd.f32 %v188_v51, %v42_v21 }
  0xf2   :  { %v335_v56 = vpack.c.bf16 %v167_v48, %v163_v46  ;;  %v345_v57 = vpack.c.bf16 %v187_v49, %v183_v47 }
  0xf3   :  { %v355_v58 = vpack.c.bf16 %v169_v54, %v165_v52  ;;  %v365_v59 = vpack.c.bf16 %v189_v55, %v185_v53 }
  0xf4   :  { %367 = vst [vmem:[%s490_s3 + $0x8] sm:$0xff] %v335_v56   ;;  %369 = vst [vmem:[%s490_s3 + $0x18] sm:$0xff] %v345_v57  }
  0xf5   :  { %370 = vst [vmem:[%s491_s4 + $0x8] sm:$0xff] %v355_v58   ;;  %372 = vst [vmem:[%s491_s4 + $0x18] sm:$0xff] %v365_v59  }

// kernel: sandhi_encoder_forward.4
= control target key start
LH: loop header
LB: loop body
LE: loop exit
PB: predicated region body
PF: predicated region fallthrough
CT: control target
= control target key end

     0   :  { %v360_v1 = vmov 0   ;;  %vm81_vm0 = vcmask 261120   ;;  %v31_v9 = vlaneseq  ;;  %s437_s1 = inlined_call_operand.vmem [shape: bf16[32,256], index: 1, kind: input, shape index: {}]   ;;  %s438_s0 = inlined_call_operand.vmem [shape: bf16[64,32], index: 0, kind: input, shape index: {}]   ;;  %s439_s2 = inlined_call_operand.vmem [shape: f32[1,256], index: 2, kind: input, shape index: {}]   ;;  %s440_s3 = inlined_call_operand.vmem [shape: bf16[64,128], index: 3, kind: output, shape index: {0}]   ;;  %s441_s4 = inlined_call_operand.vmem [shape: bf16[64,128], index: 4, kind: output, shape index: {1}]  }
   0x1   :  { %v350_v0 = vld [vmem:[%s437_s1 + $0x4] ss:$8 sps:$4 sm:$0xff]   ;;  %126 = vmatprep.mubr.bf16.mxu0 %v360_v1  ;;  %146 = vmatprep.mubr.bf16.mxu1 %v360_v1  ;;  %v352_v2 = vld [vmem:[%s437_s1] ss:$8 sps:$4 sm:$0xff]   ;;  %v353_v3 = vld [vmem:[%s437_s1 + $0x14] ss:$8 sps:$4 sm:$0xff]  }
   0x2   :  { %94 = vmatprep.subr.bf16.mxu0 %v350_v0  ;;  %345 = vmatprep.subr.bf16.mxu1 %v350_v0  ;;  %v355_v4 = vld [vmem:[%s437_s1 + $0x10] ss:$8 sps:$4 sm:$0xff]   ;;  %v356_v5 = vld [vmem:[%s438_s0] sm:$0xff]   ;;  %v358_v7 = vld [vmem:[%s438_s0 + $0x8] sm:$0xff]   ;;  %v32_v10 = vshrl.u32 %v31_v9, 7 }
   0x3   :  { %95 = vmatpush1.bf16.msra.mxu0 %v352_v2  ;;  %347 = vmatpush1.bf16.msra.mxu1 %v352_v2  ;;  %v357_v6 = vld [vmem:[%s438_s0 + $0x10] sm:$0xff]   ;;  %v359_v8 = vld [vmem:[%s438_s0 + $0x18] sm:$0xff]   ;;  %v29_v12 = vld [vmem:[%s439_s2] sm:$0x3] }
   0x4   :  { %96 = vmatprep.subr.bf16.mxu0 %v353_v3  ;;  %346 = vmatprep.subr.bf16.mxu1 %v353_v3  ;;  %v33_v11 = vsub.s32 0, %v32_v10  ;;  %v37_v13 = vsub.s32 1, %v32_v10 }
   0x6   :  { %v34_v14 = vrot.slane %v29_v12, %v33_v11  ;;  %v38_v17 = vrot.slane %v29_v12, %v37_v13 }
   0x7   :  { %97 = vmatpush1.bf16.msra.mxu0 %v355_v4  ;;  %348 = vmatpush1.bf16.msra.mxu1 %v355_v4 }
   0xa   :  { %263 = vmatmul.mubr.msk.bf16.vlgmr.msra.gmra.mrb[0].mxu0 %vm81_vm0, %v356_v5  ;;  %265 = vmatmul.mubr.msk.bf16.vlgmr.msra.gmra.mrb[0].mxu1 %vm81_vm0, %v357_v6 }
   0xb   :  { %136 = vmatprep.mubr.bf16.mxu0 %v360_v1  ;;  %156 = vmatprep.mubr.bf16.mxu1 %v360_v1 }
  0x12   :  { %264 = vmatmul.mubr.msk.bf16.gmra.mrb[4].mxu0 %vm81_vm0, %v358_v7  ;;  %266 = vmatmul.mubr.msk.bf16.gmra.mrb[4].mxu1 %vm81_vm0, %v359_v8 }
  0xdd   :  { %v128_v15 = vpop.f32.mrb[0].mxu0  ;;  %v148_v16 = vpop.f32.mrb[0].mxu1 }
  0xde   :  { %v130_v18 = vpop.f32.mrb[1].mxu0  ;;  %v150_v19 = vpop.f32.mrb[1].mxu1  ;;  %v129_v22 = vadd.f32 %v128_v15, %v34_v14  ;;  %v149_v23 = vadd.f32 %v148_v16, %v34_v14 }
  0xdf   :  { %v132_v20 = vpop.f32.mrb[2].mxu0  ;;  %v152_v21 = vpop.f32.mrb[2].mxu1  ;;  %v131_v28 = vadd.f32 %v130_v18, %v38_v17  ;;  %v151_v29 = vadd.f32 %v150_v19, %v38_v17 }
  0xe0   :  { %v133_v24 = vadd.f32 %v132_v20, %v34_v14  ;;  %v153_v25 = vadd.f32 %v152_v21, %v34_v14  ;;  %v134_v26 = vpop.f32.mrb[3].mxu0  ;;  %v154_v27 = vpop.f32.mrb[3].mxu1 }
  0xe1   :  { %v135_v30 = vadd.f32 %v134_v26, %v38_v17  ;;  %v155_v31 = vadd.f32 %v154_v27, %v38_v17 }
  0xe2   :  { %v302_v32 = vpack.c.bf16 %v133_v24, %v129_v22  ;;  %v312_v33 = vpack.c.bf16 %v153_v25, %v149_v23 }
  0xe3   :  { %v322_v34 = vpack.c.bf16 %v135_v30, %v131_v28  ;;  %v332_v35 = vpack.c.bf16 %v155_v31, %v151_v29 }
  0xe4   :  { %303 = vst [vmem:[%s440_s3] sm:$0xff] %v302_v32   ;;  %340 = vst [vmem:[%s440_s3 + $0x10] sm:$0xff] %v312_v33  }
  0xe5   :  { %323 = vst [vmem:[%s441_s4] sm:$0xff] %v322_v34   ;;  %343 = vst [vmem:[%s441_s4 + $0x10] sm:$0xff] %v332_v35   ;;  %v138_v36 = vpop.f32.mrb[4].mxu0  ;;  %v158_v37 = vpop.f32.mrb[4].mxu1 }
  0xe6   :  { %v140_v38 = vpop.f32.mrb[5].mxu0  ;;  %v160_v39 = vpop.f32.mrb[5].mxu1  ;;  %v139_v42 = vadd.f32 %v138_v36, %v34_v14  ;;  %v159_v43 = vadd.f32 %v158_v37, %v34_v14 }
  0xe7   :  { %v142_v40 = vpop.f32.mrb[6].mxu0  ;;  %v162_v41 = vpop.f32.mrb[6].mxu1  ;;  %v141_v48 = vadd.f32 %v140_v38, %v38_v17  ;;  %v161_v49 = vadd.f32 %v160_v39, %v38_v17 }
  0xe8   :  { %v143_v44 = vadd.f32 %v142_v40, %v34_v14  ;;  %v163_v45 = vadd.f32 %v162_v41, %v34_v14  ;;  %v144_v46 = vpop.f32.mrb[7].mxu0  ;;  %v164_v47 = vpop.f32.mrb[7].mxu1 }
  0xe9   :  { %v145_v50 = vadd.f32 %v144_v46, %v38_v17  ;;  %v165_v51 = vadd.f32 %v164_v47, %v38_v17 }
  0xea   :  { %v307_v52 = vpack.c.bf16 %v143_v44, %v139_v42  ;;  %v317_v53 = vpack.c.bf16 %v163_v45, %v159_v43 }
  0xeb   :  { %v327_v54 = vpack.c.bf16 %v145_v50, %v141_v48  ;;  %v337_v55 = vpack.c.bf16 %v165_v51, %v161_v49 }
  0xec   :  { %339 = vst [vmem:[%s440_s3 + $0x8] sm:$0xff] %v307_v52   ;;  %341 = vst [vmem:[%s440_s3 + $0x18] sm:$0xff] %v317_v53  }
  0xed   :  { %342 = vst [vmem:[%s441_s4 + $0x8] sm:$0xff] %v327_v54   ;;  %344 = vst [vmem:[%s441_s4 + $0x18] sm:$0xff] %v337_v55  }

// kernel: sandhi_encoder_forward.5
= control target key start
LH: loop header
LB: loop body
LE: loop exit
PB: predicated region body
PF: predicated region fallthrough
CT: control target
= control target key end

     0   :  { %v1736_v0 = vmov 0.0   ;;  %vm1737_vm0 = vmmov 0   ;;  %v1738_v5 = vmov 0   ;;  %s1739_s7 = smov 64   ;;  %s1740_s8 = smov 32   ;;  %vm43_vm1 = vcmask 261120   ;;  %s2239_s2 = inlined_call_operand.vmem [shape: bf16[32,128], index: 2, kind: input, shape index: {}]   ;;  %s2240_s3 = inlined_call_operand.vmem [shape: bf16[32,128], index: 3, kind: input, shape index: {}]   ;;  %s2241_s0 = inlined_call_operand.vmem [shape: bf16[8,8,128], index: 0, kind: input, shape index: {}]   ;;  %s2242_s1 = inlined_call_operand.vmem [shape: bf16[8,8,128], index: 1, kind: input, shape index: {}]   ;;  %s2243_s4 = inlined_call_operand.vmem [shape: f32[8,8,64], index: 4, kind: output, shape index: {0}]   ;;  %s2244_s5 = inlined_call_operand.vmem [shape: f32[2,8,32], index: 5, kind: output, shape index: {1}]   ;;  %s2245_s6 = inlined_call_operand.vmem [shape: f32[2,8,32], index: 6, kind: output, shape index: {2}]  }
   0x1   :  { %1470 = vmatprep.subr.bf16.mxu0 %v1736_v0  ;;  %v1781_v1 = vld [vmem:[%s2239_s2] sm:$0xff]   ;;  %1478 = vmatprep.subr.bf16.mxu1 %v1736_v0  ;;  %v1797_v3 = vld [vmem:[%s2239_s2 + $0x8] sm:$0xff]   ;;  %v1829_v7 = vld [vmem:[%s2242_s1 + $0x18] sm:$0xff]   ;;  %vm202_vm2 = vcmask 523520   ;;  %s1741_s27 = smov 96  }
   0x2   :  { %v1787_v2 = vld [vmem:[%s2240_s3] sm:$0xff]   ;;  %1474 = vmatprep.mubr.msk.bf16.mxu0 %vm1737_vm0, %v1736_v0  ;;  %1482 = vmatprep.mubr.msk.bf16.mxu1 %vm1737_vm0, %v1736_v0  ;;  %v1804_v4 = vld [vmem:[%s2240_s3 + $0x8] sm:$0xff]   ;;  %v90_v9 = vunpack.c.h.bf16 %v1829_v7  ;;  %v257_v55 = vunpack.c.l.bf16 %v1829_v7 }
   0x3   :  { %1471 = vmatpush3.bf16.msra.mxu0 %v1781_v1  ;;  %1479 = vmatpush3.bf16.msra.mxu1 %v1787_v2  ;;  %v29_v6 = vld [vmem:[%s2241_s0] sm:$0xf]  ;;  %v1871_v50 = vld [vmem:[%s2241_s0 + $0x4] sm:$0xff]  }
   0x4   :  { %1472 = vmatprep.subr.bf16.mxu0 %v1736_v0  ;;  %1480 = vmatprep.subr.bf16.mxu1 %v1736_v0  ;;  %v30_v8 = vunpack.c.l.bf16 %v29_v6  ;;  %v206_v51 = vunpack.c.l.bf16 %v1871_v50 }
   0x7   :  { %1473 = vmatpush3.bf16.msra.mxu0 %v1797_v3  ;;  %1481 = vmatpush3.bf16.msra.mxu1 %v1804_v4 }
   0x8   :  { %1486 = vmatprep.subr.bf16.mxu0 %v1736_v0  ;;  %1494 = vmatprep.subr.bf16.mxu1 %v1736_v0 }
   0xa   :  { %1475 = vmatmul.mubr.bf16.vlgmr.msra.gmra.mrb[0].mxu0 %v1738_v5  ;;  %1483 = vmatmul.mubr.bf16.vlgmr.msra.gmra.mrb[0].mxu1 %v1738_v5 }
   0xb   :  { %1487 = vmatpush3.bf16.msra.mxu0 %v1781_v1  ;;  %1495 = vmatpush3.bf16.msra.mxu1 %v1787_v2 }
   0xc   :  { %1488 = vmatprep.subr.bf16.mxu0 %v1736_v0  ;;  %1490 = vmatprep.mubr.msk.bf16.mxu0 %vm1737_vm0, %v1736_v0 }
   0xd   :  { %1496 = vmatprep.subr.bf16.mxu1 %v1736_v0  ;;  %1498 = vmatprep.mubr.msk.bf16.mxu1 %vm1737_vm0, %v1736_v0 }
   0xf   :  { %1489 = vmatpush3.bf16.msra.mxu0 %v1797_v3  ;;  %1497 = vmatpush3.bf16.msra.mxu1 %v1804_v4 }
  0x10   :  { %1502 = vmatprep.subr.bf16.mxu0 %v1736_v0  ;;  %1510 = vmatprep.subr.bf16.mxu1 %v1736_v0 }
  0xdd   :  { %v81_v10 = vpop.f32.mrb[0].mxu0  ;;  %v137_v13 = vpop.f32.mrb[0].mxu1 }
  0xde   :  { %v87_v11 = vadd.f32 %v81_v10, %v30_v8  ;;  %v1476_v12 = vpop.f32.mrb[1].mxu0  ;;  %v143_v14 = vadd.f32 %v137_v13, %v90_v9  ;;  %v1484_v16 = vpop.f32.mrb[1].mxu1 }
  0xdf   :  { %v84_v15 = vpop.f32.mrb[2].mxu0  ;;  %v140_v18 = vpop.f32.mrb[2].mxu1 }
  0xe0   :  { %1608 = vtanh.f32 %v87_v11  ;;  %v1477_v17 = vpop.f32.mrb[3].mxu0  ;;  %v1485_v19 = vpop.f32.mrb[3].mxu1  ;;  %v1363_v22 = vmul.f32 -1.442695, %v87_v11  ;;  %v1364_v23 = vmul.f32 -1.442695, %v143_v14 }
  0xe1   :  { %1610 = vtanh.f32 %v143_v14 }
  0xe2   :  { %1612 = vpow2.f32 %v1363_v22 }
  0xe3   :  { %1614 = vpow2.f32 %v1364_v23 }
  0xea   :  { %v1609_v20 = vpop.eup %1608 }
  0xeb   :  { %153 = vrot.lane.b32.xlu0 %v1609_v20, %s1739_s7  ;;  %v1611_v21 = vpop.eup %1610 }
  0xec   :  { %v1613_v24 = vpop.eup %1612 }
  0xed   :  { %v147_v25 = vadd.f32 1.0, %v1613_v24  ;;  %v1615_v26 = vpop.eup %1614 }
  0xee   :  { %v171_v27 = vadd.f32 1.0, %v1615_v26 }
  0xef   :  { %177 = vrot.lane.b32.xlu0 %v1611_v21, %s1739_s7  ;;  %1616 = vrcp.f32 %v147_v25 }
  0xf0   :  { %1618 = vrcp.f32 %v171_v27 }
  0xf9   :  { %v1617_v28 = vpop.eup %1616 }
  0xfa   :  { %v1619_v31 = vpop.eup %1618  ;;  %v151_v34 = vmul.f32 0.0, %v1617_v28 }
  0xfb   :  { %v175_v37 = vmul.f32 0.0, %v1619_v31 }
 0x15d   :  { %v154_v29 = vpop.permute.xlu0 %153 }
 0x15e   :  { %v156_v30 = vmul.f32 %v1617_v28, %v154_v29 }
 0x160   :  { %158 = vrot.lane.b32.xlu1 %v156_v30, %s1740_s8 }
 0x161   :  { %v178_v32 = vpop.permute.xlu0 %177 }
 0x162   :  { %v180_v33 = vmul.f32 %v1619_v31, %v178_v32 }
 0x164   :  { %182 = vrot.lane.b32.xlu1 %v180_v33, %s1740_s8 }
 0x1d2   :  { %v159_v35 = vpop.permute.xlu1 %158 }
 0x1d3   :  { %v1836_v36 = vadd.f32 %v159_v35, %v151_v34  ;;  %v368_v34 = vunpack.c.h.bf16 %v1871_v50  ;;  %v1917_v35 = vld [vmem:[%s2242_s1 + $0x10] sm:$0xff]  }
 0x1d5   :  { %1620 = vtanh.f32 %v1836_v36 }
 0x1d6   :  { %v183_v38 = vpop.permute.xlu1 %182 }
 0x1d7   :  { %v1839_v39 = vadd.f32 %v183_v38, %v175_v37 }
 0x1d9   :  { %1622 = vtanh.f32 %v1839_v39 }
 0x1df   :  { %v1621_v40 = vpop.eup %1620 }
 0x1e0   :  { %164 = vrot.lane.b32.xlu0 %v1621_v40, %s1739_s7 }
 0x1e3   :  { %v1623_v41 = vpop.eup %1622 }
 0x1e4   :  { %188 = vrot.lane.b32.xlu1 %v1623_v41, %s1739_s7 }
 0x252   :  { %v165_v42 = vpop.permute.xlu0 %164 }
 0x253   :  { %v1844_v43 = vmul.f32 %v1617_v28, %v165_v42 }
 0x255   :  { %v207_v44 = vpack.c.bf16 %v1844_v43, %v1844_v43 }
 0x256   :  { %v189_v45 = vpop.permute.xlu1 %188 }
 0x257   :  { %v1848_v46 = vmul.f32 %v1619_v31, %v189_v45  ;;  %209 = vrot.lane.b32.xlu0 %v207_v44, %s1740_s8 }
 0x259   :  { %v258_v47 = vpack.c.bf16 %v1848_v46, %v1848_v46 }
 0x25b   :  { %260 = vrot.lane.b32.xlu1 %v258_v47, %s1740_s8 }
 0x2c9   :  { %v210_v48 = vpop.permute.xlu0 %209 }
 0x2ca   :  { %1491 = vmatmul.mubr.msk.bf16.vlgmr.msra.gmra.mrb[4].mxu0 %vm43_vm1, %v210_v48 }
 0x2cb   :  { %1503 = vmatpush3.bf16.msra.mxu0 %v1781_v1  ;;  %1506 = vmatprep.mubr.msk.bf16.mxu0 %vm1737_vm0, %v1736_v0 }
 0x2cc   :  { %1504 = vmatprep.subr.bf16.mxu0 %v1736_v0 }
 0x2cd   :  { %v261_v49 = vpop.permute.xlu1 %260 }
 0x2ce   :  { %1499 = vmatmul.mubr.msk.bf16.vlgmr.msra.gmra.mrb[4].mxu1 %vm43_vm1, %v261_v49 }
 0x2cf   :  { %1505 = vmatpush3.bf16.msra.mxu0 %v1797_v3  ;;  %1511 = vmatpush3.bf16.msra.mxu1 %v1787_v2 }
 0x2d0   :  { %1512 = vmatprep.subr.bf16.mxu1 %v1736_v0  ;;  %1514 = vmatprep.mubr.msk.bf16.mxu1 %vm1737_vm0, %v1736_v0 }
 0x2d1   :  { %1518 = vmatprep.subr.bf16.mxu0 %v1736_v0 }
 0x2d3   :  { %1513 = vmatpush3.bf16.msra.mxu1 %v1804_v4 }
 0x2d4   :  { %1526 = vmatprep.subr.bf16.mxu1 %v1736_v0 }
 0x39d   :  { %v248_v52 = vpop.f32.mrb[4].mxu0 }
 0x39e   :  { %v254_v53 = vadd.f32 %v248_v52, %v206_v51  ;;  %v1492_v54 = vpop.f32.mrb[5].mxu0 }
 0x39f   :  { %v251_v56 = vpop.f32.mrb[6].mxu0 }
 0x3a0   :  { %1624 = vtanh.f32 %v254_v53  ;;  %v1493_v57 = vpop.f32.mrb[7].mxu0  ;;  %v1370_v6 = vmul.f32 -1.442695, %v254_v53 }
 0x3a1   :  { %v299_v58 = vpop.f32.mrb[4].mxu1 }
 0x3a2   :  { %v305_v59 = vadd.f32 %v299_v58, %v257_v55  ;;  %v1500_v60 = vpop.f32.mrb[5].mxu1 }
 0x3a3   :  { %v302_v61 = vpop.f32.mrb[6].mxu1 }
 0x3a4   :  { %1626 = vtanh.f32 %v305_v59  ;;  %v1501_v62 = vpop.f32.mrb[7].mxu1  ;;  %v1371_v8 = vmul.f32 -1.442695, %v305_v59 }
 0x3a5   :  { %1628 = vpow2.f32 %v1370_v6 }
 0x3a6   :  { %1630 = vpow2.f32 %v1371_v8 }
 0x3aa   :  { %v1625_v63 = vpop.eup %1624 }
 0x3ab   :  { %315 = vrot.lane.b32.xlu0 %v1625_v63, %s1739_s7 }
 0x3ae   :  { %v1627_v5 = vpop.eup %1626 }
 0x3af   :  { %339 = vrot.lane.b32.xlu1 %v1627_v5, %s1739_s7  ;;  %v1629_v7 = vpop.eup %1628 }
 0x3b0   :  { %v309_v9 = vadd.f32 1.0, %v1629_v7  ;;  %v1631_v10 = vpop.eup %1630 }
 0x3b1   :  { %v333_v11 = vadd.f32 1.0, %v1631_v10 }
 0x3b2   :  { %1632 = vrcp.f32 %v309_v9 }
 0x3b3   :  { %1634 = vrcp.f32 %v333_v11 }
 0x3bc   :  { %v1633_v12 = vpop.eup %1632 }
 0x3bd   :  { %v1635_v15 = vpop.eup %1634  ;;  %v313_v18 = vmul.f32 %v1633_v12, %v1836_v36 }
 0x3be   :  { %v337_v21 = vmul.f32 %v1635_v15, %v1839_v39  ;;  %v419_v39 = vunpack.c.h.bf16 %v1917_v35 }
 0x41d   :  { %v316_v13 = vpop.permute.xlu0 %315 }
 0x41e   :  { %v318_v14 = vmul.f32 %v1633_v12, %v316_v13 }
 0x420   :  { %320 = vrot.lane.b32.xlu0 %v318_v14, %s1740_s8 }
 0x421   :  { %v340_v16 = vpop.permute.xlu1 %339 }
 0x422   :  { %v342_v17 = vmul.f32 %v1635_v15, %v340_v16 }
 0x424   :  { %344 = vrot.lane.b32.xlu1 %v342_v17, %s1740_s8 }
 0x492   :  { %v321_v19 = vpop.permute.xlu0 %320 }
 0x493   :  { %v1880_v20 = vadd.f32 %v321_v19, %v313_v18 }
 0x495   :  { %1636 = vtanh.f32 %v1880_v20 }
 0x496   :  { %v345_v22 = vpop.permute.xlu1 %344 }
 0x497   :  { %v1884_v23 = vadd.f32 %v345_v22, %v337_v21 }
 0x499   :  { %1638 = vtanh.f32 %v1884_v23 }
 0x49f   :  { %v1637_v24 = vpop.eup %1636 }
 0x4a0   :  { %326 = vrot.lane.b32.xlu0 %v1637_v24, %s1739_s7 }
 0x4a3   :  { %v1639_v25 = vpop.eup %1638 }
 0x4a4   :  { %350 = vrot.lane.b32.xlu1 %v1639_v25, %s1739_s7  ;;  %v581_v25 = vunpack.c.l.bf16 %v1917_v35 }
 0x512   :  { %v327_v26 = vpop.permute.xlu0 %326 }
 0x513   :  { %v1889_v27 = vmul.f32 %v1633_v12, %v327_v26 }
 0x515   :  { %v369_v28 = vpack.c.bf16 %v1889_v27, %v1889_v27 }
 0x516   :  { %v351_v29 = vpop.permute.xlu1 %350 }
 0x517   :  { %v1893_v30 = vmul.f32 %v1635_v15, %v351_v29  ;;  %371 = vrot.lane.b32.xlu0 %v369_v28, %s1740_s8 }
 0x519   :  { %v420_v31 = vpack.c.bf16 %v1893_v30, %v1893_v30 }
 0x51b   :  { %422 = vrot.lane.b32.xlu1 %v420_v31, %s1740_s8 }
 0x589   :  { %v372_v32 = vpop.permute.xlu0 %371 }
 0x58a   :  { %1507 = vmatmul.mubr.msk.bf16.vlgmr.msra.gmra.mrb[8].mxu0 %vm43_vm1, %v372_v32 }
 0x58b   :  { %1519 = vmatpush3.bf16.msra.mxu0 %v1781_v1  ;;  %1522 = vmatprep.mubr.msk.bf16.mxu0 %vm1737_vm0, %v1736_v0 }
 0x58c   :  { %1520 = vmatprep.subr.bf16.mxu0 %v1736_v0 }
 0x58d   :  { %v423_v33 = vpop.permute.xlu1 %422 }
 0x58e   :  { %1515 = vmatmul.mubr.msk.bf16.vlgmr.msra.gmra.mrb[8].mxu1 %vm43_vm1, %v423_v33 }
 0x58f   :  { %1521 = vmatpush3.bf16.msra.mxu0 %v1797_v3  ;;  %1527 = vmatpush3.bf16.msra.mxu1 %v1787_v2 }
 0x590   :  { %1528 = vmatprep.subr.bf16.mxu1 %v1736_v0  ;;  %1530 = vmatprep.mubr.msk.bf16.mxu1 %vm1737_vm0, %v1736_v0 }
 0x591   :  { %1534 = vmatprep.subr.bf16.mxu0 %v1736_v0 }
 0x593   :  { %1529 = vmatpush3.bf16.msra.mxu1 %v1804_v4 }
 0x594   :  { %1542 = vmatprep.subr.bf16.mxu1 %v1736_v0 }
 0x65d   :  { %v410_v36 = vpop.f32.mrb[8].mxu0 }
 0x65e   :  { %v416_v37 = vadd.f32 %v410_v36, %v368_v34  ;;  %v1508_v38 = vpop.f32.mrb[9].mxu0 }
 0x65f   :  { %v413_v40 = vpop.f32.mrb[10].mxu0 }
 0x660   :  { %1640 = vtanh.f32 %v416_v37  ;;  %v1509_v41 = vpop.f32.mrb[11].mxu0  ;;  %v1378_v51 = vmul.f32 -1.442695, %v416_v37 }
 0x661   :  { %v461_v42 = vpop.f32.mrb[8].mxu1 }
 0x662   :  { %v467_v44 = vadd.f32 %v461_v42, %v419_v39  ;;  %v1516_v45 = vpop.f32.mrb[9].mxu1 }
 0x663   :  { %v464_v47 = vpop.f32.mrb[10].mxu1 }
 0x664   :  { %1642 = vtanh.f32 %v467_v44  ;;  %v1517_v48 = vpop.f32.mrb[11].mxu1  ;;  %v1379_v52 = vmul.f32 -1.442695, %v467_v44 }
 0x665   :  { %1644 = vpow2.f32 %v1378_v51 }
 0x666   :  { %1646 = vpow2.f32 %v1379_v52 }
 0x66a   :  { %v1641_v49 = vpop.eup %1640 }
 0x66b   :  { %477 = vrot.lane.b32.xlu0 %v1641_v49, %s1739_s7 }
 0x66e   :  { %v1643_v50 = vpop.eup %1642 }
 0x66f   :  { %501 = vrot.lane.b32.xlu1 %v1643_v50, %s1739_s7  ;;  %v1645_v53 = vpop.eup %1644 }
 0x670   :  { %v471_v54 = vadd.f32 1.0, %v1645_v53  ;;  %v1647_v55 = vpop.eup %1646 }
 0x671   :  { %v495_v56 = vadd.f32 1.0, %v1647_v55 }
 0x672   :  { %1648 = vrcp.f32 %v471_v54 }
 0x673   :  { %1650 = vrcp.f32 %v495_v56 }
 0x67c   :  { %v1649_v57 = vpop.eup %1648 }
 0x67d   :  { %v1651_v60 = vpop.eup %1650  ;;  %v475_v63 = vmul.f32 %v1649_v57, %v1880_v20  ;;  %v1961_v20 = vld [vmem:[%s2241_s0 + $0xc] sm:$0xff]  }
 0x67e   :  { %v499_v8 = vmul.f32 %v1651_v60, %v1884_v23  ;;  %v530_v21 = vunpack.c.l.bf16 %v1961_v20 }
 0x6dd   :  { %v478_v58 = vpop.permute.xlu0 %477 }
 0x6de   :  { %v480_v59 = vmul.f32 %v1649_v57, %v478_v58 }
 0x6e0   :  { %482 = vrot.lane.b32.xlu0 %v480_v59, %s1740_s8 }
 0x6e1   :  { %v502_v61 = vpop.permute.xlu1 %501 }
 0x6e2   :  { %v504_v62 = vmul.f32 %v1651_v60, %v502_v61 }
 0x6e4   :  { %506 = vrot.lane.b32.xlu1 %v504_v62, %s1740_s8 }
 0x752   :  { %v483_v5 = vpop.permute.xlu0 %482 }
 0x753   :  { %v1925_v6 = vadd.f32 %v483_v5, %v475_v63 }
 0x755   :  { %1652 = vtanh.f32 %v1925_v6 }
 0x756   :  { %v507_v7 = vpop.permute.xlu1 %506 }
 0x757   :  { %v1929_v9 = vadd.f32 %v507_v7, %v499_v8  ;;  %v692_v7 = vunpack.c.h.bf16 %v1961_v20 }
 0x759   :  { %1654 = vtanh.f32 %v1929_v9 }
 0x75f   :  { %v1653_v10 = vpop.eup %1652 }
 0x760   :  { %488 = vrot.lane.b32.xlu0 %v1653_v10, %s1739_s7 }
 0x763   :  { %v1655_v11 = vpop.eup %1654 }
 0x764   :  { %512 = vrot.lane.b32.xlu1 %v1655_v11, %s1739_s7 }
 0x7d2   :  { %v489_v12 = vpop.permute.xlu0 %488 }
 0x7d3   :  { %v1934_v13 = vmul.f32 %v1649_v57, %v489_v12 }
 0x7d5   :  { %v531_v14 = vpack.c.bf16 %v1934_v13, %v1934_v13 }
 0x7d6   :  { %v513_v15 = vpop.permute.xlu1 %512 }
 0x7d7   :  { %v1938_v16 = vmul.f32 %v1651_v60, %v513_v15  ;;  %533 = vrot.lane.b32.xlu0 %v531_v14, %s1740_s8 }
 0x7d9   :  { %v582_v17 = vpack.c.bf16 %v1938_v16, %v1938_v16 }
 0x7db   :  { %584 = vrot.lane.b32.xlu1 %v582_v17, %s1740_s8 }
 0x849   :  { %v534_v18 = vpop.permute.xlu0 %533 }
 0x84a   :  { %1523 = vmatmul.mubr.msk.bf16.vlgmr.msra.gmra.mrb[12].mxu0 %vm43_vm1, %v534_v18 }
 0x84b   :  { %1535 = vmatpush3.bf16.msra.mxu0 %v1781_v1  ;;  %1538 = vmatprep.mubr.msk.bf16.mxu0 %vm1737_vm0, %v1736_v0 }
 0x84c   :  { %1536 = vmatprep.subr.bf16.mxu0 %v1736_v0 }
 0x84d   :  { %v585_v19 = vpop.permute.xlu1 %584 }
 0x84e   :  { %1531 = vmatmul.mubr.msk.bf16.vlgmr.msra.gmra.mrb[12].mxu1 %vm43_vm1, %v585_v19 }
 0x84f   :  { %1537 = vmatpush3.bf16.msra.mxu0 %v1797_v3  ;;  %1543 = vmatpush3.bf16.msra.mxu1 %v1787_v2 }
 0x850   :  { %1544 = vmatprep.subr.bf16.mxu1 %v1736_v0  ;;  %1546 = vmatprep.mubr.msk.bf16.mxu1 %vm1737_vm0, %v1736_v0 }
 0x851   :  { %1550 = vmatprep.subr.bf16.mxu0 %v1736_v0 }
 0x853   :  { %1545 = vmatpush3.bf16.msra.mxu1 %v1804_v4 }
 0x854   :  { %1558 = vmatprep.subr.bf16.mxu1 %v1736_v0 }
 0x91d   :  { %v572_v22 = vpop.f32.mrb[12].mxu0 }
 0x91e   :  { %v578_v23 = vadd.f32 %v572_v22, %v530_v21  ;;  %v1524_v24 = vpop.f32.mrb[13].mxu0 }
 0x91f   :  { %v575_v26 = vpop.f32.mrb[14].mxu0 }
 0x920   :  { %1656 = vtanh.f32 %v578_v23  ;;  %v1525_v28 = vpop.f32.mrb[15].mxu0  ;;  %v1386_v38 = vmul.f32 -1.442695, %v578_v23 }
 0x921   :  { %v623_v29 = vpop.f32.mrb[12].mxu1 }
 0x922   :  { %v629_v31 = vadd.f32 %v623_v29, %v581_v25  ;;  %v1532_v32 = vpop.f32.mrb[13].mxu1 }
 0x923   :  { %v626_v33 = vpop.f32.mrb[14].mxu1 }
 0x924   :  { %1658 = vtanh.f32 %v629_v31  ;;  %v1533_v34 = vpop.f32.mrb[15].mxu1  ;;  %v1387_v39 = vmul.f32 -1.442695, %v629_v31 }
 0x925   :  { %1660 = vpow2.f32 %v1386_v38 }
 0x926   :  { %1662 = vpow2.f32 %v1387_v39 }
 0x92a   :  { %v1657_v36 = vpop.eup %1656 }
 0x92b   :  { %639 = vrot.lane.b32.xlu0 %v1657_v36, %s1739_s7 }
 0x92e   :  { %v1659_v37 = vpop.eup %1658 }
 0x92f   :  { %663 = vrot.lane.b32.xlu1 %v1659_v37, %s1739_s7  ;;  %v1661_v35 = vpop.eup %1660 }
 0x930   :  { %v633_v40 = vadd.f32 1.0, %v1661_v35  ;;  %v1663_v41 = vpop.eup %1662 }
 0x931   :  { %v657_v42 = vadd.f32 1.0, %v1663_v41 }
 0x932   :  { %1664 = vrcp.f32 %v633_v40 }
 0x933   :  { %1666 = vrcp.f32 %v657_v42 }
 0x93c   :  { %v1665_v44 = vpop.eup %1664 }
 0x93d   :  { %v1667_v48 = vpop.eup %1666  ;;  %v637_v51 = vmul.f32 %v1665_v44, %v1925_v6 }
 0x93e   :  { %v661_v54 = vmul.f32 %v1667_v48, %v1929_v9  ;;  %v2007_v9 = vld [vmem:[%s2242_s1 + $0x8] sm:$0xff]  }
 0x93f   :  { %v743_v14 = vunpack.c.h.bf16 %v2007_v9 }
 0x99d   :  { %v640_v45 = vpop.permute.xlu0 %639 }
 0x99e   :  { %v642_v47 = vmul.f32 %v1665_v44, %v640_v45 }
 0x9a0   :  { %644 = vrot.lane.b32.xlu0 %v642_v47, %s1740_s8 }
 0x9a1   :  { %v664_v49 = vpop.permute.xlu1 %663 }
 0x9a2   :  { %v666_v50 = vmul.f32 %v1667_v48, %v664_v49 }
 0x9a4   :  { %668 = vrot.lane.b32.xlu1 %v666_v50, %s1740_s8 }
 0xa12   :  { %v645_v52 = vpop.permute.xlu0 %644 }
 0xa13   :  { %v1970_v53 = vadd.f32 %v645_v52, %v637_v51 }
 0xa15   :  { %1668 = vtanh.f32 %v1970_v53 }
 0xa16   :  { %v669_v55 = vpop.permute.xlu1 %668 }
 0xa17   :  { %v1974_v56 = vadd.f32 %v669_v55, %v661_v54 }
 0xa19   :  { %1670 = vtanh.f32 %v1974_v56 }
 0xa1f   :  { %v1669_v57 = vpop.eup %1668 }
 0xa20   :  { %650 = vrot.lane.b32.xlu0 %v1669_v57, %s1739_s7  ;;  %v2051_v57 = vld [vmem:[%s2241_s0 + $0x14] sm:$0xff]  }
 0xa23   :  { %v1671_v58 = vpop.eup %1670 }
 0xa24   :  { %674 = vrot.lane.b32.xlu1 %v1671_v58, %s1739_s7  ;;  %v852_v58 = vunpack.c.l.bf16 %v2051_v57 }
 0xa92   :  { %v651_v59 = vpop.permute.xlu0 %650 }
 0xa93   :  { %v1979_v60 = vmul.f32 %v1665_v44, %v651_v59 }
 0xa95   :  { %v693_v61 = vpack.c.bf16 %v1979_v60, %v1979_v60 }
 0xa96   :  { %v675_v62 = vpop.permute.xlu1 %674 }
 0xa97   :  { %v1983_v63 = vmul.f32 %v1667_v48, %v675_v62  ;;  %695 = vrot.lane.b32.xlu0 %v693_v61, %s1740_s8 }
 0xa99   :  { %v744_v5 = vpack.c.bf16 %v1983_v63, %v1983_v63 }
 0xa9b   :  { %746 = vrot.lane.b32.xlu1 %v744_v5, %s1740_s8  ;;  %v903_v5 = vunpack.c.l.bf16 %v2007_v9 }
 0xb09   :  { %v696_v6 = vpop.permute.xlu0 %695 }
 0xb0a   :  { %1539 = vmatmul.mubr.msk.bf16.vlgmr.msra.gmra.mrb[16].mxu0 %vm43_vm1, %v696_v6 }
 0xb0b   :  { %1551 = vmatpush3.bf16.msra.mxu0 %v1781_v1  ;;  %1554 = vmatprep.mubr.msk.bf16.mxu0 %vm1737_vm0, %v1736_v0 }
 0xb0c   :  { %1552 = vmatprep.subr.bf16.mxu0 %v1736_v0 }
 0xb0d   :  { %v747_v8 = vpop.permute.xlu1 %746 }
 0xb0e   :  { %1547 = vmatmul.mubr.msk.bf16.vlgmr.msra.gmra.mrb[16].mxu1 %vm43_vm1, %v747_v8 }
 0xb0f   :  { %1553 = vmatpush3.bf16.msra.mxu0 %v1797_v3  ;;  %1559 = vmatpush3.bf16.msra.mxu1 %v1787_v2 }
 0xb10   :  { %1560 = vmatprep.subr.bf16.mxu1 %v1736_v0  ;;  %1562 = vmatprep.mubr.msk.bf16.mxu1 %vm1737_vm0, %v1736_v0 }
 0xb11   :  { %1566 = vmatprep.subr.bf16.mxu0 %v1736_v0 }
 0xb13   :  { %1561 = vmatpush3.bf16.msra.mxu1 %v1804_v4 }
 0xb14   :  { %1574 = vmatprep.subr.bf16.mxu1 %v1736_v0 }
 0xbdd   :  { %v734_v10 = vpop.f32.mrb[16].mxu0 }
 0xbde   :  { %v740_v11 = vadd.f32 %v734_v10, %v692_v7  ;;  %v1540_v12 = vpop.f32.mrb[17].mxu0 }
 0xbdf   :  { %v737_v15 = vpop.f32.mrb[18].mxu0 }
 0xbe0   :  { %1672 = vtanh.f32 %v740_v11  ;;  %v1541_v17 = vpop.f32.mrb[19].mxu0  ;;  %v1394_v25 = vmul.f32 -1.442695, %v740_v11 }
 0xbe1   :  { %v785_v18 = vpop.f32.mrb[16].mxu1 }
 0xbe2   :  { %v791_v19 = vadd.f32 %v785_v18, %v743_v14  ;;  %v1548_v21 = vpop.f32.mrb[17].mxu1 }
 0xbe3   :  { %v788_v22 = vpop.f32.mrb[18].mxu1 }
 0xbe4   :  { %1674 = vtanh.f32 %v791_v19  ;;  %v1549_v23 = vpop.f32.mrb[19].mxu1  ;;  %v1395_v26 = vmul.f32 -1.442695, %v791_v19 }
 0xbe5   :  { %1676 = vpow2.f32 %v1394_v25 }
 0xbe6   :  { %1678 = vpow2.f32 %v1395_v26 }
 0xbea   :  { %v1673_v20 = vpop.eup %1672 }
 0xbeb   :  { %801 = vrot.lane.b32.xlu0 %v1673_v20, %s1739_s7 }
 0xbee   :  { %v1675_v24 = vpop.eup %1674 }
 0xbef   :  { %825 = vrot.lane.b32.xlu1 %v1675_v24, %s1739_s7  ;;  %v1677_v28 = vpop.eup %1676 }
 0xbf0   :  { %v795_v29 = vadd.f32 1.0, %v1677_v28  ;;  %v1679_v31 = vpop.eup %1678 }
 0xbf1   :  { %v819_v32 = vadd.f32 1.0, %v1679_v31 }
 0xbf2   :  { %1680 = vrcp.f32 %v795_v29 }
 0xbf3   :  { %1682 = vrcp.f32 %v819_v32 }
 0xbfc   :  { %v1681_v33 = vpop.eup %1680 }
 0xbfd   :  { %v1683_v37 = vpop.eup %1682  ;;  %v799_v35 = vmul.f32 %v1681_v33, %v1970_v53 }
 0xbfe   :  { %v823_v42 = vmul.f32 %v1683_v37, %v1974_v56 }
 0xc5d   :  { %v802_v34 = vpop.permute.xlu0 %801 }
 0xc5e   :  { %v804_v36 = vmul.f32 %v1681_v33, %v802_v34 }
 0xc60   :  { %806 = vrot.lane.b32.xlu0 %v804_v36, %s1740_s8 }
 0xc61   :  { %v826_v38 = vpop.permute.xlu1 %825 }
 0xc62   :  { %v828_v39 = vmul.f32 %v1683_v37, %v826_v38 }
 0xc64   :  { %830 = vrot.lane.b32.xlu1 %v828_v39, %s1740_s8 }
 0xcd2   :  { %v807_v40 = vpop.permute.xlu0 %806 }
 0xcd3   :  { %v2015_v41 = vadd.f32 %v807_v40, %v799_v35 }
 0xcd5   :  { %1684 = vtanh.f32 %v2015_v41 }
 0xcd6   :  { %v831_v44 = vpop.permute.xlu1 %830 }
 0xcd7   :  { %v2019_v45 = vadd.f32 %v831_v44, %v823_v42 }
 0xcd9   :  { %1686 = vtanh.f32 %v2019_v45 }
 0xcdf   :  { %v1685_v47 = vpop.eup %1684 }
 0xce0   :  { %812 = vrot.lane.b32.xlu0 %v1685_v47, %s1739_s7 }
 0xce3   :  { %v1687_v48 = vpop.eup %1686 }
 0xce4   :  { %836 = vrot.lane.b32.xlu1 %v1687_v48, %s1739_s7 }
 0xd52   :  { %v813_v49 = vpop.permute.xlu0 %812 }
 0xd53   :  { %v2024_v50 = vmul.f32 %v1681_v33, %v813_v49  ;;  %v2095_v49 = vld [vmem:[%s2242_s1] sm:$0xff]  }
 0xd55   :  { %v853_v51 = vpack.c.bf16 %v2024_v50, %v2024_v50 }
 0xd56   :  { %v837_v52 = vpop.permute.xlu1 %836 }
 0xd57   :  { %v2028_v53 = vmul.f32 %v1683_v37, %v837_v52  ;;  %855 = vrot.lane.b32.xlu0 %v853_v51, %s1740_s8 }
 0xd59   :  { %v904_v54 = vpack.c.bf16 %v2028_v53, %v2028_v53 }
 0xd5b   :  { %906 = vrot.lane.b32.xlu1 %v904_v54, %s1740_s8 }
 0xdc9   :  { %v856_v55 = vpop.permute.xlu0 %855 }
 0xdca   :  { %1555 = vmatmul.mubr.msk.bf16.vlgmr.msra.gmra.mrb[20].mxu0 %vm43_vm1, %v856_v55 }
 0xdcb   :  { %1567 = vmatpush3.bf16.msra.mxu0 %v1781_v1  ;;  %1570 = vmatprep.mubr.msk.bf16.mxu0 %vm1737_vm0, %v1736_v0 }
 0xdcc   :  { %1568 = vmatprep.subr.bf16.mxu0 %v1736_v0 }
 0xdcd   :  { %v907_v56 = vpop.permute.xlu1 %906 }
 0xdce   :  { %1563 = vmatmul.mubr.msk.bf16.vlgmr.msra.gmra.mrb[20].mxu1 %vm43_vm1, %v907_v56 }
 0xdcf   :  { %1569 = vmatpush3.bf16.msra.mxu0 %v1797_v3  ;;  %1575 = vmatpush3.bf16.msra.mxu1 %v1787_v2 }
 0xdd0   :  { %1576 = vmatprep.subr.bf16.mxu1 %v1736_v0  ;;  %1578 = vmatprep.mubr.msk.bf16.mxu1 %vm1737_vm0, %v1736_v0 }
 0xdd1   :  { %1582 = vmatprep.subr.bf16.mxu0 %v1736_v0 }
 0xdd3   :  { %1577 = vmatpush3.bf16.msra.mxu1 %v1804_v4 }
 0xdd4   :  { %1590 = vmatprep.subr.bf16.mxu1 %v1736_v0 }
 0xe9d   :  { %v894_v59 = vpop.f32.mrb[20].mxu0 }
 0xe9e   :  { %v900_v61 = vadd.f32 %v894_v59, %v852_v58  ;;  %v1556_v62 = vpop.f32.mrb[21].mxu0 }
 0xe9f   :  { %v897_v6 = vpop.f32.mrb[22].mxu0 }
 0xea0   :  { %1688 = vtanh.f32 %v900_v61  ;;  %v1557_v8 = vpop.f32.mrb[23].mxu0  ;;  %v1402_v18 = vmul.f32 -1.442695, %v900_v61 }
 0xea1   :  { %v945_v7 = vpop.f32.mrb[20].mxu1 }
 0xea2   :  { %v951_v10 = vadd.f32 %v945_v7, %v903_v5  ;;  %v1564_v11 = vpop.f32.mrb[21].mxu1 }
 0xea3   :  { %v948_v12 = vpop.f32.mrb[22].mxu1 }
 0xea4   :  { %1690 = vtanh.f32 %v951_v10  ;;  %v1565_v14 = vpop.f32.mrb[23].mxu1  ;;  %v1403_v19 = vmul.f32 -1.442695, %v951_v10 }
 0xea5   :  { %1692 = vpow2.f32 %v1402_v18 }
 0xea6   :  { %1694 = vpow2.f32 %v1403_v19 }
 0xeaa   :  { %v1689_v15 = vpop.eup %1688 }
 0xeab   :  { %961 = vrot.lane.b32.xlu0 %v1689_v15, %s1739_s7 }
 0xeae   :  { %v1691_v17 = vpop.eup %1690 }
 0xeaf   :  { %985 = vrot.lane.b32.xlu1 %v1691_v17, %s1739_s7  ;;  %v1693_v9 = vpop.eup %1692 }
 0xeb0   :  { %v955_v21 = vadd.f32 1.0, %v1693_v9  ;;  %v1695_v22 = vpop.eup %1694 }
 0xeb1   :  { %v979_v23 = vadd.f32 1.0, %v1695_v22 }
 0xeb2   :  { %1696 = vrcp.f32 %v955_v21 }
 0xeb3   :  { %1698 = vrcp.f32 %v979_v23 }
 0xebc   :  { %v1697_v20 = vpop.eup %1696 }
 0xebd   :  { %v1699_v26 = vpop.eup %1698  ;;  %v959_v31 = vmul.f32 %v1697_v20, %v2015_v41 }
 0xebe   :  { %v983_v34 = vmul.f32 %v1699_v26, %v2019_v45 }
 0xf1d   :  { %v962_v24 = vpop.permute.xlu0 %961 }
 0xf1e   :  { %v964_v25 = vmul.f32 %v1697_v20, %v962_v24 }
 0xf20   :  { %966 = vrot.lane.b32.xlu0 %v964_v25, %s1740_s8 }
 0xf21   :  { %v986_v28 = vpop.permute.xlu1 %985 }
 0xf22   :  { %v988_v29 = vmul.f32 %v1699_v26, %v986_v28 }
 0xf24   :  { %990 = vrot.lane.b32.xlu1 %v988_v29, %s1740_s8 }
 0xf92   :  { %v967_v32 = vpop.permute.xlu0 %966 }
 0xf93   :  { %v2060_v33 = vadd.f32 %v967_v32, %v959_v31 }
 0xf95   :  { %1700 = vtanh.f32 %v2060_v33 }
 0xf96   :  { %v991_v36 = vpop.permute.xlu1 %990 }
 0xf97   :  { %v2064_v37 = vadd.f32 %v991_v36, %v983_v34 }
 0xf99   :  { %1702 = vtanh.f32 %v2064_v37 }
 0xf9f   :  { %v1701_v38 = vpop.eup %1700 }
 0xfa0   :  { %972 = vrot.lane.b32.xlu0 %v1701_v38, %s1739_s7 }
 0xfa3   :  { %v1703_v39 = vpop.eup %1702 }
 0xfa4   :  { %996 = vrot.lane.b32.xlu1 %v1703_v39, %s1739_s7 }
0x1012   :  { %v973_v35 = vpop.permute.xlu0 %972 }
0x1013   :  { %v2069_v40 = vmul.f32 %v1697_v20, %v973_v35 }
0x1015   :  { %v1013_v41 = vpack.c.bf16 %v2069_v40, %v2069_v40 }
0x1016   :  { %v997_v42 = vpop.permute.xlu1 %996 }
0x1017   :  { %v2073_v44 = vmul.f32 %v1699_v26, %v997_v42  ;;  %1015 = vrot.lane.b32.xlu0 %v1013_v41, %s1740_s8  ;;  %v1222_v42 = vunpack.c.l.bf16 %v2095_v49 }
0x1019   :  { %v1064_v45 = vpack.c.bf16 %v2073_v44, %v2073_v44 }
0x101b   :  { %1066 = vrot.lane.b32.xlu1 %v1064_v45, %s1740_s8 }
0x1089   :  { %v1016_v47 = vpop.permute.xlu0 %1015 }
0x108a   :  { %1571 = vmatmul.mubr.msk.bf16.vlgmr.msra.gmra.mrb[24].mxu0 %vm43_vm1, %v1016_v47 }
0x108b   :  { %1583 = vmatpush3.bf16.msra.mxu0 %v1781_v1  ;;  %1586 = vmatprep.mubr.msk.bf16.mxu0 %vm1737_vm0, %v1736_v0  ;;  %v1012_v1 = vunpack.c.h.bf16 %v2051_v57 }
0x108c   :  { %1584 = vmatprep.subr.bf16.mxu0 %v1736_v0 }
0x108d   :  { %v1067_v48 = vpop.permute.xlu1 %1066 }
0x108e   :  { %1579 = vmatmul.mubr.msk.bf16.vlgmr.msra.gmra.mrb[24].mxu1 %vm43_vm1, %v1067_v48 }
0x108f   :  { %1585 = vmatpush3.bf16.msra.mxu0 %v1797_v3  ;;  %1591 = vmatpush3.bf16.msra.mxu1 %v1787_v2  ;;  %v1063_v3 = vunpack.c.h.bf16 %v2095_v49 }
0x1090   :  { %1592 = vmatprep.subr.bf16.mxu1 %v1736_v0  ;;  %1594 = vmatprep.mubr.msk.bf16.mxu1 %vm1737_vm0, %v1736_v0 }
0x1093   :  { %1593 = vmatpush3.bf16.msra.mxu1 %v1804_v4 }
0x115d   :  { %v1054_v51 = vpop.f32.mrb[24].mxu0 }
0x115e   :  { %v1060_v52 = vadd.f32 %v1054_v51, %v1012_v1  ;;  %v1572_v54 = vpop.f32.mrb[25].mxu0 }
0x115f   :  { %v1057_v2 = vpop.f32.mrb[26].mxu0 }
0x1160   :  { %1704 = vtanh.f32 %v1060_v52  ;;  %v1573_v55 = vpop.f32.mrb[27].mxu0  ;;  %v1410_v62 = vmul.f32 -1.442695, %v1060_v52 }
0x1161   :  { %v1105_v56 = vpop.f32.mrb[24].mxu1 }
0x1162   :  { %v1111_v58 = vadd.f32 %v1105_v56, %v1063_v3  ;;  %v1580_v0 = vpop.f32.mrb[25].mxu1 }
0x1163   :  { %v1108_v59 = vpop.f32.mrb[26].mxu1 }
0x1164   :  { %1706 = vtanh.f32 %v1111_v58  ;;  %v1581_v4 = vpop.f32.mrb[27].mxu1  ;;  %v1411_v5 = vmul.f32 -1.442695, %v1111_v58 }
0x1165   :  { %1708 = vpow2.f32 %v1410_v62 }
0x1166   :  { %1710 = vpow2.f32 %v1411_v5 }
0x116a   :  { %v1705_v57 = vpop.eup %1704 }
0x116b   :  { %1121 = vrot.lane.b32.xlu0 %v1705_v57, %s1739_s7 }
0x116e   :  { %v1707_v61 = vpop.eup %1706 }
0x116f   :  { %1145 = vrot.lane.b32.xlu1 %v1707_v61, %s1739_s7  ;;  %v1709_v6 = vpop.eup %1708 }
0x1170   :  { %v1115_v8 = vadd.f32 1.0, %v1709_v6  ;;  %v1711_v7 = vpop.eup %1710 }
0x1171   :  { %v1139_v10 = vadd.f32 1.0, %v1711_v7 }
0x1172   :  { %1712 = vrcp.f32 %v1115_v8 }
0x1173   :  { %1714 = vrcp.f32 %v1139_v10 }
0x117c   :  { %v1713_v11 = vpop.eup %1712 }
0x117d   :  { %v1715_v15 = vpop.eup %1714  ;;  %v1119_v19 = vmul.f32 %v1713_v11, %v2060_v33 }
0x117e   :  { %v1143_v22 = vmul.f32 %v1715_v15, %v2064_v37  ;;  %v1414_v37 = vld [vmem:[%s2241_s0 + $0x1c] sm:$0xf] }
0x117f   :  { %v1172_v38 = vunpack.c.l.bf16 %v1414_v37 }
0x11dd   :  { %v1122_v12 = vpop.permute.xlu0 %1121 }
0x11de   :  { %v1124_v14 = vmul.f32 %v1713_v11, %v1122_v12 }
0x11e0   :  { %1126 = vrot.lane.b32.xlu0 %v1124_v14, %s1740_s8 }
0x11e1   :  { %v1146_v17 = vpop.permute.xlu1 %1145 }
0x11e2   :  { %v1148_v18 = vmul.f32 %v1715_v15, %v1146_v17 }
0x11e4   :  { %1150 = vrot.lane.b32.xlu1 %v1148_v18, %s1740_s8 }
0x1252   :  { %v1127_v9 = vpop.permute.xlu0 %1126 }
0x1253   :  { %v1129_v21 = vadd.f32 %v1127_v9, %v1119_v19 }
0x1255   :  { %1716 = vtanh.f32 %v1129_v21 }
0x1256   :  { %v1151_v23 = vpop.permute.xlu1 %1150 }
0x1257   :  { %v1153_v20 = vadd.f32 %v1151_v23, %v1143_v22 }
0x1259   :  { %1718 = vtanh.f32 %v1153_v20 }
0x125f   :  { %v1717_v24 = vpop.eup %1716 }
0x1260   :  { %1132 = vrot.lane.b32.xlu0 %v1717_v24, %s1739_s7 }
0x1263   :  { %v1719_v25 = vpop.eup %1718 }
0x1264   :  { %1156 = vrot.lane.b32.xlu1 %v1719_v25, %s1739_s7 }
0x12d2   :  { %v1133_v26 = vpop.permute.xlu0 %1132 }
0x12d3   :  { %v2106_v28 = vmul.f32 %v1713_v11, %v1133_v26 }
0x12d5   :  { %v1173_v29 = vpack.c.bf16 %v2106_v28, %v2106_v28 }
0x12d6   :  { %v1157_v31 = vpop.permute.xlu1 %1156 }
0x12d7   :  { %v2110_v32 = vmul.f32 %v1715_v15, %v1157_v31  ;;  %1175 = vrot.lane.b32.xlu0 %v1173_v29, %s1740_s8 }
0x12d9   :  { %v1223_v33 = vpack.c.bf16 %v2110_v32, %v2110_v32 }
0x12db   :  { %1225 = vrot.lane.b32.xlu1 %v1223_v33, %s1740_s8 }
0x1349   :  { %v1176_v34 = vpop.permute.xlu0 %1175 }
0x134a   :  { %1587 = vmatmul.mubr.msk.bf16.vlgmr.msra.gmra.mrb[28].mxu0 %vm43_vm1, %v1176_v34 }
0x134d   :  { %v1226_v36 = vpop.permute.xlu1 %1225 }
0x134e   :  { %1595 = vmatmul.mubr.msk.bf16.vlgmr.msra.gmra.mrb[28].mxu1 %vm43_vm1, %v1226_v36 }
0x141d   :  { %v1214_v39 = vpop.f32.mrb[28].mxu0 }
0x141e   :  { %v1220_v35 = vadd.f32 %v1214_v39, %v1172_v38  ;;  %v1588_v41 = vpop.f32.mrb[29].mxu0 }
0x141f   :  { %v1217_v45 = vpop.f32.mrb[30].mxu0 }
0x1420   :  { %1720 = vtanh.f32 %v1220_v35  ;;  %v1589_v47 = vpop.f32.mrb[31].mxu0  ;;  %v1417_v55 = vmul.f32 -1.442695, %v1220_v35 }
0x1421   :  { %v1264_v48 = vpop.f32.mrb[28].mxu1 }
0x1422   :  { %v1270_v1 = vadd.f32 %v1264_v48, %v1222_v42  ;;  %v1596_v51 = vpop.f32.mrb[29].mxu1 }
0x1423   :  { %v1267_v52 = vpop.f32.mrb[30].mxu1 }
0x1424   :  { %1722 = vtanh.f32 %v1270_v1  ;;  %v1597_v54 = vpop.f32.mrb[31].mxu1  ;;  %v1418_v56 = vmul.f32 -1.442695, %v1270_v1 }
0x1425   :  { %1724 = vpow2.f32 %v1417_v55 }
0x1426   :  { %1726 = vpow2.f32 %v1418_v56 }
0x142a   :  { %v1721_v3 = vpop.eup %1720 }
0x142b   :  { %1280 = vrot.lane.b32.xlu0 %v1721_v3, %s1739_s7 }
0x142e   :  { %v1723_v2 = vpop.eup %1722 }
0x142f   :  { %1304 = vrot.lane.b32.xlu1 %v1723_v2, %s1739_s7  ;;  %v1725_v49 = vpop.eup %1724 }
0x1430   :  { %v1274_v58 = vadd.f32 1.0, %v1725_v49  ;;  %v1727_v0 = vpop.eup %1726 }
0x1431   :  { %v1298_v59 = vadd.f32 1.0, %v1727_v0 }
0x1432   :  { %1728 = vrcp.f32 %v1274_v58 }
0x1433   :  { %1730 = vrcp.f32 %v1298_v59 }
0x143c   :  { %v1729_v4 = vpop.eup %1728 }
0x143d   :  { %v1731_v62 = vpop.eup %1730  ;;  %v1278_v8 = vmul.f32 %v1729_v4, %v1129_v21 }
0x143e   :  { %v1302_v11 = vmul.f32 %v1731_v62, %v1153_v20 }
0x149d   :  { %v1281_v57 = vpop.permute.xlu0 %1280 }
0x149e   :  { %v1283_v61 = vmul.f32 %v1729_v4, %v1281_v57 }
0x14a0   :  { %1285 = vrot.lane.b32.xlu0 %v1283_v61, %s1740_s8 }
0x14a1   :  { %v1305_v5 = vpop.permute.xlu1 %1304 }
0x14a2   :  { %v1307_v6 = vmul.f32 %v1731_v62, %v1305_v5 }
0x14a4   :  { %1309 = vrot.lane.b32.xlu1 %v1307_v6, %s1740_s8 }
0x1512   :  { %v1286_v7 = vpop.permute.xlu0 %1285 }
0x1513   :  { %v1288_v10 = vadd.f32 %v1286_v7, %v1278_v8 }
0x1515   :  { %1732 = vtanh.f32 %v1288_v10 }
0x1516   :  { %v1310_v12 = vpop.permute.xlu1 %1309 }
0x1517   :  { %v1312_v14 = vadd.f32 %v1310_v12, %v1302_v11 }
0x1519   :  { %1734 = vtanh.f32 %v1312_v14 }
0x151f   :  { %v1733_v15 = vpop.eup %1732 }
0x1520   :  { %1291 = vrot.lane.b32.xlu0 %v1733_v15, %s1739_s7 }
0x1523   :  { %v1735_v17 = vpop.eup %1734 }
0x1524   :  { %1315 = vrot.lane.b32.xlu1 %v1735_v17, %s1739_s7  ;;  %193 = vrot.lane.b32.xlu0 %v1844_v43, %s1740_s8 }
0x1528   :  { %198 = vrot.lane.b32.xlu1 %v1848_v46, %s1739_s7  ;;  %355 = vrot.lane.b32.xlu0 %v1889_v27, %s1740_s8 }
0x152c   :  { %361 = vrot.lane.b32.xlu1 %v1893_v30, %s1739_s7  ;;  %517 = vrot.lane.b32.xlu0 %v1934_v13, %s1740_s8 }
0x1530   :  { %523 = vrot.lane.b32.xlu1 %v1938_v16, %s1739_s7  ;;  %679 = vrot.lane.b32.xlu0 %v1979_v60, %s1740_s8 }
0x1534   :  { %685 = vrot.lane.b32.xlu1 %v1983_v63, %s1739_s7  ;;  %841 = vrot.lane.b32.xlu0 %v2024_v50, %s1740_s8 }
0x1538   :  { %846 = vrot.lane.b32.xlu1 %v2028_v53, %s1739_s7  ;;  %1001 = vrot.lane.b32.xlu0 %v2069_v40, %s1740_s8 }
0x153c   :  { %1006 = vrot.lane.b32.xlu1 %v2073_v44, %s1739_s7  ;;  %1161 = vrot.lane.b32.xlu0 %v2106_v28, %s1740_s8 }
0x1540   :  { %1166 = vrot.lane.b32.xlu1 %v2110_v32, %s1739_s7 }
0x1592   :  { %v1292_v43 = vpop.permute.xlu0 %1291 }
0x1593   :  { %v1294_v46 = vmul.f32 %v1729_v4, %v1292_v43 }
0x1595   :  { %1320 = vrot.lane.b32.xlu0 %v1294_v46, %s1740_s8 }
0x1596   :  { %v1316_v27 = vpop.permute.xlu1 %1315  ;;  %v194_v30 = vpop.permute.xlu0 %193 }
0x1597   :  { %v1318_v13 = vmul.f32 %v1731_v62, %v1316_v27  ;;  %196 = vst.msk [vmem:[%s2243_s4] sm:$0xff] %vm43_vm1, %v194_v30 }
0x1599   :  { %1325 = vrot.lane.b32.xlu1 %v1318_v13, %s1739_s7  ;;  %1330 = vrot.lane.b32.xlu0 %v1318_v13, %s1740_s8 }
0x159a   :  { %v199_v16 = vpop.permute.xlu1 %198  ;;  %v356_v60 = vpop.permute.xlu0 %355 }
0x159b   :  { %1365 = vst.msk [vmem:[%s2243_s4 + $0x38] sm:$0xff] %vm202_vm2, %v199_v16 }
0x159c   :  { %1372 = vst.msk [vmem:[%s2243_s4 + $0x8] sm:$0xff] %vm43_vm1, %v356_v60 }
0x159d   :  { %1336 = vrot.lane.b32.xlu1 %v1288_v10, %s1741_s27  ;;  %1341 = vrot.lane.b32.xlu0 %v1312_v14, %s1741_s27 }
0x159e   :  { %v362_v63 = vpop.permute.xlu1 %361  ;;  %v518_v50 = vpop.permute.xlu0 %517 }
0x159f   :  { %1373 = vst.msk [vmem:[%s2243_s4 + $0x30] sm:$0xff] %vm202_vm2, %v362_v63 }
0x15a0   :  { %1380 = vst.msk [vmem:[%s2243_s4 + $0x10] sm:$0xff] %vm43_vm1, %v518_v50 }
0x15a2   :  { %v524_v53 = vpop.permute.xlu1 %523  ;;  %v680_v40 = vpop.permute.xlu0 %679 }
0x15a3   :  { %1381 = vst.msk [vmem:[%s2243_s4 + $0x28] sm:$0xff] %vm202_vm2, %v524_v53 }
0x15a4   :  { %1388 = vst.msk [vmem:[%s2243_s4 + $0x18] sm:$0xff] %vm43_vm1, %v680_v40 }
0x15a6   :  { %v686_v44 = vpop.permute.xlu1 %685  ;;  %v842_v18 = vpop.permute.xlu0 %841 }
0x15a7   :  { %1389 = vst.msk [vmem:[%s2243_s4 + $0x20] sm:$0xff] %vm202_vm2, %v686_v44 }
0x15a8   :  { %1396 = vst.msk [vmem:[%s2243_s4 + $0x20] sm:$0xff] %vm43_vm1, %v842_v18 }
0x15aa   :  { %v847_v19 = vpop.permute.xlu1 %846  ;;  %v1002_v9 = vpop.permute.xlu0 %1001 }
0x15ab   :  { %1397 = vst.msk [vmem:[%s2243_s4 + $0x18] sm:$0xff] %vm202_vm2, %v847_v19 }
0x15ac   :  { %1404 = vst.msk [vmem:[%s2243_s4 + $0x28] sm:$0xff] %vm43_vm1, %v1002_v9 }
0x15ae   :  { %v1007_v21 = vpop.permute.xlu1 %1006  ;;  %v1162_v22 = vpop.permute.xlu0 %1161 }
0x15af   :  { %1405 = vst.msk [vmem:[%s2243_s4 + $0x10] sm:$0xff] %vm202_vm2, %v1007_v21 }
0x15b0   :  { %1412 = vst.msk [vmem:[%s2243_s4 + $0x30] sm:$0xff] %vm43_vm1, %v1162_v22 }
0x15b2   :  { %v1167_v23 = vpop.permute.xlu1 %1166 }
0x15b3   :  { %1413 = vst.msk [vmem:[%s2243_s4 + $0x8] sm:$0xff] %vm202_vm2, %v1167_v23 }
0x1607   :  { %v1321_v20 = vpop.permute.xlu0 %1320 }
0x1608   :  { %1419 = vst.msk [vmem:[%s2243_s4 + $0x38] sm:$0xff] %vm43_vm1, %v1321_v20  ;;  %1329 = vst.msk [vmem:[%s2244_s5] sm:$0xff] %vm43_vm1, %v1321_v20 }
0x160b   :  { %v1326_v24 = vpop.permute.xlu1 %1325  ;;  %v1331_v25 = vpop.permute.xlu0 %1330 }
0x160c   :  { %1328 = vst.msk [vmem:[%s2243_s4] sm:$0xff] %vm202_vm2, %v1326_v24 }
0x160d   :  { %1420 = vst.msk [vmem:[%s2244_s5 + $0x8] sm:$0xff] %vm43_vm1, %v1331_v25 }
0x160f   :  { %v1337_v26 = vpop.permute.xlu1 %1336  ;;  %v1342_v28 = vpop.permute.xlu0 %1341 }
0x1610   :  { %1339 = vst.msk [vmem:[%s2245_s6] sm:$0xff] %vm43_vm1, %v1337_v26  ;;  %1421 = vst.msk [vmem:[%s2245_s6 + $0x8] sm:$0xff] %vm43_vm1, %v1342_v28 }

// kernel: sandhi_encoder_forward.7
= control target key start
LH: loop header
LB: loop body
LE: loop exit
PB: predicated region body
PF: predicated region fallthrough
CT: control target
= control target key end

     0   :  { %v1912_v0 = vmov 0.0   ;;  %vm1913_vm0 = vmmov 0   ;;  %v1914_v5 = vmov 0   ;;  %s1915_s15 = smov 64   ;;  %s1916_s16 = smov 32   ;;  %vm49_vm1 = vcmask 261120   ;;  %s2555_s2 = inlined_call_operand.vmem [shape: bf16[32,128], index: 2, kind: input, shape index: {}]   ;;  %s2556_s3 = inlined_call_operand.vmem [shape: bf16[32,128], index: 3, kind: input, shape index: {}]   ;;  %s2557_s0 = inlined_call_operand.vmem [shape: bf16[8,8,128], index: 0, kind: input, shape index: {}]   ;;  %s2558_s1 = inlined_call_operand.vmem [shape: bf16[8,8,128], index: 1, kind: input, shape index: {}]   ;;  %s2559_s6 = inlined_call_operand.vmem [shape: f32[8,8,64], index: 6, kind: output, shape index: {0}]   ;;  %s2560_s7 = inlined_call_operand.vmem [shape: f32[2,8,32], index: 7, kind: output, shape index: {1}]   ;;  %s2561_s4 = inlined_call_operand.vmem [shape: f32[1,1,64], index: 4, kind: input, shape index: {}]   ;;  %s2562_s5 = inlined_call_operand.vmem [shape: f32[1,1,64], index: 5, kind: input, shape index: {}]   ;;  %s2563_s8 = inlined_call_operand.vmem [shape: f32[2,8,32], index: 8, kind: output, shape index: {2}]  }
   0x1   :  { %1630 = vmatprep.subr.bf16.mxu0 %v1912_v0  ;;  %v1967_v1 = vld [vmem:[%s2555_s2] sm:$0xff]   ;;  %1638 = vmatprep.subr.bf16.mxu1 %v1912_v0  ;;  %v1983_v3 = vld [vmem:[%s2555_s2 + $0x8] sm:$0xff]   ;;  %v2015_v7 = vld [vmem:[%s2558_s1 + $0x18] sm:$0xff]   ;;  %vm208_vm2 = vcmask 523520   ;;  %vm1360_vm3 = vcmask 523264  }
   0x2   :  { %v1973_v2 = vld [vmem:[%s2556_s3] sm:$0xff]   ;;  %1634 = vmatprep.mubr.msk.bf16.mxu0 %vm1913_vm0, %v1912_v0  ;;  %1642 = vmatprep.mubr.msk.bf16.mxu1 %vm1913_vm0, %v1912_v0  ;;  %v1990_v4 = vld [vmem:[%s2556_s3 + $0x8] sm:$0xff]   ;;  %v96_v9 = vunpack.c.h.bf16 %v2015_v7  ;;  %v263_v55 = vunpack.c.l.bf16 %v2015_v7 }
   0x3   :  { %1631 = vmatpush3.bf16.msra.mxu0 %v1967_v1  ;;  %1639 = vmatpush3.bf16.msra.mxu1 %v1973_v2  ;;  %v35_v6 = vld [vmem:[%s2557_s0] sm:$0xf]  ;;  %v2057_v50 = vld [vmem:[%s2557_s0 + $0x4] sm:$0xff]  }
   0x4   :  { %1632 = vmatprep.subr.bf16.mxu0 %v1912_v0  ;;  %1640 = vmatprep.subr.bf16.mxu1 %v1912_v0  ;;  %v36_v8 = vunpack.c.l.bf16 %v35_v6  ;;  %v212_v51 = vunpack.c.l.bf16 %v2057_v50 }
   0x7   :  { %1633 = vmatpush3.bf16.msra.mxu0 %v1983_v3  ;;  %1641 = vmatpush3.bf16.msra.mxu1 %v1990_v4 }
   0x8   :  { %1646 = vmatprep.subr.bf16.mxu0 %v1912_v0  ;;  %1654 = vmatprep.subr.bf16.mxu1 %v1912_v0 }
   0xa   :  { %1635 = vmatmul.mubr.bf16.vlgmr.msra.gmra.mrb[0].mxu0 %v1914_v5  ;;  %1643 = vmatmul.mubr.bf16.vlgmr.msra.gmra.mrb[0].mxu1 %v1914_v5 }
   0xb   :  { %1647 = vmatpush3.bf16.msra.mxu0 %v1967_v1  ;;  %1655 = vmatpush3.bf16.msra.mxu1 %v1973_v2 }
   0xc   :  { %1648 = vmatprep.subr.bf16.mxu0 %v1912_v0  ;;  %1650 = vmatprep.mubr.msk.bf16.mxu0 %vm1913_vm0, %v1912_v0 }
   0xd   :  { %1656 = vmatprep.subr.bf16.mxu1 %v1912_v0  ;;  %1658 = vmatprep.mubr.msk.bf16.mxu1 %vm1913_vm0, %v1912_v0 }
   0xf   :  { %1649 = vmatpush3.bf16.msra.mxu0 %v1983_v3  ;;  %1657 = vmatpush3.bf16.msra.mxu1 %v1990_v4 }
  0x10   :  { %1662 = vmatprep.subr.bf16.mxu0 %v1912_v0  ;;  %1670 = vmatprep.subr.bf16.mxu1 %v1912_v0 }
  0xdd   :  { %v87_v10 = vpop.f32.mrb[0].mxu0  ;;  %v143_v13 = vpop.f32.mrb[0].mxu1 }
  0xde   :  { %v93_v11 = vadd.f32 %v87_v10, %v36_v8  ;;  %v1636_v12 = vpop.f32.mrb[1].mxu0  ;;  %v149_v14 = vadd.f32 %v143_v13, %v96_v9  ;;  %v1644_v16 = vpop.f32.mrb[1].mxu1 }
  0xdf   :  { %v90_v15 = vpop.f32.mrb[2].mxu0  ;;  %v146_v18 = vpop.f32.mrb[2].mxu1 }
  0xe0   :  { %1768 = vtanh.f32 %v93_v11  ;;  %v1637_v17 = vpop.f32.mrb[3].mxu0  ;;  %v1645_v19 = vpop.f32.mrb[3].mxu1  ;;  %v1521_v22 = vmul.f32 -1.442695, %v93_v11  ;;  %v1522_v23 = vmul.f32 -1.442695, %v149_v14 }
  0xe1   :  { %1770 = vtanh.f32 %v149_v14 }
  0xe2   :  { %1772 = vpow2.f32 %v1521_v22 }
  0xe3   :  { %1774 = vpow2.f32 %v1522_v23 }
  0xea   :  { %v1769_v20 = vpop.eup %1768 }
  0xeb   :  { %159 = vrot.lane.b32.xlu0 %v1769_v20, %s1915_s15  ;;  %v1771_v21 = vpop.eup %1770 }
  0xec   :  { %v1773_v24 = vpop.eup %1772 }
  0xed   :  { %v153_v25 = vadd.f32 1.0, %v1773_v24  ;;  %v1775_v26 = vpop.eup %1774 }
  0xee   :  { %v177_v27 = vadd.f32 1.0, %v1775_v26 }
  0xef   :  { %183 = vrot.lane.b32.xlu0 %v1771_v21, %s1915_s15  ;;  %1776 = vrcp.f32 %v153_v25 }
  0xf0   :  { %1778 = vrcp.f32 %v177_v27 }
  0xf9   :  { %v1777_v28 = vpop.eup %1776 }
  0xfa   :  { %v1779_v31 = vpop.eup %1778  ;;  %v157_v34 = vmul.f32 0.0, %v1777_v28 }
  0xfb   :  { %v181_v37 = vmul.f32 0.0, %v1779_v31 }
 0x15d   :  { %v160_v29 = vpop.permute.xlu0 %159 }
 0x15e   :  { %v162_v30 = vmul.f32 %v1777_v28, %v160_v29 }
 0x160   :  { %164 = vrot.lane.b32.xlu1 %v162_v30, %s1916_s16 }
 0x161   :  { %v184_v32 = vpop.permute.xlu0 %183 }
 0x162   :  { %v186_v33 = vmul.f32 %v1779_v31, %v184_v32 }
 0x164   :  { %188 = vrot.lane.b32.xlu1 %v186_v33, %s1916_s16 }
 0x1d2   :  { %v165_v35 = vpop.permute.xlu1 %164 }
 0x1d3   :  { %v2022_v36 = vadd.f32 %v165_v35, %v157_v34  ;;  %v374_v34 = vunpack.c.h.bf16 %v2057_v50  ;;  %v2103_v35 = vld [vmem:[%s2558_s1 + $0x10] sm:$0xff]  }
 0x1d5   :  { %1780 = vtanh.f32 %v2022_v36 }
 0x1d6   :  { %v189_v38 = vpop.permute.xlu1 %188 }
 0x1d7   :  { %v2025_v39 = vadd.f32 %v189_v38, %v181_v37 }
 0x1d9   :  { %1782 = vtanh.f32 %v2025_v39 }
 0x1df   :  { %v1781_v40 = vpop.eup %1780 }
 0x1e0   :  { %170 = vrot.lane.b32.xlu0 %v1781_v40, %s1915_s15 }
 0x1e3   :  { %v1783_v41 = vpop.eup %1782 }
 0x1e4   :  { %194 = vrot.lane.b32.xlu1 %v1783_v41, %s1915_s15 }
 0x252   :  { %v171_v42 = vpop.permute.xlu0 %170 }
 0x253   :  { %v2030_v43 = vmul.f32 %v1777_v28, %v171_v42 }
 0x255   :  { %v213_v44 = vpack.c.bf16 %v2030_v43, %v2030_v43 }
 0x256   :  { %v195_v45 = vpop.permute.xlu1 %194 }
 0x257   :  { %v2034_v46 = vmul.f32 %v1779_v31, %v195_v45  ;;  %215 = vrot.lane.b32.xlu0 %v213_v44, %s1916_s16 }
 0x259   :  { %v264_v47 = vpack.c.bf16 %v2034_v46, %v2034_v46 }
 0x25b   :  { %266 = vrot.lane.b32.xlu1 %v264_v47, %s1916_s16 }
 0x2c9   :  { %v216_v48 = vpop.permute.xlu0 %215 }
 0x2ca   :  { %1651 = vmatmul.mubr.msk.bf16.vlgmr.msra.gmra.mrb[4].mxu0 %vm49_vm1, %v216_v48 }
 0x2cb   :  { %1663 = vmatpush3.bf16.msra.mxu0 %v1967_v1  ;;  %1666 = vmatprep.mubr.msk.bf16.mxu0 %vm1913_vm0, %v1912_v0 }
 0x2cc   :  { %1664 = vmatprep.subr.bf16.mxu0 %v1912_v0 }
 0x2cd   :  { %v267_v49 = vpop.permute.xlu1 %266 }
 0x2ce   :  { %1659 = vmatmul.mubr.msk.bf16.vlgmr.msra.gmra.mrb[4].mxu1 %vm49_vm1, %v267_v49 }
 0x2cf   :  { %1671 = vmatpush3.bf16.msra.mxu1 %v1973_v2  ;;  %1665 = vmatpush3.bf16.msra.mxu0 %v1983_v3 }
 0x2d0   :  { %1672 = vmatprep.subr.bf16.mxu1 %v1912_v0  ;;  %1674 = vmatprep.mubr.msk.bf16.mxu1 %vm1913_vm0, %v1912_v0 }
 0x2d1   :  { %1678 = vmatprep.subr.bf16.mxu0 %v1912_v0 }
 0x2d3   :  { %1673 = vmatpush3.bf16.msra.mxu1 %v1990_v4 }
 0x2d4   :  { %1686 = vmatprep.subr.bf16.mxu1 %v1912_v0 }
 0x39d   :  { %v254_v52 = vpop.f32.mrb[4].mxu0 }
 0x39e   :  { %v260_v53 = vadd.f32 %v254_v52, %v212_v51  ;;  %v1652_v54 = vpop.f32.mrb[5].mxu0 }
 0x39f   :  { %v257_v56 = vpop.f32.mrb[6].mxu0 }
 0x3a0   :  { %1784 = vtanh.f32 %v260_v53  ;;  %v1653_v57 = vpop.f32.mrb[7].mxu0  ;;  %v1528_v6 = vmul.f32 -1.442695, %v260_v53 }
 0x3a1   :  { %v305_v58 = vpop.f32.mrb[4].mxu1 }
 0x3a2   :  { %v311_v59 = vadd.f32 %v305_v58, %v263_v55  ;;  %v1660_v60 = vpop.f32.mrb[5].mxu1 }
 0x3a3   :  { %v308_v61 = vpop.f32.mrb[6].mxu1 }
 0x3a4   :  { %1786 = vtanh.f32 %v311_v59  ;;  %v1661_v62 = vpop.f32.mrb[7].mxu1  ;;  %v1529_v8 = vmul.f32 -1.442695, %v311_v59 }
 0x3a5   :  { %1788 = vpow2.f32 %v1528_v6 }
 0x3a6   :  { %1790 = vpow2.f32 %v1529_v8 }
 0x3aa   :  { %v1785_v63 = vpop.eup %1784 }
 0x3ab   :  { %321 = vrot.lane.b32.xlu0 %v1785_v63, %s1915_s15 }
 0x3ae   :  { %v1787_v5 = vpop.eup %1786 }
 0x3af   :  { %345 = vrot.lane.b32.xlu1 %v1787_v5, %s1915_s15  ;;  %v1789_v7 = vpop.eup %1788 }
 0x3b0   :  { %v315_v9 = vadd.f32 1.0, %v1789_v7  ;;  %v1791_v10 = vpop.eup %1790 }
 0x3b1   :  { %v339_v11 = vadd.f32 1.0, %v1791_v10 }
 0x3b2   :  { %1792 = vrcp.f32 %v315_v9 }
 0x3b3   :  { %1794 = vrcp.f32 %v339_v11 }
 0x3bc   :  { %v1793_v12 = vpop.eup %1792 }
 0x3bd   :  { %v1795_v15 = vpop.eup %1794  ;;  %v319_v18 = vmul.f32 %v1793_v12, %v2022_v36 }
 0x3be   :  { %v343_v21 = vmul.f32 %v1795_v15, %v2025_v39  ;;  %v425_v39 = vunpack.c.h.bf16 %v2103_v35 }
 0x41d   :  { %v322_v13 = vpop.permute.xlu0 %321 }
 0x41e   :  { %v324_v14 = vmul.f32 %v1793_v12, %v322_v13 }
 0x420   :  { %326 = vrot.lane.b32.xlu0 %v324_v14, %s1916_s16 }
 0x421   :  { %v346_v16 = vpop.permute.xlu1 %345 }
 0x422   :  { %v348_v17 = vmul.f32 %v1795_v15, %v346_v16 }
 0x424   :  { %350 = vrot.lane.b32.xlu1 %v348_v17, %s1916_s16 }
 0x492   :  { %v327_v19 = vpop.permute.xlu0 %326 }
 0x493   :  { %v2066_v20 = vadd.f32 %v327_v19, %v319_v18 }
 0x495   :  { %1796 = vtanh.f32 %v2066_v20 }
 0x496   :  { %v351_v22 = vpop.permute.xlu1 %350 }
 0x497   :  { %v2070_v23 = vadd.f32 %v351_v22, %v343_v21 }
 0x499   :  { %1798 = vtanh.f32 %v2070_v23 }
 0x49f   :  { %v1797_v24 = vpop.eup %1796 }
 0x4a0   :  { %332 = vrot.lane.b32.xlu0 %v1797_v24, %s1915_s15 }
 0x4a3   :  { %v1799_v25 = vpop.eup %1798 }
 0x4a4   :  { %356 = vrot.lane.b32.xlu1 %v1799_v25, %s1915_s15  ;;  %v587_v25 = vunpack.c.l.bf16 %v2103_v35 }
 0x512   :  { %v333_v26 = vpop.permute.xlu0 %332 }
 0x513   :  { %v2075_v27 = vmul.f32 %v1793_v12, %v333_v26 }
 0x515   :  { %v375_v28 = vpack.c.bf16 %v2075_v27, %v2075_v27 }
 0x516   :  { %v357_v29 = vpop.permute.xlu1 %356 }
 0x517   :  { %v2079_v30 = vmul.f32 %v1795_v15, %v357_v29  ;;  %377 = vrot.lane.b32.xlu0 %v375_v28, %s1916_s16 }
 0x519   :  { %v426_v31 = vpack.c.bf16 %v2079_v30, %v2079_v30 }
 0x51b   :  { %428 = vrot.lane.b32.xlu1 %v426_v31, %s1916_s16 }
 0x589   :  { %v378_v32 = vpop.permute.xlu0 %377 }
 0x58a   :  { %1667 = vmatmul.mubr.msk.bf16.vlgmr.msra.gmra.mrb[8].mxu0 %vm49_vm1, %v378_v32 }
 0x58b   :  { %1679 = vmatpush3.bf16.msra.mxu0 %v1967_v1  ;;  %1682 = vmatprep.mubr.msk.bf16.mxu0 %vm1913_vm0, %v1912_v0 }
 0x58c   :  { %1680 = vmatprep.subr.bf16.mxu0 %v1912_v0 }
 0x58d   :  { %v429_v33 = vpop.permute.xlu1 %428 }
 0x58e   :  { %1675 = vmatmul.mubr.msk.bf16.vlgmr.msra.gmra.mrb[8].mxu1 %vm49_vm1, %v429_v33 }
 0x58f   :  { %1687 = vmatpush3.bf16.msra.mxu1 %v1973_v2  ;;  %1681 = vmatpush3.bf16.msra.mxu0 %v1983_v3 }
 0x590   :  { %1688 = vmatprep.subr.bf16.mxu1 %v1912_v0  ;;  %1690 = vmatprep.mubr.msk.bf16.mxu1 %vm1913_vm0, %v1912_v0 }
 0x591   :  { %1694 = vmatprep.subr.bf16.mxu0 %v1912_v0 }
 0x593   :  { %1689 = vmatpush3.bf16.msra.mxu1 %v1990_v4 }
 0x594   :  { %1702 = vmatprep.subr.bf16.mxu1 %v1912_v0 }
 0x65d   :  { %v416_v36 = vpop.f32.mrb[8].mxu0 }
 0x65e   :  { %v422_v37 = vadd.f32 %v416_v36, %v374_v34  ;;  %v1668_v38 = vpop.f32.mrb[9].mxu0 }
 0x65f   :  { %v419_v40 = vpop.f32.mrb[10].mxu0 }
 0x660   :  { %1800 = vtanh.f32 %v422_v37  ;;  %v1669_v41 = vpop.f32.mrb[11].mxu0  ;;  %v1536_v51 = vmul.f32 -1.442695, %v422_v37 }
 0x661   :  { %v467_v42 = vpop.f32.mrb[8].mxu1 }
 0x662   :  { %v473_v44 = vadd.f32 %v467_v42, %v425_v39  ;;  %v1676_v45 = vpop.f32.mrb[9].mxu1 }
 0x663   :  { %v470_v47 = vpop.f32.mrb[10].mxu1 }
 0x664   :  { %1802 = vtanh.f32 %v473_v44  ;;  %v1677_v48 = vpop.f32.mrb[11].mxu1  ;;  %v1537_v52 = vmul.f32 -1.442695, %v473_v44 }
 0x665   :  { %1804 = vpow2.f32 %v1536_v51 }
 0x666   :  { %1806 = vpow2.f32 %v1537_v52 }
 0x66a   :  { %v1801_v49 = vpop.eup %1800 }
 0x66b   :  { %483 = vrot.lane.b32.xlu0 %v1801_v49, %s1915_s15 }
 0x66e   :  { %v1803_v50 = vpop.eup %1802 }
 0x66f   :  { %507 = vrot.lane.b32.xlu1 %v1803_v50, %s1915_s15  ;;  %v1805_v53 = vpop.eup %1804 }
 0x670   :  { %v477_v54 = vadd.f32 1.0, %v1805_v53  ;;  %v1807_v55 = vpop.eup %1806 }
 0x671   :  { %v501_v56 = vadd.f32 1.0, %v1807_v55 }
 0x672   :  { %1808 = vrcp.f32 %v477_v54 }
 0x673   :  { %1810 = vrcp.f32 %v501_v56 }
 0x67c   :  { %v1809_v57 = vpop.eup %1808 }
 0x67d   :  { %v1811_v60 = vpop.eup %1810  ;;  %v481_v63 = vmul.f32 %v1809_v57, %v2066_v20  ;;  %v2147_v20 = vld [vmem:[%s2557_s0 + $0xc] sm:$0xff]  }
 0x67e   :  { %v505_v8 = vmul.f32 %v1811_v60, %v2070_v23  ;;  %v536_v21 = vunpack.c.l.bf16 %v2147_v20 }
 0x6dd   :  { %v484_v58 = vpop.permute.xlu0 %483 }
 0x6de   :  { %v486_v59 = vmul.f32 %v1809_v57, %v484_v58 }
 0x6e0   :  { %488 = vrot.lane.b32.xlu0 %v486_v59, %s1916_s16 }
 0x6e1   :  { %v508_v61 = vpop.permute.xlu1 %507 }
 0x6e2   :  { %v510_v62 = vmul.f32 %v1811_v60, %v508_v61 }
 0x6e4   :  { %512 = vrot.lane.b32.xlu1 %v510_v62, %s1916_s16 }
 0x752   :  { %v489_v5 = vpop.permute.xlu0 %488 }
 0x753   :  { %v2111_v6 = vadd.f32 %v489_v5, %v481_v63 }
 0x755   :  { %1812 = vtanh.f32 %v2111_v6 }
 0x756   :  { %v513_v7 = vpop.permute.xlu1 %512 }
 0x757   :  { %v2115_v9 = vadd.f32 %v513_v7, %v505_v8  ;;  %v698_v7 = vunpack.c.h.bf16 %v2147_v20 }
 0x759   :  { %1814 = vtanh.f32 %v2115_v9 }
 0x75f   :  { %v1813_v10 = vpop.eup %1812 }
 0x760   :  { %494 = vrot.lane.b32.xlu0 %v1813_v10, %s1915_s15 }
 0x763   :  { %v1815_v11 = vpop.eup %1814 }
 0x764   :  { %518 = vrot.lane.b32.xlu1 %v1815_v11, %s1915_s15 }
 0x7d2   :  { %v495_v12 = vpop.permute.xlu0 %494 }
 0x7d3   :  { %v2120_v13 = vmul.f32 %v1809_v57, %v495_v12 }
 0x7d5   :  { %v537_v14 = vpack.c.bf16 %v2120_v13, %v2120_v13 }
 0x7d6   :  { %v519_v15 = vpop.permute.xlu1 %518 }
 0x7d7   :  { %v2124_v16 = vmul.f32 %v1811_v60, %v519_v15  ;;  %539 = vrot.lane.b32.xlu0 %v537_v14, %s1916_s16 }
 0x7d9   :  { %v588_v17 = vpack.c.bf16 %v2124_v16, %v2124_v16 }
 0x7db   :  { %590 = vrot.lane.b32.xlu1 %v588_v17, %s1916_s16 }
 0x849   :  { %v540_v18 = vpop.permute.xlu0 %539 }
 0x84a   :  { %1683 = vmatmul.mubr.msk.bf16.vlgmr.msra.gmra.mrb[12].mxu0 %vm49_vm1, %v540_v18 }
 0x84b   :  { %1695 = vmatpush3.bf16.msra.mxu0 %v1967_v1  ;;  %1698 = vmatprep.mubr.msk.bf16.mxu0 %vm1913_vm0, %v1912_v0 }
 0x84c   :  { %1696 = vmatprep.subr.bf16.mxu0 %v1912_v0 }
 0x84d   :  { %v591_v19 = vpop.permute.xlu1 %590 }
 0x84e   :  { %1691 = vmatmul.mubr.msk.bf16.vlgmr.msra.gmra.mrb[12].mxu1 %vm49_vm1, %v591_v19 }
 0x84f   :  { %1703 = vmatpush3.bf16.msra.mxu1 %v1973_v2  ;;  %1697 = vmatpush3.bf16.msra.mxu0 %v1983_v3 }
 0x850   :  { %1704 = vmatprep.subr.bf16.mxu1 %v1912_v0  ;;  %1706 = vmatprep.mubr.msk.bf16.mxu1 %vm1913_vm0, %v1912_v0 }
 0x851   :  { %1710 = vmatprep.subr.bf16.mxu0 %v1912_v0 }
 0x853   :  { %1705 = vmatpush3.bf16.msra.mxu1 %v1990_v4 }
 0x854   :  { %1718 = vmatprep.subr.bf16.mxu1 %v1912_v0 }
 0x91d   :  { %v578_v22 = vpop.f32.mrb[12].mxu0 }
 0x91e   :  { %v584_v23 = vadd.f32 %v578_v22, %v536_v21  ;;  %v1684_v24 = vpop.f32.mrb[13].mxu0 }
 0x91f   :  { %v581_v26 = vpop.f32.mrb[14].mxu0 }
 0x920   :  { %1816 = vtanh.f32 %v584_v23  ;;  %v1685_v28 = vpop.f32.mrb[15].mxu0  ;;  %v1544_v38 = vmul.f32 -1.442695, %v584_v23 }
 0x921   :  { %v629_v29 = vpop.f32.mrb[12].mxu1 }
 0x922   :  { %v635_v31 = vadd.f32 %v629_v29, %v587_v25  ;;  %v1692_v32 = vpop.f32.mrb[13].mxu1 }
 0x923   :  { %v632_v33 = vpop.f32.mrb[14].mxu1 }
 0x924   :  { %1818 = vtanh.f32 %v635_v31  ;;  %v1693_v34 = vpop.f32.mrb[15].mxu1  ;;  %v1545_v39 = vmul.f32 -1.442695, %v635_v31 }
 0x925   :  { %1820 = vpow2.f32 %v1544_v38 }
 0x926   :  { %1822 = vpow2.f32 %v1545_v39 }
 0x92a   :  { %v1817_v36 = vpop.eup %1816 }
 0x92b   :  { %645 = vrot.lane.b32.xlu0 %v1817_v36, %s1915_s15 }
 0x92e   :  { %v1819_v37 = vpop.eup %1818 }
 0x92f   :  { %669 = vrot.lane.b32.xlu1 %v1819_v37, %s1915_s15  ;;  %v1821_v35 = vpop.eup %1820 }
 0x930   :  { %v639_v40 = vadd.f32 1.0, %v1821_v35  ;;  %v1823_v41 = vpop.eup %1822 }
 0x931   :  { %v663_v42 = vadd.f32 1.0, %v1823_v41 }
 0x932   :  { %1824 = vrcp.f32 %v639_v40 }
 0x933   :  { %1826 = vrcp.f32 %v663_v42 }
 0x93c   :  { %v1825_v44 = vpop.eup %1824 }
 0x93d   :  { %v1827_v48 = vpop.eup %1826  ;;  %v643_v51 = vmul.f32 %v1825_v44, %v2111_v6 }
 0x93e   :  { %v667_v54 = vmul.f32 %v1827_v48, %v2115_v9  ;;  %v2193_v9 = vld [vmem:[%s2558_s1 + $0x8] sm:$0xff]  }
 0x93f   :  { %v749_v14 = vunpack.c.h.bf16 %v2193_v9 }
 0x99d   :  { %v646_v45 = vpop.permute.xlu0 %645 }
 0x99e   :  { %v648_v47 = vmul.f32 %v1825_v44, %v646_v45 }
 0x9a0   :  { %650 = vrot.lane.b32.xlu0 %v648_v47, %s1916_s16 }
 0x9a1   :  { %v670_v49 = vpop.permute.xlu1 %669 }
 0x9a2   :  { %v672_v50 = vmul.f32 %v1827_v48, %v670_v49 }
 0x9a4   :  { %674 = vrot.lane.b32.xlu1 %v672_v50, %s1916_s16 }
 0xa12   :  { %v651_v52 = vpop.permute.xlu0 %650 }
 0xa13   :  { %v2156_v53 = vadd.f32 %v651_v52, %v643_v51 }
 0xa15   :  { %1828 = vtanh.f32 %v2156_v53 }
 0xa16   :  { %v675_v55 = vpop.permute.xlu1 %674 }
 0xa17   :  { %v2160_v56 = vadd.f32 %v675_v55, %v667_v54 }
 0xa19   :  { %1830 = vtanh.f32 %v2160_v56 }
 0xa1f   :  { %v1829_v57 = vpop.eup %1828 }
 0xa20   :  { %656 = vrot.lane.b32.xlu0 %v1829_v57, %s1915_s15  ;;  %v2237_v57 = vld [vmem:[%s2557_s0 + $0x14] sm:$0xff]  }
 0xa23   :  { %v1831_v58 = vpop.eup %1830 }
 0xa24   :  { %680 = vrot.lane.b32.xlu1 %v1831_v58, %s1915_s15  ;;  %v858_v58 = vunpack.c.l.bf16 %v2237_v57 }
 0xa92   :  { %v657_v59 = vpop.permute.xlu0 %656 }
 0xa93   :  { %v2165_v60 = vmul.f32 %v1825_v44, %v657_v59 }
 0xa95   :  { %v699_v61 = vpack.c.bf16 %v2165_v60, %v2165_v60 }
 0xa96   :  { %v681_v62 = vpop.permute.xlu1 %680 }
 0xa97   :  { %v2169_v63 = vmul.f32 %v1827_v48, %v681_v62  ;;  %701 = vrot.lane.b32.xlu0 %v699_v61, %s1916_s16 }
 0xa99   :  { %v750_v5 = vpack.c.bf16 %v2169_v63, %v2169_v63 }
 0xa9b   :  { %752 = vrot.lane.b32.xlu1 %v750_v5, %s1916_s16  ;;  %v909_v5 = vunpack.c.l.bf16 %v2193_v9 }
 0xb09   :  { %v702_v6 = vpop.permute.xlu0 %701 }
 0xb0a   :  { %1699 = vmatmul.mubr.msk.bf16.vlgmr.msra.gmra.mrb[16].mxu0 %vm49_vm1, %v702_v6 }
 0xb0b   :  { %1711 = vmatpush3.bf16.msra.mxu0 %v1967_v1  ;;  %1714 = vmatprep.mubr.msk.bf16.mxu0 %vm1913_vm0, %v1912_v0 }
 0xb0c   :  { %1712 = vmatprep.subr.bf16.mxu0 %v1912_v0 }
 0xb0d   :  { %v753_v8 = vpop.permute.xlu1 %752 }
 0xb0e   :  { %1707 = vmatmul.mubr.msk.bf16.vlgmr.msra.gmra.mrb[16].mxu1 %vm49_vm1, %v753_v8 }
 0xb0f   :  { %1719 = vmatpush3.bf16.msra.mxu1 %v1973_v2  ;;  %1713 = vmatpush3.bf16.msra.mxu0 %v1983_v3 }
 0xb10   :  { %1720 = vmatprep.subr.bf16.mxu1 %v1912_v0  ;;  %1722 = vmatprep.mubr.msk.bf16.mxu1 %vm1913_vm0, %v1912_v0 }
 0xb11   :  { %1726 = vmatprep.subr.bf16.mxu0 %v1912_v0 }
 0xb13   :  { %1721 = vmatpush3.bf16.msra.mxu1 %v1990_v4 }
 0xb14   :  { %1734 = vmatprep.subr.bf16.mxu1 %v1912_v0 }
 0xbdd   :  { %v740_v10 = vpop.f32.mrb[16].mxu0 }
 0xbde   :  { %v746_v11 = vadd.f32 %v740_v10, %v698_v7  ;;  %v1700_v12 = vpop.f32.mrb[17].mxu0 }
 0xbdf   :  { %v743_v15 = vpop.f32.mrb[18].mxu0 }
 0xbe0   :  { %1832 = vtanh.f32 %v746_v11  ;;  %v1701_v17 = vpop.f32.mrb[19].mxu0  ;;  %v1552_v25 = vmul.f32 -1.442695, %v746_v11 }
 0xbe1   :  { %v791_v18 = vpop.f32.mrb[16].mxu1 }
 0xbe2   :  { %v797_v19 = vadd.f32 %v791_v18, %v749_v14  ;;  %v1708_v21 = vpop.f32.mrb[17].mxu1 }
 0xbe3   :  { %v794_v22 = vpop.f32.mrb[18].mxu1 }
 0xbe4   :  { %1834 = vtanh.f32 %v797_v19  ;;  %v1709_v23 = vpop.f32.mrb[19].mxu1  ;;  %v1553_v26 = vmul.f32 -1.442695, %v797_v19 }
 0xbe5   :  { %1836 = vpow2.f32 %v1552_v25 }
 0xbe6   :  { %1838 = vpow2.f32 %v1553_v26 }
 0xbea   :  { %v1833_v20 = vpop.eup %1832 }
 0xbeb   :  { %807 = vrot.lane.b32.xlu0 %v1833_v20, %s1915_s15 }
 0xbee   :  { %v1835_v24 = vpop.eup %1834 }
 0xbef   :  { %831 = vrot.lane.b32.xlu1 %v1835_v24, %s1915_s15  ;;  %v1837_v28 = vpop.eup %1836 }
 0xbf0   :  { %v801_v29 = vadd.f32 1.0, %v1837_v28  ;;  %v1839_v31 = vpop.eup %1838 }
 0xbf1   :  { %v825_v32 = vadd.f32 1.0, %v1839_v31 }
 0xbf2   :  { %1840 = vrcp.f32 %v801_v29 }
 0xbf3   :  { %1842 = vrcp.f32 %v825_v32 }
 0xbfc   :  { %v1841_v33 = vpop.eup %1840 }
 0xbfd   :  { %v1843_v37 = vpop.eup %1842  ;;  %v805_v35 = vmul.f32 %v1841_v33, %v2156_v53 }
 0xbfe   :  { %v829_v42 = vmul.f32 %v1843_v37, %v2160_v56 }
 0xc5d   :  { %v808_v34 = vpop.permute.xlu0 %807 }
 0xc5e   :  { %v810_v36 = vmul.f32 %v1841_v33, %v808_v34 }
 0xc60   :  { %812 = vrot.lane.b32.xlu0 %v810_v36, %s1916_s16 }
 0xc61   :  { %v832_v38 = vpop.permute.xlu1 %831 }
 0xc62   :  { %v834_v39 = vmul.f32 %v1843_v37, %v832_v38 }
 0xc64   :  { %836 = vrot.lane.b32.xlu1 %v834_v39, %s1916_s16 }
 0xcd2   :  { %v813_v40 = vpop.permute.xlu0 %812 }
 0xcd3   :  { %v2201_v41 = vadd.f32 %v813_v40, %v805_v35 }
 0xcd5   :  { %1844 = vtanh.f32 %v2201_v41 }
 0xcd6   :  { %v837_v44 = vpop.permute.xlu1 %836 }
 0xcd7   :  { %v2205_v45 = vadd.f32 %v837_v44, %v829_v42 }
 0xcd9   :  { %1846 = vtanh.f32 %v2205_v45 }
 0xcdf   :  { %v1845_v47 = vpop.eup %1844 }
 0xce0   :  { %818 = vrot.lane.b32.xlu0 %v1845_v47, %s1915_s15 }
 0xce3   :  { %v1847_v48 = vpop.eup %1846 }
 0xce4   :  { %842 = vrot.lane.b32.xlu1 %v1847_v48, %s1915_s15 }
 0xd52   :  { %v819_v49 = vpop.permute.xlu0 %818 }
 0xd53   :  { %v2210_v50 = vmul.f32 %v1841_v33, %v819_v49  ;;  %v2281_v49 = vld [vmem:[%s2558_s1] sm:$0xff]  }
 0xd55   :  { %v859_v51 = vpack.c.bf16 %v2210_v50, %v2210_v50 }
 0xd56   :  { %v843_v52 = vpop.permute.xlu1 %842 }
 0xd57   :  { %v2214_v53 = vmul.f32 %v1843_v37, %v843_v52  ;;  %861 = vrot.lane.b32.xlu0 %v859_v51, %s1916_s16 }
 0xd59   :  { %v910_v54 = vpack.c.bf16 %v2214_v53, %v2214_v53 }
 0xd5b   :  { %912 = vrot.lane.b32.xlu1 %v910_v54, %s1916_s16 }
 0xdc9   :  { %v862_v55 = vpop.permute.xlu0 %861 }
 0xdca   :  { %1715 = vmatmul.mubr.msk.bf16.vlgmr.msra.gmra.mrb[20].mxu0 %vm49_vm1, %v862_v55 }
 0xdcb   :  { %1727 = vmatpush3.bf16.msra.mxu0 %v1967_v1  ;;  %1730 = vmatprep.mubr.msk.bf16.mxu0 %vm1913_vm0, %v1912_v0 }
 0xdcc   :  { %1728 = vmatprep.subr.bf16.mxu0 %v1912_v0 }
 0xdcd   :  { %v913_v56 = vpop.permute.xlu1 %912 }
 0xdce   :  { %1723 = vmatmul.mubr.msk.bf16.vlgmr.msra.gmra.mrb[20].mxu1 %vm49_vm1, %v913_v56 }
 0xdcf   :  { %1735 = vmatpush3.bf16.msra.mxu1 %v1973_v2  ;;  %1729 = vmatpush3.bf16.msra.mxu0 %v1983_v3 }
 0xdd0   :  { %1736 = vmatprep.subr.bf16.mxu1 %v1912_v0  ;;  %1738 = vmatprep.mubr.msk.bf16.mxu1 %vm1913_vm0, %v1912_v0 }
 0xdd1   :  { %1742 = vmatprep.subr.bf16.mxu0 %v1912_v0 }
 0xdd3   :  { %1737 = vmatpush3.bf16.msra.mxu1 %v1990_v4 }
 0xdd4   :  { %1750 = vmatprep.subr.bf16.mxu1 %v1912_v0 }
 0xe9d   :  { %v900_v59 = vpop.f32.mrb[20].mxu0 }
 0xe9e   :  { %v906_v61 = vadd.f32 %v900_v59, %v858_v58  ;;  %v1716_v62 = vpop.f32.mrb[21].mxu0 }
 0xe9f   :  { %v903_v6 = vpop.f32.mrb[22].mxu0 }
 0xea0   :  { %1848 = vtanh.f32 %v906_v61  ;;  %v1717_v8 = vpop.f32.mrb[23].mxu0  ;;  %v1560_v18 = vmul.f32 -1.442695, %v906_v61 }
 0xea1   :  { %v951_v7 = vpop.f32.mrb[20].mxu1 }
 0xea2   :  { %v957_v10 = vadd.f32 %v951_v7, %v909_v5  ;;  %v1724_v11 = vpop.f32.mrb[21].mxu1 }
 0xea3   :  { %v954_v12 = vpop.f32.mrb[22].mxu1 }
 0xea4   :  { %1850 = vtanh.f32 %v957_v10  ;;  %v1725_v14 = vpop.f32.mrb[23].mxu1  ;;  %v1561_v19 = vmul.f32 -1.442695, %v957_v10 }
 0xea5   :  { %1852 = vpow2.f32 %v1560_v18 }
 0xea6   :  { %1854 = vpow2.f32 %v1561_v19 }
 0xeaa   :  { %v1849_v15 = vpop.eup %1848 }
 0xeab   :  { %967 = vrot.lane.b32.xlu0 %v1849_v15, %s1915_s15 }
 0xeae   :  { %v1851_v17 = vpop.eup %1850 }
 0xeaf   :  { %991 = vrot.lane.b32.xlu1 %v1851_v17, %s1915_s15  ;;  %v1853_v9 = vpop.eup %1852 }
 0xeb0   :  { %v961_v21 = vadd.f32 1.0, %v1853_v9  ;;  %v1855_v22 = vpop.eup %1854 }
 0xeb1   :  { %v985_v23 = vadd.f32 1.0, %v1855_v22 }
 0xeb2   :  { %1856 = vrcp.f32 %v961_v21 }
 0xeb3   :  { %1858 = vrcp.f32 %v985_v23 }
 0xebc   :  { %v1857_v20 = vpop.eup %1856 }
 0xebd   :  { %v1859_v26 = vpop.eup %1858  ;;  %v965_v31 = vmul.f32 %v1857_v20, %v2201_v41 }
 0xebe   :  { %v989_v34 = vmul.f32 %v1859_v26, %v2205_v45 }
 0xf1d   :  { %v968_v24 = vpop.permute.xlu0 %967 }
 0xf1e   :  { %v970_v25 = vmul.f32 %v1857_v20, %v968_v24 }
 0xf20   :  { %972 = vrot.lane.b32.xlu0 %v970_v25, %s1916_s16 }
 0xf21   :  { %v992_v28 = vpop.permute.xlu1 %991 }
 0xf22   :  { %v994_v29 = vmul.f32 %v1859_v26, %v992_v28 }
 0xf24   :  { %996 = vrot.lane.b32.xlu1 %v994_v29, %s1916_s16 }
 0xf92   :  { %v973_v32 = vpop.permute.xlu0 %972 }
 0xf93   :  { %v2246_v33 = vadd.f32 %v973_v32, %v965_v31 }
 0xf95   :  { %1860 = vtanh.f32 %v2246_v33 }
 0xf96   :  { %v997_v36 = vpop.permute.xlu1 %996 }
 0xf97   :  { %v2250_v37 = vadd.f32 %v997_v36, %v989_v34 }
 0xf99   :  { %1862 = vtanh.f32 %v2250_v37 }
 0xf9f   :  { %v1861_v38 = vpop.eup %1860 }
 0xfa0   :  { %978 = vrot.lane.b32.xlu0 %v1861_v38, %s1915_s15 }
 0xfa3   :  { %v1863_v39 = vpop.eup %1862 }
 0xfa4   :  { %1002 = vrot.lane.b32.xlu1 %v1863_v39, %s1915_s15 }
0x1012   :  { %v979_v35 = vpop.permute.xlu0 %978 }
0x1013   :  { %v2255_v40 = vmul.f32 %v1857_v20, %v979_v35 }
0x1015   :  { %v1019_v41 = vpack.c.bf16 %v2255_v40, %v2255_v40 }
0x1016   :  { %v1003_v42 = vpop.permute.xlu1 %1002 }
0x1017   :  { %v2259_v44 = vmul.f32 %v1859_v26, %v1003_v42  ;;  %1021 = vrot.lane.b32.xlu0 %v1019_v41, %s1916_s16  ;;  %v1228_v42 = vunpack.c.l.bf16 %v2281_v49 }
0x1019   :  { %v1070_v45 = vpack.c.bf16 %v2259_v44, %v2259_v44 }
0x101b   :  { %1072 = vrot.lane.b32.xlu1 %v1070_v45, %s1916_s16 }
0x1089   :  { %v1022_v47 = vpop.permute.xlu0 %1021 }
0x108a   :  { %1731 = vmatmul.mubr.msk.bf16.vlgmr.msra.gmra.mrb[24].mxu0 %vm49_vm1, %v1022_v47 }
0x108b   :  { %1743 = vmatpush3.bf16.msra.mxu0 %v1967_v1  ;;  %1746 = vmatprep.mubr.msk.bf16.mxu0 %vm1913_vm0, %v1912_v0  ;;  %v1018_v1 = vunpack.c.h.bf16 %v2237_v57 }
0x108c   :  { %1744 = vmatprep.subr.bf16.mxu0 %v1912_v0 }
0x108d   :  { %v1073_v48 = vpop.permute.xlu1 %1072 }
0x108e   :  { %1739 = vmatmul.mubr.msk.bf16.vlgmr.msra.gmra.mrb[24].mxu1 %vm49_vm1, %v1073_v48 }
0x108f   :  { %1751 = vmatpush3.bf16.msra.mxu1 %v1973_v2  ;;  %1745 = vmatpush3.bf16.msra.mxu0 %v1983_v3  ;;  %v1069_v2 = vunpack.c.h.bf16 %v2281_v49 }
0x1090   :  { %1752 = vmatprep.subr.bf16.mxu1 %v1912_v0  ;;  %1754 = vmatprep.mubr.msk.bf16.mxu1 %vm1913_vm0, %v1912_v0 }
0x1093   :  { %1753 = vmatpush3.bf16.msra.mxu1 %v1990_v4 }
0x115d   :  { %v1060_v51 = vpop.f32.mrb[24].mxu0 }
0x115e   :  { %v1066_v52 = vadd.f32 %v1060_v51, %v1018_v1  ;;  %v1732_v54 = vpop.f32.mrb[25].mxu0 }
0x115f   :  { %v1063_v3 = vpop.f32.mrb[26].mxu0 }
0x1160   :  { %1864 = vtanh.f32 %v1066_v52  ;;  %v1733_v55 = vpop.f32.mrb[27].mxu0  ;;  %v1568_v62 = vmul.f32 -1.442695, %v1066_v52 }
0x1161   :  { %v1111_v56 = vpop.f32.mrb[24].mxu1 }
0x1162   :  { %v1117_v58 = vadd.f32 %v1111_v56, %v1069_v2  ;;  %v1740_v0 = vpop.f32.mrb[25].mxu1 }
0x1163   :  { %v1114_v59 = vpop.f32.mrb[26].mxu1 }
0x1164   :  { %1866 = vtanh.f32 %v1117_v58  ;;  %v1741_v4 = vpop.f32.mrb[27].mxu1  ;;  %v1569_v5 = vmul.f32 -1.442695, %v1117_v58 }
0x1165   :  { %1868 = vpow2.f32 %v1568_v62 }
0x1166   :  { %1870 = vpow2.f32 %v1569_v5 }
0x116a   :  { %v1865_v57 = vpop.eup %1864 }
0x116b   :  { %1127 = vrot.lane.b32.xlu0 %v1865_v57, %s1915_s15 }
0x116e   :  { %v1867_v61 = vpop.eup %1866 }
0x116f   :  { %1151 = vrot.lane.b32.xlu1 %v1867_v61, %s1915_s15  ;;  %v1869_v6 = vpop.eup %1868 }
0x1170   :  { %v1121_v8 = vadd.f32 1.0, %v1869_v6  ;;  %v1871_v7 = vpop.eup %1870 }
0x1171   :  { %v1145_v10 = vadd.f32 1.0, %v1871_v7 }
0x1172   :  { %1872 = vrcp.f32 %v1121_v8 }
0x1173   :  { %1874 = vrcp.f32 %v1145_v10 }
0x117c   :  { %v1873_v11 = vpop.eup %1872 }
0x117d   :  { %v1875_v15 = vpop.eup %1874  ;;  %v1125_v19 = vmul.f32 %v1873_v11, %v2246_v33 }
0x117e   :  { %v1149_v22 = vmul.f32 %v1875_v15, %v2250_v37  ;;  %v1572_v37 = vld [vmem:[%s2557_s0 + $0x1c] sm:$0xf]  ;;  %s1917_s0 = smov 96  }
0x117f   :  { %v1178_v38 = vunpack.c.l.bf16 %v1572_v37 }
0x11dd   :  { %v1128_v12 = vpop.permute.xlu0 %1127 }
0x11de   :  { %v1130_v14 = vmul.f32 %v1873_v11, %v1128_v12 }
0x11e0   :  { %1132 = vrot.lane.b32.xlu0 %v1130_v14, %s1916_s16 }
0x11e1   :  { %v1152_v17 = vpop.permute.xlu1 %1151 }
0x11e2   :  { %v1154_v18 = vmul.f32 %v1875_v15, %v1152_v17 }
0x11e4   :  { %1156 = vrot.lane.b32.xlu1 %v1154_v18, %s1916_s16 }
0x1252   :  { %v1133_v9 = vpop.permute.xlu0 %1132 }
0x1253   :  { %v1135_v21 = vadd.f32 %v1133_v9, %v1125_v19 }
0x1255   :  { %1876 = vtanh.f32 %v1135_v21 }
0x1256   :  { %v1157_v23 = vpop.permute.xlu1 %1156 }
0x1257   :  { %v1159_v20 = vadd.f32 %v1157_v23, %v1149_v22 }
0x1259   :  { %1878 = vtanh.f32 %v1159_v20 }
0x125f   :  { %v1877_v24 = vpop.eup %1876 }
0x1260   :  { %1138 = vrot.lane.b32.xlu0 %v1877_v24, %s1915_s15 }
0x1263   :  { %v1879_v25 = vpop.eup %1878 }
0x1264   :  { %1162 = vrot.lane.b32.xlu1 %v1879_v25, %s1915_s15 }
0x12d2   :  { %v1139_v26 = vpop.permute.xlu0 %1138 }
0x12d3   :  { %v2292_v28 = vmul.f32 %v1873_v11, %v1139_v26 }
0x12d5   :  { %v1179_v29 = vpack.c.bf16 %v2292_v28, %v2292_v28 }
0x12d6   :  { %v1163_v31 = vpop.permute.xlu1 %1162 }
0x12d7   :  { %v2296_v32 = vmul.f32 %v1875_v15, %v1163_v31  ;;  %1181 = vrot.lane.b32.xlu0 %v1179_v29, %s1916_s16 }
0x12d9   :  { %v1229_v33 = vpack.c.bf16 %v2296_v32, %v2296_v32 }
0x12db   :  { %1231 = vrot.lane.b32.xlu1 %v1229_v33, %s1916_s16 }
0x1349   :  { %v1182_v34 = vpop.permute.xlu0 %1181 }
0x134a   :  { %1747 = vmatmul.mubr.msk.bf16.vlgmr.msra.gmra.mrb[28].mxu0 %vm49_vm1, %v1182_v34 }
0x134d   :  { %v1232_v36 = vpop.permute.xlu1 %1231 }
0x134e   :  { %1755 = vmatmul.mubr.msk.bf16.vlgmr.msra.gmra.mrb[28].mxu1 %vm49_vm1, %v1232_v36 }
0x141d   :  { %v1220_v39 = vpop.f32.mrb[28].mxu0 }
0x141e   :  { %v1226_v35 = vadd.f32 %v1220_v39, %v1178_v38  ;;  %v1748_v41 = vpop.f32.mrb[29].mxu0 }
0x141f   :  { %v1223_v45 = vpop.f32.mrb[30].mxu0 }
0x1420   :  { %1880 = vtanh.f32 %v1226_v35  ;;  %v1749_v47 = vpop.f32.mrb[31].mxu0  ;;  %v1575_v55 = vmul.f32 -1.442695, %v1226_v35 }
0x1421   :  { %v1270_v48 = vpop.f32.mrb[28].mxu1 }
0x1422   :  { %v1276_v1 = vadd.f32 %v1270_v48, %v1228_v42  ;;  %v1756_v51 = vpop.f32.mrb[29].mxu1 }
0x1423   :  { %v1273_v52 = vpop.f32.mrb[30].mxu1 }
0x1424   :  { %1882 = vtanh.f32 %v1276_v1  ;;  %v1757_v54 = vpop.f32.mrb[31].mxu1  ;;  %v1576_v56 = vmul.f32 -1.442695, %v1276_v1 }
0x1425   :  { %1884 = vpow2.f32 %v1575_v55 }
0x1426   :  { %1886 = vpow2.f32 %v1576_v56 }
0x142a   :  { %v1881_v2 = vpop.eup %1880 }
0x142b   :  { %1286 = vrot.lane.b32.xlu0 %v1881_v2, %s1915_s15 }
0x142e   :  { %v1883_v3 = vpop.eup %1882 }
0x142f   :  { %1310 = vrot.lane.b32.xlu1 %v1883_v3, %s1915_s15  ;;  %v1885_v49 = vpop.eup %1884 }
0x1430   :  { %v1280_v58 = vadd.f32 1.0, %v1885_v49  ;;  %v1887_v0 = vpop.eup %1886 }
0x1431   :  { %v1304_v59 = vadd.f32 1.0, %v1887_v0 }
0x1432   :  { %1888 = vrcp.f32 %v1280_v58 }
0x1433   :  { %1890 = vrcp.f32 %v1304_v59 }
0x143c   :  { %v1889_v4 = vpop.eup %1888 }
0x143d   :  { %v1891_v62 = vpop.eup %1890  ;;  %v1284_v8 = vmul.f32 %v1889_v4, %v1135_v21 }
0x143e   :  { %v1308_v11 = vmul.f32 %v1891_v62, %v1159_v20 }
0x149d   :  { %v1287_v57 = vpop.permute.xlu0 %1286 }
0x149e   :  { %v1289_v61 = vmul.f32 %v1889_v4, %v1287_v57 }
0x14a0   :  { %1291 = vrot.lane.b32.xlu0 %v1289_v61, %s1916_s16 }
0x14a1   :  { %v1311_v5 = vpop.permute.xlu1 %1310 }
0x14a2   :  { %v1313_v6 = vmul.f32 %v1891_v62, %v1311_v5 }
0x14a4   :  { %1315 = vrot.lane.b32.xlu1 %v1313_v6, %s1916_s16 }
0x1512   :  { %v1292_v7 = vpop.permute.xlu0 %1291 }
0x1513   :  { %v2312_v10 = vadd.f32 %v1292_v7, %v1284_v8 }
0x1515   :  { %1892 = vtanh.f32 %v2312_v10 }
0x1516   :  { %v1316_v12 = vpop.permute.xlu1 %1315 }
0x1517   :  { %v2315_v14 = vadd.f32 %v1316_v12, %v1308_v11 }
0x1519   :  { %1894 = vtanh.f32 %v2315_v14 }
0x151f   :  { %v1893_v15 = vpop.eup %1892 }
0x1520   :  { %1297 = vrot.lane.b32.xlu0 %v1893_v15, %s1915_s15 }
0x1523   :  { %v1895_v17 = vpop.eup %1894 }
0x1524   :  { %1321 = vrot.lane.b32.xlu1 %v1895_v17, %s1915_s15  ;;  %199 = vrot.lane.b32.xlu0 %v2030_v43, %s1916_s16 }
0x1528   :  { %204 = vrot.lane.b32.xlu1 %v2034_v46, %s1915_s15  ;;  %361 = vrot.lane.b32.xlu0 %v2075_v27, %s1916_s16 }
0x152c   :  { %367 = vrot.lane.b32.xlu1 %v2079_v30, %s1915_s15  ;;  %523 = vrot.lane.b32.xlu0 %v2120_v13, %s1916_s16 }
0x1530   :  { %529 = vrot.lane.b32.xlu1 %v2124_v16, %s1915_s15  ;;  %685 = vrot.lane.b32.xlu0 %v2165_v60, %s1916_s16 }
0x1534   :  { %691 = vrot.lane.b32.xlu1 %v2169_v63, %s1915_s15  ;;  %847 = vrot.lane.b32.xlu0 %v2210_v50, %s1916_s16 }
0x1538   :  { %852 = vrot.lane.b32.xlu1 %v2214_v53, %s1915_s15  ;;  %1007 = vrot.lane.b32.xlu0 %v2255_v40, %s1916_s16 }
0x153c   :  { %1012 = vrot.lane.b32.xlu1 %v2259_v44, %s1915_s15  ;;  %1167 = vrot.lane.b32.xlu0 %v2292_v28, %s1916_s16 }
0x1540   :  { %1172 = vrot.lane.b32.xlu1 %v2296_v32, %s1915_s15 }
0x1592   :  { %v1298_v43 = vpop.permute.xlu0 %1297 }
0x1593   :  { %v1300_v46 = vmul.f32 %v1889_v4, %v1298_v43 }
0x1595   :  { %1326 = vrot.lane.b32.xlu0 %v1300_v46, %s1916_s16 }
0x1596   :  { %v1322_v27 = vpop.permute.xlu1 %1321  ;;  %v200_v30 = vpop.permute.xlu0 %199 }
0x1597   :  { %v2349_v13 = vmul.f32 %v1891_v62, %v1322_v27  ;;  %202 = vst.msk [vmem:[%s2559_s6] sm:$0xff] %vm49_vm1, %v200_v30 }
0x1599   :  { %1331 = vrot.lane.b32.xlu1 %v2349_v13, %s1915_s15 }
0x159a   :  { %v205_v16 = vpop.permute.xlu1 %204  ;;  %v362_v60 = vpop.permute.xlu0 %361 }
0x159b   :  { %1523 = vst.msk [vmem:[%s2559_s6 + $0x38] sm:$0xff] %vm208_vm2, %v205_v16 }
0x159c   :  { %1530 = vst.msk [vmem:[%s2559_s6 + $0x8] sm:$0xff] %vm49_vm1, %v362_v60 }
0x159e   :  { %v368_v63 = vpop.permute.xlu1 %367  ;;  %v524_v50 = vpop.permute.xlu0 %523 }
0x159f   :  { %1531 = vst.msk [vmem:[%s2559_s6 + $0x30] sm:$0xff] %vm208_vm2, %v368_v63 }
0x15a0   :  { %1538 = vst.msk [vmem:[%s2559_s6 + $0x10] sm:$0xff] %vm49_vm1, %v524_v50 }
0x15a2   :  { %v530_v53 = vpop.permute.xlu1 %529  ;;  %v686_v40 = vpop.permute.xlu0 %685 }
0x15a3   :  { %1539 = vst.msk [vmem:[%s2559_s6 + $0x28] sm:$0xff] %vm208_vm2, %v530_v53 }
0x15a4   :  { %1546 = vst.msk [vmem:[%s2559_s6 + $0x18] sm:$0xff] %vm49_vm1, %v686_v40 }
0x15a6   :  { %v692_v44 = vpop.permute.xlu1 %691  ;;  %v848_v18 = vpop.permute.xlu0 %847 }
0x15a7   :  { %1547 = vst.msk [vmem:[%s2559_s6 + $0x20] sm:$0xff] %vm208_vm2, %v692_v44 }
0x15a8   :  { %1554 = vst.msk [vmem:[%s2559_s6 + $0x20] sm:$0xff] %vm49_vm1, %v848_v18 }
0x15aa   :  { %v853_v19 = vpop.permute.xlu1 %852  ;;  %v1008_v9 = vpop.permute.xlu0 %1007 }
0x15ab   :  { %1555 = vst.msk [vmem:[%s2559_s6 + $0x18] sm:$0xff] %vm208_vm2, %v853_v19 }
0x15ac   :  { %1562 = vst.msk [vmem:[%s2559_s6 + $0x28] sm:$0xff] %vm49_vm1, %v1008_v9 }
0x15ae   :  { %v1013_v21 = vpop.permute.xlu1 %1012  ;;  %v1168_v22 = vpop.permute.xlu0 %1167 }
0x15af   :  { %1563 = vst.msk [vmem:[%s2559_s6 + $0x10] sm:$0xff] %vm208_vm2, %v1013_v21  ;;  %v1356_v32 = vld [vmem:[%s2559_s6 + $0x20] sm:$0xff] }
0x15b0   :  { %1570 = vst.msk [vmem:[%s2559_s6 + $0x30] sm:$0xff] %vm49_vm1, %v1168_v22  ;;  %v1373_v34 = vsel %vm1360_vm3, %v1356_v32, 0.0 }
0x15b2   :  { %v1173_v23 = vpop.permute.xlu1 %1172  ;;  %v1355_v25 = vld [vmem:[%s2559_s6 + $0x18] sm:$0xff] }
0x15b3   :  { %1571 = vst.msk [vmem:[%s2559_s6 + $0x8] sm:$0xff] %vm208_vm2, %v1173_v23  ;;  %v1370_v28 = vsel %vm1360_vm3, %v1355_v25, 0.0  ;;  %v1357_v31 = vld [vmem:[%s2559_s6 + $0x28] sm:$0xff] }
0x15b4   :  { %v1376_v33 = vsel %vm1360_vm3, %v1357_v31, 0.0 }
0x15b6   :  { %v1354_v20 = vld [vmem:[%s2559_s6 + $0x10] sm:$0xff] }
0x15b7   :  { %v1367_v24 = vsel %vm1360_vm3, %v1354_v20, 0.0  ;;  %v1358_v36 = vld [vmem:[%s2559_s6 + $0x30] sm:$0xff] }
0x15b8   :  { %1368 = vadd.xlane.f32.xlu0 %v1367_v24  ;;  %v1379_v37 = vsel %vm1360_vm3, %v1358_v36, 0.0 }
0x15ba   :  { %v1353_v26 = vld [vmem:[%s2559_s6 + $0x8] sm:$0xff] }
0x15bb   :  { %v1364_v29 = vsel %vm1360_vm3, %v1353_v26, 0.0 }
0x15bc   :  { %1371 = vadd.xlane.f32.xlu0 %v1370_v28 }
0x15bd   :  { %1365 = vadd.xlane.f32.xlu1 %v1364_v29 }
0x15c0   :  { %1377 = vadd.xlane.f32.xlu0 %v1376_v33 }
0x15c1   :  { %1374 = vadd.xlane.f32.xlu1 %v1373_v34 }
0x15c5   :  { %1380 = vadd.xlane.f32.xlu1 %v1379_v37  ;;  %v1580_v37 = vld [vmem:[%s2561_s4] ss:$0 sm:$0xff] }
0x1607   :  { %v1327_v38 = vpop.permute.xlu0 %1326 }
0x1608   :  { %1577 = vst.msk [vmem:[%s2559_s6 + $0x38] sm:$0xff] %vm49_vm1, %v1327_v38  ;;  %1335 = vst.msk [vmem:[%s2560_s7] sm:$0xff] %vm49_vm1, %v1327_v38 }
0x160b   :  { %v1332_v39 = vpop.permute.xlu1 %1331 }
0x160c   :  { %1334 = vst.msk [vmem:[%s2559_s6] sm:$0xff] %vm208_vm2, %v1332_v39 }
0x160f   :  { %v1359_v42 = vld [vmem:[%s2559_s6 + $0x38] sm:$0xff] }
0x1610   :  { %v1382_v45 = vsel %vm1360_vm3, %v1359_v42, 0.0 }
0x1613   :  { %v1352_v35 = vld [vmem:[%s2559_s6] sm:$0xff] }
0x1614   :  { %v1361_v41 = vsel %vm1360_vm3, %v1352_v35, 0.0 }
0x1615   :  { %1362 = vadd.xlane.f32.xlu0 %v1361_v41  ;;  %v1581_v41 = vld [vmem:[%s2562_s5] ss:$0 sm:$0xff] }
0x1619   :  { %1383 = vadd.xlane.f32.xlu0 %v1382_v45 }
0x1645   :  { %v1369_v47 = vpop.xlane.xlu0 %1368 }
0x1646   :  { %v1388_v48 = vmul.f32 0.015625, %v1369_v47 }
0x1648   :  { %v2453_v1 = vsub.f32 %v1354_v20, %v1388_v48 }
0x1649   :  { %v1372_v51 = vpop.xlane.xlu0 %1371 }
0x164a   :  { %v1389_v52 = vmul.f32 0.015625, %v1372_v51  ;;  %v1366_v54 = vpop.xlane.xlu1 %1365  ;;  %v1404_v2 = vmul.f32 %v2453_v1, %v2453_v1 }
0x164b   :  { %v1387_v3 = vmul.f32 0.015625, %v1366_v54 }
0x164c   :  { %v1416_v55 = vsel %vm1360_vm3, %v1404_v2, 0.0  ;;  %v2458_v56 = vsub.f32 %v1355_v25, %v1389_v52 }
0x164d   :  { %v2460_v49 = vsub.f32 %v1353_v26, %v1387_v3  ;;  %1417 = vadd.xlane.f32.xlu1 %v1416_v55  ;;  %v1378_v58 = vpop.xlane.xlu0 %1377 }
0x164e   :  { %v1391_v0 = vmul.f32 0.015625, %v1378_v58  ;;  %v1375_v59 = vpop.xlane.xlu1 %1374  ;;  %v1405_v6 = vmul.f32 %v2458_v56, %v2458_v56 }
0x164f   :  { %v1390_v4 = vmul.f32 0.015625, %v1375_v59  ;;  %v1403_v57 = vmul.f32 %v2460_v49, %v2460_v49 }
0x1650   :  { %v2464_v61 = vsub.f32 %v1357_v31, %v1391_v0  ;;  %v1419_v17 = vsel %vm1360_vm3, %v1405_v6, 0.0 }
0x1651   :  { %v2466_v62 = vsub.f32 %v1356_v32, %v1390_v4  ;;  %v1413_v5 = vsel %vm1360_vm3, %v1403_v57, 0.0 }
0x1652   :  { %v1381_v8 = vpop.xlane.xlu1 %1380  ;;  %1414 = vadd.xlane.f32.xlu0 %v1413_v5  ;;  %v1407_v43 = vmul.f32 %v2464_v61, %v2464_v61 }
0x1653   :  { %v1392_v7 = vmul.f32 0.015625, %v1381_v8  ;;  %v1406_v11 = vmul.f32 %v2466_v62, %v2466_v62 }
0x1654   :  { %v1425_v30 = vsel %vm1360_vm3, %v1407_v43, 0.0 }
0x1655   :  { %v2473_v12 = vsub.f32 %v1358_v36, %v1392_v7  ;;  %v1422_v15 = vsel %vm1360_vm3, %v1406_v11, 0.0 }
0x1656   :  { %1423 = vadd.xlane.f32.xlu1 %v1422_v15  ;;  %1420 = vadd.xlane.f32.xlu0 %v1419_v17 }
0x1657   :  { %v1408_v46 = vmul.f32 %v2473_v12, %v2473_v12 }
0x1659   :  { %v1428_v27 = vsel %vm1360_vm3, %v1408_v46, 0.0 }
0x165a   :  { %1429 = vadd.xlane.f32.xlu1 %v1428_v27  ;;  %1426 = vadd.xlane.f32.xlu0 %v1425_v30 }
0x16a2   :  { %v1363_v16 = vpop.xlane.xlu0 %1362 }
0x16a3   :  { %v1386_v60 = vmul.f32 0.015625, %v1363_v16 }
0x16a5   :  { %v2483_v63 = vsub.f32 %v1352_v35, %v1386_v60 }
0x16a6   :  { %v1384_v50 = vpop.xlane.xlu0 %1383 }
0x16a7   :  { %v1393_v53 = vmul.f32 0.015625, %v1384_v50  ;;  %v1402_v40 = vmul.f32 %v2483_v63, %v2483_v63 }
0x16a9   :  { %v2487_v44 = vsub.f32 %v1359_v42, %v1393_v53  ;;  %v1410_v18 = vsel %vm1360_vm3, %v1402_v40, 0.0 }
0x16aa   :  { %1411 = vadd.xlane.f32.xlu1 %v1410_v18 }
0x16ab   :  { %v1409_v19 = vmul.f32 %v2487_v44, %v2487_v44 }
0x16ad   :  { %v1431_v9 = vsel %vm1360_vm3, %v1409_v19, 0.0 }
0x16ae   :  { %1432 = vadd.xlane.f32.xlu0 %v1431_v9 }
0x16bb   :  { %1336 = vrot.lane.b32.xlu1 %v2349_v13, %s1916_s16 }
0x16bf   :  { %1347 = vrot.lane.b32.xlu1 %v2315_v14, %s1917_s0 }
0x16c4   :  { %1342 = vrot.lane.b32.xlu0 %v2312_v10, %s1917_s0 }
0x16da   :  { %v1418_v21 = vpop.xlane.xlu1 %1417 }
0x16db   :  { %v1436_v22 = vmul.f32 0.015625, %v1418_v21 }
0x16dd   :  { %v1444_v23 = vadd.f32 1e-05, %v1436_v22 }
0x16df   :  { %1896 = vrsqrt.f32 %v1444_v23  ;;  %v1415_v20 = vpop.xlane.xlu0 %1414 }
0x16e0   :  { %v1435_v24 = vmul.f32 0.015625, %v1415_v20 }
0x16e2   :  { %v1443_v25 = vadd.f32 1e-05, %v1435_v24 }
0x16e3   :  { %v1424_v26 = vpop.xlane.xlu1 %1423  ;;  %v1421_v28 = vpop.xlane.xlu0 %1420 }
0x16e4   :  { %1898 = vrsqrt.f32 %v1443_v25  ;;  %v1438_v29 = vmul.f32 0.015625, %v1424_v26  ;;  %v1437_v31 = vmul.f32 0.015625, %v1421_v28 }
0x16e6   :  { %v1446_v32 = vadd.f32 1e-05, %v1438_v29  ;;  %v1445_v33 = vadd.f32 1e-05, %v1437_v31 }
0x16e7   :  { %v1430_v13 = vpop.xlane.xlu1 %1429  ;;  %v1427_v34 = vpop.xlane.xlu0 %1426 }
0x16e8   :  { %1900 = vrsqrt.f32 %v1446_v32  ;;  %v1440_v14 = vmul.f32 0.015625, %v1430_v13  ;;  %v1439_v36 = vmul.f32 0.015625, %v1427_v34 }
0x16e9   :  { %v1897_v10 = vpop.eup %1896  ;;  %1902 = vrsqrt.f32 %v1445_v33 }
0x16ea   :  { %v1460_v38 = vmul.f32 %v1897_v10, %v2453_v1  ;;  %v1448_v39 = vadd.f32 1e-05, %v1440_v14  ;;  %v1447_v35 = vadd.f32 1e-05, %v1439_v36 }
0x16ec   :  { %v1475_v42 = vmul.f32 %v1580_v37, %v1460_v38  ;;  %1904 = vrsqrt.f32 %v1448_v39 }
0x16ed   :  { %1906 = vrsqrt.f32 %v1447_v35 }
0x16ee   :  { %v1899_v45 = vpop.eup %1898  ;;  %v1490_v47 = vadd.f32 %v1581_v41, %v1475_v42 }
0x16ef   :  { %v1459_v48 = vmul.f32 %v1899_v45, %v2460_v49 }
0x16f0   :  { %1498 = vst.msk [vmem:[%s2559_s6 + $0x10] sm:$0xff] %vm1360_vm3, %v1490_v47 }
0x16f1   :  { %v1474_v51 = vmul.f32 %v1580_v37, %v1459_v48 }
0x16f2   :  { %v1901_v1 = vpop.eup %1900 }
0x16f3   :  { %v1903_v52 = vpop.eup %1902  ;;  %v1489_v54 = vadd.f32 %v1581_v41, %v1474_v51  ;;  %v1462_v2 = vmul.f32 %v1901_v1, %v2466_v62 }
0x16f4   :  { %v1461_v3 = vmul.f32 %v1903_v52, %v2458_v56 }
0x16f5   :  { %1497 = vst.msk [vmem:[%s2559_s6 + $0x8] sm:$0xff] %vm1360_vm3, %v1489_v54  ;;  %v1477_v55 = vmul.f32 %v1580_v37, %v1462_v2 }
0x16f6   :  { %v1905_v49 = vpop.eup %1904  ;;  %v1476_v58 = vmul.f32 %v1580_v37, %v1461_v3 }
0x16f7   :  { %v1907_v0 = vpop.eup %1906  ;;  %v1492_v59 = vadd.f32 %v1581_v41, %v1477_v55  ;;  %v1464_v4 = vmul.f32 %v1905_v49, %v2473_v12 }
0x16f8   :  { %v1491_v57 = vadd.f32 %v1581_v41, %v1476_v58  ;;  %v1463_v5 = vmul.f32 %v1907_v0, %v2464_v61 }
0x16f9   :  { %1500 = vst.msk [vmem:[%s2559_s6 + $0x20] sm:$0xff] %vm1360_vm3, %v1492_v59  ;;  %v1479_v56 = vmul.f32 %v1580_v37, %v1464_v4 }
0x16fa   :  { %1499 = vst.msk [vmem:[%s2559_s6 + $0x18] sm:$0xff] %vm1360_vm3, %v1491_v57  ;;  %v1478_v62 = vmul.f32 %v1580_v37, %v1463_v5 }
0x16fb   :  { %v1494_v6 = vadd.f32 %v1581_v41, %v1479_v56 }
0x16fc   :  { %v1493_v8 = vadd.f32 %v1581_v41, %v1478_v62 }
0x16fd   :  { %1502 = vst.msk [vmem:[%s2559_s6 + $0x30] sm:$0xff] %vm1360_vm3, %v1494_v6 }
0x16fe   :  { %1501 = vst.msk [vmem:[%s2559_s6 + $0x28] sm:$0xff] %vm1360_vm3, %v1493_v8 }
0x1737   :  { %v1412_v61 = vpop.xlane.xlu1 %1411 }
0x1738   :  { %v1434_v7 = vmul.f32 0.015625, %v1412_v61 }
0x173a   :  { %v1442_v11 = vadd.f32 1e-05, %v1434_v7 }
0x173b   :  { %v1337_v12 = vpop.permute.xlu1 %1336  ;;  %v1433_v15 = vpop.xlane.xlu0 %1432 }
0x173c   :  { %1908 = vrsqrt.f32 %v1442_v11  ;;  %1578 = vst.msk [vmem:[%s2560_s7 + $0x8] sm:$0xff] %vm49_vm1, %v1337_v12  ;;  %v1441_v17 = vmul.f32 0.015625, %v1433_v15 }
0x173e   :  { %v1449_v43 = vadd.f32 1e-05, %v1441_v17 }
0x173f   :  { %v1348_v46 = vpop.permute.xlu1 %1347  ;;  %v1343_v27 = vpop.permute.xlu0 %1342 }
0x1740   :  { %1910 = vrsqrt.f32 %v1449_v43  ;;  %1579 = vst.msk [vmem:[%s2563_s8 + $0x8] sm:$0xff] %vm49_vm1, %v1348_v46  ;;  %1345 = vst.msk [vmem:[%s2563_s8] sm:$0xff] %vm49_vm1, %v1343_v27 }
0x1746   :  { %v1909_v30 = vpop.eup %1908 }
0x1747   :  { %v1458_v16 = vmul.f32 %v1909_v30, %v2483_v63 }
0x1749   :  { %v1473_v60 = vmul.f32 %v1580_v37, %v1458_v16 }
0x174a   :  { %v1911_v50 = vpop.eup %1910 }
0x174b   :  { %v1488_v53 = vadd.f32 %v1581_v41, %v1473_v60  ;;  %v1465_v40 = vmul.f32 %v1911_v50, %v2487_v44 }
0x174d   :  { %1496 = vst.msk [vmem:[%s2559_s6] sm:$0xff] %vm1360_vm3, %v1488_v53  ;;  %v1480_v18 = vmul.f32 %v1580_v37, %v1465_v40 }
0x174f   :  { %v1495_v19 = vadd.f32 %v1581_v41, %v1480_v18 }
0x1751   :  { %1503 = vst.msk [vmem:[%s2559_s6 + $0x38] sm:$0xff] %vm1360_vm3, %v1495_v19 }

</bundles_post_ra>
